<compile_context>
chip_gen: v6e
topology: v6e:2x2x1
jax: 0.10.0
libtpu: 0.0.40
codegen_flags: <defaults>
</compile_context>

<pallas_src>
import functools
import math

import jax
import jax.numpy as jnp
from jax.experimental import pallas as pl
from jax.experimental.pallas import tpu as pltpu


# ----------------------------------------------------------------------------
# Fused transformer-branch kernel:
#   attention(QKV fused) + residual + LN1 + FFN + residual + LN2, all in VMEM.
# ----------------------------------------------------------------------------
def _branch_kernel(x_ref, wqkv_ref, bqkv_ref, wo_ref, bo_ref,
                   w1_ref, b1_ref, w2_ref, b2_ref,
                   n1g_ref, n1b_ref, n2g_ref, n2b_ref,
                   o_ref, *, d_model, nhead, batch, seq, eps):
    x = x_ref[...].astype(jnp.float32)                      # [M, D], M = B*S
    D = d_model                                             # static Python int
    Dh = D // nhead
    scale = 1.0 / math.sqrt(Dh)

    # ---- fused QKV projection (single [D, 3D] matmul) ----------------------
    qkv = jnp.dot(x, wqkv_ref[...], preferred_element_type=jnp.float32)
    qkv = qkv + bqkv_ref[...]
    q = qkv[:, 0:D]
    k = qkv[:, D:2 * D]
    v = qkv[:, 2 * D:3 * D]

    # ---- multi-head self attention; per (batch, head) via static slices ----
    batch_outs = []
    for b in range(batch):
        r0 = b * seq
        qb = q[r0:r0 + seq, :]
        kb = k[r0:r0 + seq, :]
        vb = v[r0:r0 + seq, :]
        head_outs = []
        for h in range(nhead):
            c0 = h * Dh
            qh = qb[:, c0:c0 + Dh]
            kh = kb[:, c0:c0 + Dh]
            vh = vb[:, c0:c0 + Dh]
            # contract on the last dim directly (no explicit k transpose)
            s = jax.lax.dot_general(
                qh, kh, (((1,), (1,)), ((), ())),
                preferred_element_type=jnp.float32) * scale          # [S, S]
            s = s - jnp.max(s, axis=-1, keepdims=True)
            p = jnp.exp(s)
            p = p * pl.reciprocal(jnp.sum(p, axis=-1, keepdims=True),
                                  approx=True)
            head_outs.append(
                jnp.dot(p, vh, preferred_element_type=jnp.float32))  # [S, Dh]
        batch_outs.append(jnp.concatenate(head_outs, axis=-1))       # [S, D]
    attn = jnp.concatenate(batch_outs, axis=0)                       # [M, D]

    attn_out = jnp.dot(attn, wo_ref[...], preferred_element_type=jnp.float32)
    attn_out = attn_out + bo_ref[...]

    # ---- residual + LayerNorm 1 --------------------------------------------
    x1 = x + attn_out
    mu = jnp.mean(x1, axis=-1, keepdims=True)
    var = jnp.mean((x1 - mu) ** 2, axis=-1, keepdims=True)
    x1 = (x1 - mu) * jax.lax.rsqrt(var + eps) * n1g_ref[...] + n1b_ref[...]

    # ---- fused FFN (hidden activation stays in VMEM) ------------------------
    # TODO(synk): tanh-approx GELU; PyTorch nn.GELU default is the erf form.
    h = jnp.dot(x1, w1_ref[...], preferred_element_type=jnp.float32) + b1_ref[...]
    h = jax.nn.gelu(h, approximate=True)
    ff = jnp.dot(h, w2_ref[...], preferred_element_type=jnp.float32) + b2_ref[...]

    # ---- residual + LayerNorm 2 ---------------------------------------------
    x2 = x1 + ff
    mu2 = jnp.mean(x2, axis=-1, keepdims=True)
    var2 = jnp.mean((x2 - mu2) ** 2, axis=-1, keepdims=True)
    y = (x2 - mu2) * jax.lax.rsqrt(var2 + eps) * n2g_ref[...] + n2b_ref[...]
    o_ref[...] = y.astype(o_ref.dtype)


def branch_forward(src, att, ffn, norms, nhead, eps=1e-5):
    """Run one fused transformer branch.  src: [B, S, D]; nhead is static."""
    B, S, D = src.shape
    M = B * S
    F = ffn["w1"].shape[1]
    x2 = src.reshape(M, D)

    full = lambda shape: pl.BlockSpec(shape, lambda i: (0, 0))
    out = pl.pallas_call(
        functools.partial(_branch_kernel, d_model=D, nhead=nhead,
                          batch=B, seq=S, eps=eps),
        out_shape=jax.ShapeDtypeStruct((M, D), jnp.float32),
        grid=(1,),
        in_specs=[
            full((M, D)),            # x
            full((D, 3 * D)),        # wqkv
            full((1, 3 * D)),        # bqkv
            full((D, D)),            # wo
            full((1, D)),            # bo
            full((D, F)),            # w1
            full((1, F)),            # b1
            full((F, D)),            # w2
            full((1, D)),            # b2
            full((1, D)),            # norm1 gamma
            full((1, D)),            # norm1 beta
            full((1, D)),            # norm2 gamma
            full((1, D)),            # norm2 beta
        ],
        out_specs=full((M, D)),
        compiler_params=pltpu.CompilerParams(
            dimension_semantics=("arbitrary",)),
    )(x2,
      att["wqkv"], att["bqkv"].reshape(1, 3 * D),
      att["wo"], att["bo"].reshape(1, D),
      ffn["w1"], ffn["b1"].reshape(1, F),
      ffn["w2"], ffn["b2"].reshape(1, D),
      norms["n1_g"].reshape(1, D), norms["n1_b"].reshape(1, D),
      norms["n2_g"].reshape(1, D), norms["n2_b"].reshape(1, D))
    return out.reshape(B, S, D)


# ----------------------------------------------------------------------------
# Fused collapse-gate kernel: superposition stats + gate MLP + mixing.
# ----------------------------------------------------------------------------
def _gate_kernel(det_ref, sup_ref, gw1_ref, gb1_ref, gw2t_ref, gb2_ref,
                 newdet_ref, newsup_ref, unc_ref, alpha_ref, mask_ref,
                 *, sup_dim, d_model, p_target):
    det = det_ref[...].astype(jnp.float32)                  # [M, d]
    sup = sup_ref[...].astype(jnp.float32)                  # [M, k*d]
    d = d_model

    # mean / variance over the superposition dimension via lane slices
    acc = jnp.zeros_like(det)
    acc_sq = jnp.zeros_like(det)
    for j in range(sup_dim):
        sj = sup[:, j * d:(j + 1) * d]
        acc = acc + sj
        acc_sq = acc_sq + sj * sj
    inv_k = 1.0 / sup_dim
    collapsed = acc * inv_k                                  # [M, d]
    var = acc_sq * inv_k - collapsed * collapsed
    unc = jnp.mean(var, axis=-1, keepdims=True)              # [M, 1]

    # gate MLP (hidden + alpha stay in vregs; only final outputs stored)
    gate_in = jnp.concatenate([det, collapsed], axis=-1)     # [M, 2d]
    h = jnp.dot(gate_in, gw1_ref[...],
                preferred_element_type=jnp.float32) + gb1_ref[...]
    h = jax.nn.gelu(h, approximate=True)
    logit = jnp.sum(h * gw2t_ref[...], axis=-1, keepdims=True) + gb2_ref[...]
    alpha = jax.nn.sigmoid(logit)                            # [M, 1]
    mask = (alpha > p_target).astype(jnp.float32)            # [M, 1]

    newdet_ref[...] = (alpha * det + (1.0 - alpha) * collapsed
                       ).astype(newdet_ref.dtype)
    newsup_ref[...] = (sup * (1.0 - mask)).astype(newsup_ref.dtype)
    unc_ref[...] = unc.astype(unc_ref.dtype)
    alpha_ref[...] = alpha.astype(alpha_ref.dtype)
    mask_ref[...] = mask.astype(mask_ref.dtype)


def collapse_gate(det_out, sup_out, p, sup_dim, p_target=0.5):
    # TODO(synk): CollapseGate source not provided; semantics inferred from interface.
    B, S, d = det_out.shape
    k = sup_dim
    d_sup = k * d
    M = B * S

    full = lambda shape: pl.BlockSpec(shape, lambda i: (0, 0))
    outs = pl.pallas_call(
        functools.partial(_gate_kernel, sup_dim=k, d_model=d, p_target=p_target),
        out_shape=(
            jax.ShapeDtypeStruct((M, d), jnp.float32),        # new det
            jax.ShapeDtypeStruct((M, d_sup), jnp.float32),    # new sup
            jax.ShapeDtypeStruct((M, 1), jnp.float32),        # uncertainty
            jax.ShapeDtypeStruct((M, 1), jnp.float32),        # alpha
            jax.ShapeDtypeStruct((M, 1), jnp.float32),        # binary mask
        ),
        grid=(1,),
        in_specs=[
            full((M, d)),            # det
            full((M, d_sup)),        # sup
            full((2 * d, d)),        # gate w1
            full((1, d)),            # gate b1
            full((1, d)),            # gate w2 (transposed to row)
            full((1, 1)),            # gate b2
        ],
        out_specs=(
            full((M, d)), full((M, d_sup)),
            full((M, 1)), full((M, 1)), full((M, 1)),
        ),
        compiler_params=pltpu.CompilerParams(
            dimension_semantics=("arbitrary",)),
    )(det_out.reshape(M, d), sup_out.reshape(M, d_sup),
      p["gate_w1"], p["gate_b1"].reshape(1, d),
      p["gate_w2"].reshape(1, d), p["gate_b2"].reshape(1, 1))

    new_det, new_sup, unc, alpha, mask = outs
    alpha = alpha.reshape(B, S, 1)
    mask3 = mask.reshape(B, S, 1)
    return {
        "deterministic_state": new_det.reshape(B, S, d),
        "superposition_state": new_sup.reshape(B, S, d_sup),
        "uncertainty": unc.reshape(B, S, 1),
        "transition_prob": alpha,
        "resource_efficiency": jnp.mean(mask),
        "binary_mask": mask3,
        "alpha": alpha,
    }


# ----------------------------------------------------------------------------
# Parameters & full layer (forward only, eval mode — dropout = identity).
# The params pytree holds ARRAYS ONLY; hyper-params stay static Python ints.
# ----------------------------------------------------------------------------
def init_params(key, d_model=32, nhead=4, dim_ff=64, sup_dim=4):
    d_sup = d_model * sup_dim
    ks = iter(jax.random.split(key, 32))

    def lin(k, din, dout):
        return (0.02 * jax.random.normal(k, (din, dout), jnp.float32),
                jnp.zeros((dout,), jnp.float32))

    p = {}

    def attn_params(dim):
        wq, bq = lin(next(ks), dim, dim)
        wk, bk = lin(next(ks), dim, dim)
        wv, bv = lin(next(ks), dim, dim)
        wo, bo = lin(next(ks), dim, dim)
        return {"wqkv": jnp.concatenate([wq, wk, wv], axis=1),
                "bqkv": jnp.concatenate([bq, bk, bv], axis=0),
                "wo": wo, "bo": bo}

    p["att_det"] = attn_params(d_model)
    p["att_sup"] = attn_params(d_sup)

    def ffn_params(dim):
        w1, b1 = lin(next(ks), dim, dim_ff)
        w2, b2 = lin(next(ks), dim_ff, dim)
        return {"w1": w1, "b1": b1, "w2": w2, "b2": b2}

    p["ff_det"] = ffn_params(d_model)
    p["ff_sup"] = ffn_params(d_sup)

    p["norms_det"] = {"n1_g": jnp.ones((d_model,), jnp.float32),
                      "n1_b": jnp.zeros((d_model,), jnp.float32),
                      "n2_g": jnp.ones((d_model,), jnp.float32),
                      "n2_b": jnp.zeros((d_model,), jnp.float32)}
    p["norms_sup"] = {"n1_g": jnp.ones((d_sup,), jnp.float32),
                      "n1_b": jnp.zeros((d_sup,), jnp.float32),
                      "n2_g": jnp.ones((d_sup,), jnp.float32),
                      "n2_b": jnp.zeros((d_sup,), jnp.float32)}

    p["gate_w1"], p["gate_b1"] = lin(next(ks), 2 * d_model, d_model)
    p["gate_w2"], p["gate_b2"] = lin(next(ks), d_model, 1)
    return p


def integrated_transformer_layer(det_state, sup_state, p, *, nhead, sup_dim,
                                 p_target=0.5):
    # TODO(synk): src_mask / src_key_padding_mask not supported (None path only).
    det_out = branch_forward(det_state, p["att_det"], p["ff_det"],
                             p["norms_det"], nhead)
    sup_out = branch_forward(sup_state, p["att_sup"], p["ff_sup"],
                             p["norms_sup"], nhead)
    return collapse_gate(det_out, sup_out, p, sup_dim, p_target=p_target)


# ----------------------------------------------------------------------------
if __name__ == "__main__":
    B, S = 2, 8
    d_model, nhead, dim_ff, sup_dim = 32, 4, 64, 4
    d_sup = d_model * sup_dim

    params = init_params(jax.random.PRNGKey(42), d_model, nhead, dim_ff, sup_dim)

    key = jax.random.PRNGKey(0)
    k1, k2 = jax.random.split(key)
    det_state = jax.random.normal(k1, (B, S, d_model), jnp.float32)
    sup_state = jax.random.normal(k2, (B, S, d_sup), jnp.float32)

    # Bind hyper-params statically BEFORE jit so they never become tracers.
    fwd = jax.jit(functools.partial(integrated_transformer_layer,
                                    nhead=nhead, sup_dim=sup_dim, p_target=0.5))
    out = fwd(det_state, sup_state, params)
    out = jax.block_until_ready(out)

    assert out["deterministic_state"].shape == (B, S, d_model)
    assert out["superposition_state"].shape == (B, S, d_sup)
    assert out["uncertainty"].shape == (B, S, 1)
    assert out["alpha"].shape == (B, S, 1)
    assert out["binary_mask"].shape == (B, S, 1)
    assert bool(jnp.all(jnp.isfinite(out["deterministic_state"])))
    assert bool(jnp.all(jnp.isfinite(out["superposition_state"])))
    print("KERNEL_OK")
</pallas_src>

<mosaic_0001>
module attributes {stable_mosaic.version = 11 : i64} {
  func.func @_branch_kernel(%arg0: i32, %arg1: memref<16x128xf32, #tpu.memory_space<vmem>>, %arg2: memref<128x384xf32, #tpu.memory_space<vmem>>, %arg3: memref<1x384xf32, #tpu.memory_space<vmem>>, %arg4: memref<128x128xf32, #tpu.memory_space<vmem>>, %arg5: memref<1x128xf32, #tpu.memory_space<vmem>>, %arg6: memref<128x64xf32, #tpu.memory_space<vmem>>, %arg7: memref<1x64xf32, #tpu.memory_space<vmem>>, %arg8: memref<64x128xf32, #tpu.memory_space<vmem>>, %arg9: memref<1x128xf32, #tpu.memory_space<vmem>>, %arg10: memref<1x128xf32, #tpu.memory_space<vmem>>, %arg11: memref<1x128xf32, #tpu.memory_space<vmem>>, %arg12: memref<1x128xf32, #tpu.memory_space<vmem>>, %arg13: memref<1x128xf32, #tpu.memory_space<vmem>>, %arg14: memref<16x128xf32, #tpu.memory_space<vmem>>) attributes {dimension_semantics = [#tpu.dimension_semantics<arbitrary>], iteration_bounds = array<i64: 1>, scalar_prefetch = 0 : i64, scratch_operands = 0 : i64, tpu.core_type = #tpu.core_type<tc>, window_params = [{pipeline_mode = #tpu.pipeline_mode<synchronous>, transform_indices = @transform_0, window_bounds = array<i64: 16, 128>}, {pipeline_mode = #tpu.pipeline_mode<synchronous>, transform_indices = @transform_1, window_bounds = array<i64: 128, 384>}, {pipeline_mode = #tpu.pipeline_mode<synchronous>, transform_indices = @transform_2, window_bounds = array<i64: 1, 384>}, {pipeline_mode = #tpu.pipeline_mode<synchronous>, transform_indices = @transform_3, window_bounds = array<i64: 128, 128>}, {pipeline_mode = #tpu.pipeline_mode<synchronous>, transform_indices = @transform_4, window_bounds = array<i64: 1, 128>}, {pipeline_mode = #tpu.pipeline_mode<synchronous>, transform_indices = @transform_5, window_bounds = array<i64: 128, 64>}, {pipeline_mode = #tpu.pipeline_mode<synchronous>, transform_indices = @transform_6, window_bounds = array<i64: 1, 64>}, {pipeline_mode = #tpu.pipeline_mode<synchronous>, transform_indices = @transform_7, window_bounds = array<i64: 64, 128>}, {pipeline_mode = #tpu.pipeline_mode<synchronous>, transform_indices = @transform_8, window_bounds = array<i64: 1, 128>}, {pipeline_mode = #tpu.pipeline_mode<synchronous>, transform_indices = @transform_9, window_bounds = array<i64: 1, 128>}, {pipeline_mode = #tpu.pipeline_mode<synchronous>, transform_indices = @transform_10, window_bounds = array<i64: 1, 128>}, {pipeline_mode = #tpu.pipeline_mode<synchronous>, transform_indices = @transform_11, window_bounds = array<i64: 1, 128>}, {pipeline_mode = #tpu.pipeline_mode<synchronous>, transform_indices = @transform_12, window_bounds = array<i64: 1, 128>}, {pipeline_mode = #tpu.pipeline_mode<synchronous>, transform_indices = @transform_13, window_bounds = array<i64: 16, 128>}]} {
    %c0 = arith.constant 0 : index
    %c0_0 = arith.constant 0 : index
    %0 = vector.load %arg1[%c0, %c0_0] : memref<16x128xf32, #tpu.memory_space<vmem>>, vector<16x128xf32>
    %c0_1 = arith.constant 0 : index
    %c0_2 = arith.constant 0 : index
    %1 = vector.load %arg2[%c0_1, %c0_2] : memref<128x384xf32, #tpu.memory_space<vmem>>, vector<128x384xf32>
    %cst = arith.constant dense<0.000000e+00> : vector<16x384xf32>
    %2 = tpu.matmul %0, %1, %cst {dimension_numbers = #tpu.dot_dimension_numbers<[1], [0], [0], [1], [0, 0, 1, 1], [], []>} : vector<16x128xf32>, vector<128x384xf32>, vector<16x384xf32> -> vector<16x384xf32>
    %c0_3 = arith.constant 0 : index
    %c0_4 = arith.constant 0 : index
    %3 = vector.load %arg3[%c0_3, %c0_4] : memref<1x384xf32, #tpu.memory_space<vmem>>, vector<1x384xf32>
    %4 = vector.broadcast %3 : vector<1x384xf32> to vector<16x384xf32>
    %5 = arith.addf %2, %4 : vector<16x384xf32>
    %6 = vector.extract_strided_slice %5 {offsets = [0, 0], sizes = [16, 128], strides = [1, 1]} : vector<16x384xf32> to vector<16x128xf32>
    %7 = vector.extract_strided_slice %5 {offsets = [0, 128], sizes = [16, 128], strides = [1, 1]} : vector<16x384xf32> to vector<16x128xf32>
    %8 = vector.extract_strided_slice %5 {offsets = [0, 256], sizes = [16, 128], strides = [1, 1]} : vector<16x384xf32> to vector<16x128xf32>
    %9 = vector.extract_strided_slice %6 {offsets = [0, 0], sizes = [8, 128], strides = [1, 1]} : vector<16x128xf32> to vector<8x128xf32>
    %10 = vector.extract_strided_slice %7 {offsets = [0, 0], sizes = [8, 128], strides = [1, 1]} : vector<16x128xf32> to vector<8x128xf32>
    %11 = vector.extract_strided_slice %8 {offsets = [0, 0], sizes = [8, 128], strides = [1, 1]} : vector<16x128xf32> to vector<8x128xf32>
    %12 = vector.extract_strided_slice %9 {offsets = [0, 0], sizes = [8, 32], strides = [1, 1]} : vector<8x128xf32> to vector<8x32xf32>
    %13 = vector.extract_strided_slice %10 {offsets = [0, 0], sizes = [8, 32], strides = [1, 1]} : vector<8x128xf32> to vector<8x32xf32>
    %14 = vector.extract_strided_slice %11 {offsets = [0, 0], sizes = [8, 32], strides = [1, 1]} : vector<8x128xf32> to vector<8x32xf32>
    %cst_5 = arith.constant dense<0.000000e+00> : vector<8x8xf32>
    %15 = tpu.matmul %12, %13, %cst_5 {dimension_numbers = #tpu.dot_dimension_numbers<[1], [1], [0], [0], [0, 0, 1, 0], [], []>} : vector<8x32xf32>, vector<8x32xf32>, vector<8x8xf32> -> vector<8x8xf32>
    %cst_6 = arith.constant 0.176776692 : f32
    %16 = vector.broadcast %cst_6 : f32 to vector<8x8xf32>
    %17 = arith.mulf %15, %16 : vector<8x8xf32>
    %cst_7 = arith.constant dense<0xFF800000> : vector<8xf32>
    %18 = vector.multi_reduction <maximumf>, %17, %cst_7 [1] : vector<8x8xf32> to vector<8xf32>
    %19 = vector.shape_cast %18 : vector<8xf32> to vector<8x1xf32>
    %20 = vector.broadcast %19 : vector<8x1xf32> to vector<8x8xf32>
    %21 = arith.subf %17, %20 : vector<8x8xf32>
    %22 = math.exp %21 : vector<8x8xf32>
    %cst_8 = arith.constant dense<0.000000e+00> : vector<8xf32>
    %23 = vector.multi_reduction <add>, %22, %cst_8 [1] : vector<8x8xf32> to vector<8xf32>
    %24 = vector.shape_cast %23 : vector<8xf32> to vector<8x1xf32>
    %25 = tpu.reciprocal %24 {approx = true} : vector<8x1xf32> -> vector<8x1xf32>
    %26 = vector.broadcast %25 : vector<8x1xf32> to vector<8x8xf32>
    %27 = arith.mulf %22, %26 : vector<8x8xf32>
    %cst_9 = arith.constant dense<0.000000e+00> : vector<8x32xf32>
    %28 = tpu.matmul %27, %14, %cst_9 {dimension_numbers = #tpu.dot_dimension_numbers<[1], [0], [0], [1], [0, 0, 1, 1], [], []>} : vector<8x8xf32>, vector<8x32xf32>, vector<8x32xf32> -> vector<8x32xf32>
    %29 = vector.extract_strided_slice %9 {offsets = [0, 32], sizes = [8, 32], strides = [1, 1]} : vector<8x128xf32> to vector<8x32xf32>
    %30 = vector.extract_strided_slice %10 {offsets = [0, 32], sizes = [8, 32], strides = [1, 1]} : vector<8x128xf32> to vector<8x32xf32>
    %31 = vector.extract_strided_slice %11 {offsets = [0, 32], sizes = [8, 32], strides = [1, 1]} : vector<8x128xf32> to vector<8x32xf32>
    %cst_10 = arith.constant dense<0.000000e+00> : vector<8x8xf32>
    %32 = tpu.matmul %29, %30, %cst_10 {dimension_numbers = #tpu.dot_dimension_numbers<[1], [1], [0], [0], [0, 0, 1, 0], [], []>} : vector<8x32xf32>, vector<8x32xf32>, vector<8x8xf32> -> vector<8x8xf32>
    %cst_11 = arith.constant 0.176776692 : f32
    %33 = vector.broadcast %cst_11 : f32 to vector<8x8xf32>
    %34 = arith.mulf %32, %33 : vector<8x8xf32>
    %cst_12 = arith.constant dense<0xFF800000> : vector<8xf32>
    %35 = vector.multi_reduction <maximumf>, %34, %cst_12 [1] : vector<8x8xf32> to vector<8xf32>
    %36 = vector.shape_cast %35 : vector<8xf32> to vector<8x1xf32>
    %37 = vector.broadcast %36 : vector<8x1xf32> to vector<8x8xf32>
    %38 = arith.subf %34, %37 : vector<8x8xf32>
    %39 = math.exp %38 : vector<8x8xf32>
    %cst_13 = arith.constant dense<0.000000e+00> : vector<8xf32>
    %40 = vector.multi_reduction <add>, %39, %cst_13 [1] : vector<8x8xf32> to vector<8xf32>
    %41 = vector.shape_cast %40 : vector<8xf32> to vector<8x1xf32>
    %42 = tpu.reciprocal %41 {approx = true} : vector<8x1xf32> -> vector<8x1xf32>
    %43 = vector.broadcast %42 : vector<8x1xf32> to vector<8x8xf32>
    %44 = arith.mulf %39, %43 : vector<8x8xf32>
    %cst_14 = arith.constant dense<0.000000e+00> : vector<8x32xf32>
    %45 = tpu.matmul %44, %31, %cst_14 {dimension_numbers = #tpu.dot_dimension_numbers<[1], [0], [0], [1], [0, 0, 1, 1], [], []>} : vector<8x8xf32>, vector<8x32xf32>, vector<8x32xf32> -> vector<8x32xf32>
    %46 = vector.extract_strided_slice %9 {offsets = [0, 64], sizes = [8, 32], strides = [1, 1]} : vector<8x128xf32> to vector<8x32xf32>
    %47 = vector.extract_strided_slice %10 {offsets = [0, 64], sizes = [8, 32], strides = [1, 1]} : vector<8x128xf32> to vector<8x32xf32>
    %48 = vector.extract_strided_slice %11 {offsets = [0, 64], sizes = [8, 32], strides = [1, 1]} : vector<8x128xf32> to vector<8x32xf32>
    %cst_15 = arith.constant dense<0.000000e+00> : vector<8x8xf32>
    %49 = tpu.matmul %46, %47, %cst_15 {dimension_numbers = #tpu.dot_dimension_numbers<[1], [1], [0], [0], [0, 0, 1, 0], [], []>} : vector<8x32xf32>, vector<8x32xf32>, vector<8x8xf32> -> vector<8x8xf32>
    %cst_16 = arith.constant 0.176776692 : f32
    %50 = vector.broadcast %cst_16 : f32 to vector<8x8xf32>
    %51 = arith.mulf %49, %50 : vector<8x8xf32>
    %cst_17 = arith.constant dense<0xFF800000> : vector<8xf32>
    %52 = vector.multi_reduction <maximumf>, %51, %cst_17 [1] : vector<8x8xf32> to vector<8xf32>
    %53 = vector.shape_cast %52 : vector<8xf32> to vector<8x1xf32>
    %54 = vector.broadcast %53 : vector<8x1xf32> to vector<8x8xf32>
    %55 = arith.subf %51, %54 : vector<8x8xf32>
    %56 = math.exp %55 : vector<8x8xf32>
    %cst_18 = arith.constant dense<0.000000e+00> : vector<8xf32>
    %57 = vector.multi_reduction <add>, %56, %cst_18 [1] : vector<8x8xf32> to vector<8xf32>
    %58 = vector.shape_cast %57 : vector<8xf32> to vector<8x1xf32>
    %59 = tpu.reciprocal %58 {approx = true} : vector<8x1xf32> -> vector<8x1xf32>
    %60 = vector.broadcast %59 : vector<8x1xf32> to vector<8x8xf32>
    %61 = arith.mulf %56, %60 : vector<8x8xf32>
    %cst_19 = arith.constant dense<0.000000e+00> : vector<8x32xf32>
    %62 = tpu.matmul %61, %48, %cst_19 {dimension_numbers = #tpu.dot_dimension_numbers<[1], [0], [0], [1], [0, 0, 1, 1], [], []>} : vector<8x8xf32>, vector<8x32xf32>, vector<8x32xf32> -> vector<8x32xf32>
    %63 = vector.extract_strided_slice %9 {offsets = [0, 96], sizes = [8, 32], strides = [1, 1]} : vector<8x128xf32> to vector<8x32xf32>
    %64 = vector.extract_strided_slice %10 {offsets = [0, 96], sizes = [8, 32], strides = [1, 1]} : vector<8x128xf32> to vector<8x32xf32>
    %65 = vector.extract_strided_slice %11 {offsets = [0, 96], sizes = [8, 32], strides = [1, 1]} : vector<8x128xf32> to vector<8x32xf32>
    %cst_20 = arith.constant dense<0.000000e+00> : vector<8x8xf32>
    %66 = tpu.matmul %63, %64, %cst_20 {dimension_numbers = #tpu.dot_dimension_numbers<[1], [1], [0], [0], [0, 0, 1, 0], [], []>} : vector<8x32xf32>, vector<8x32xf32>, vector<8x8xf32> -> vector<8x8xf32>
    %cst_21 = arith.constant 0.176776692 : f32
    %67 = vector.broadcast %cst_21 : f32 to vector<8x8xf32>
    %68 = arith.mulf %66, %67 : vector<8x8xf32>
    %cst_22 = arith.constant dense<0xFF800000> : vector<8xf32>
    %69 = vector.multi_reduction <maximumf>, %68, %cst_22 [1] : vector<8x8xf32> to vector<8xf32>
    %70 = vector.shape_cast %69 : vector<8xf32> to vector<8x1xf32>
    %71 = vector.broadcast %70 : vector<8x1xf32> to vector<8x8xf32>
    %72 = arith.subf %68, %71 : vector<8x8xf32>
    %73 = math.exp %72 : vector<8x8xf32>
    %cst_23 = arith.constant dense<0.000000e+00> : vector<8xf32>
    %74 = vector.multi_reduction <add>, %73, %cst_23 [1] : vector<8x8xf32> to vector<8xf32>
    %75 = vector.shape_cast %74 : vector<8xf32> to vector<8x1xf32>
    %76 = tpu.reciprocal %75 {approx = true} : vector<8x1xf32> -> vector<8x1xf32>
    %77 = vector.broadcast %76 : vector<8x1xf32> to vector<8x8xf32>
    %78 = arith.mulf %73, %77 : vector<8x8xf32>
    %cst_24 = arith.constant dense<0.000000e+00> : vector<8x32xf32>
    %79 = tpu.matmul %78, %65, %cst_24 {dimension_numbers = #tpu.dot_dimension_numbers<[1], [0], [0], [1], [0, 0, 1, 1], [], []>} : vector<8x8xf32>, vector<8x32xf32>, vector<8x32xf32> -> vector<8x32xf32>
    %80 = tpu.concatenate %28, %45, %62, %79 in 1 : vector<8x32xf32>, vector<8x32xf32>, vector<8x32xf32>, vector<8x32xf32> -> vector<8x128xf32>
    %81 = vector.extract_strided_slice %6 {offsets = [8, 0], sizes = [8, 128], strides = [1, 1]} : vector<16x128xf32> to vector<8x128xf32>
    %82 = vector.extract_strided_slice %7 {offsets = [8, 0], sizes = [8, 128], strides = [1, 1]} : vector<16x128xf32> to vector<8x128xf32>
    %83 = vector.extract_strided_slice %8 {offsets = [8, 0], sizes = [8, 128], strides = [1, 1]} : vector<16x128xf32> to vector<8x128xf32>
    %84 = vector.extract_strided_slice %81 {offsets = [0, 0], sizes = [8, 32], strides = [1, 1]} : vector<8x128xf32> to vector<8x32xf32>
    %85 = vector.extract_strided_slice %82 {offsets = [0, 0], sizes = [8, 32], strides = [1, 1]} : vector<8x128xf32> to vector<8x32xf32>
    %86 = vector.extract_strided_slice %83 {offsets = [0, 0], sizes = [8, 32], strides = [1, 1]} : vector<8x128xf32> to vector<8x32xf32>
    %cst_25 = arith.constant dense<0.000000e+00> : vector<8x8xf32>
    %87 = tpu.matmul %84, %85, %cst_25 {dimension_numbers = #tpu.dot_dimension_numbers<[1], [1], [0], [0], [0, 0, 1, 0], [], []>} : vector<8x32xf32>, vector<8x32xf32>, vector<8x8xf32> -> vector<8x8xf32>
    %cst_26 = arith.constant 0.176776692 : f32
    %88 = vector.broadcast %cst_26 : f32 to vector<8x8xf32>
    %89 = arith.mulf %87, %88 : vector<8x8xf32>
    %cst_27 = arith.constant dense<0xFF800000> : vector<8xf32>
    %90 = vector.multi_reduction <maximumf>, %89, %cst_27 [1] : vector<8x8xf32> to vector<8xf32>
    %91 = vector.shape_cast %90 : vector<8xf32> to vector<8x1xf32>
    %92 = vector.broadcast %91 : vector<8x1xf32> to vector<8x8xf32>
    %93 = arith.subf %89, %92 : vector<8x8xf32>
    %94 = math.exp %93 : vector<8x8xf32>
    %cst_28 = arith.constant dense<0.000000e+00> : vector<8xf32>
    %95 = vector.multi_reduction <add>, %94, %cst_28 [1] : vector<8x8xf32> to vector<8xf32>
    %96 = vector.shape_cast %95 : vector<8xf32> to vector<8x1xf32>
    %97 = tpu.reciprocal %96 {approx = true} : vector<8x1xf32> -> vector<8x1xf32>
    %98 = vector.broadcast %97 : vector<8x1xf32> to vector<8x8xf32>
    %99 = arith.mulf %94, %98 : vector<8x8xf32>
    %cst_29 = arith.constant dense<0.000000e+00> : vector<8x32xf32>
    %100 = tpu.matmul %99, %86, %cst_29 {dimension_numbers = #tpu.dot_dimension_numbers<[1], [0], [0], [1], [0, 0, 1, 1], [], []>} : vector<8x8xf32>, vector<8x32xf32>, vector<8x32xf32> -> vector<8x32xf32>
    %101 = vector.extract_strided_slice %81 {offsets = [0, 32], sizes = [8, 32], strides = [1, 1]} : vector<8x128xf32> to vector<8x32xf32>
    %102 = vector.extract_strided_slice %82 {offsets = [0, 32], sizes = [8, 32], strides = [1, 1]} : vector<8x128xf32> to vector<8x32xf32>
    %103 = vector.extract_strided_slice %83 {offsets = [0, 32], sizes = [8, 32], strides = [1, 1]} : vector<8x128xf32> to vector<8x32xf32>
    %cst_30 = arith.constant dense<0.000000e+00> : vector<8x8xf32>
    %104 = tpu.matmul %101, %102, %cst_30 {dimension_numbers = #tpu.dot_dimension_numbers<[1], [1], [0], [0], [0, 0, 1, 0], [], []>} : vector<8x32xf32>, vector<8x32xf32>, vector<8x8xf32> -> vector<8x8xf32>
    %cst_31 = arith.constant 0.176776692 : f32
    %105 = vector.broadcast %cst_31 : f32 to vector<8x8xf32>
    %106 = arith.mulf %104, %105 : vector<8x8xf32>
    %cst_32 = arith.constant dense<0xFF800000> : vector<8xf32>
    %107 = vector.multi_reduction <maximumf>, %106, %cst_32 [1] : vector<8x8xf32> to vector<8xf32>
    %108 = vector.shape_cast %107 : vector<8xf32> to vector<8x1xf32>
    %109 = vector.broadcast %108 : vector<8x1xf32> to vector<8x8xf32>
    %110 = arith.subf %106, %109 : vector<8x8xf32>
    %111 = math.exp %110 : vector<8x8xf32>
    %cst_33 = arith.constant dense<0.000000e+00> : vector<8xf32>
    %112 = vector.multi_reduction <add>, %111, %cst_33 [1] : vector<8x8xf32> to vector<8xf32>
    %113 = vector.shape_cast %112 : vector<8xf32> to vector<8x1xf32>
    %114 = tpu.reciprocal %113 {approx = true} : vector<8x1xf32> -> vector<8x1xf32>
    %115 = vector.broadcast %114 : vector<8x1xf32> to vector<8x8xf32>
    %116 = arith.mulf %111, %115 : vector<8x8xf32>
    %cst_34 = arith.constant dense<0.000000e+00> : vector<8x32xf32>
    %117 = tpu.matmul %116, %103, %cst_34 {dimension_numbers = #tpu.dot_dimension_numbers<[1], [0], [0], [1], [0, 0, 1, 1], [], []>} : vector<8x8xf32>, vector<8x32xf32>, vector<8x32xf32> -> vector<8x32xf32>
    %118 = vector.extract_strided_slice %81 {offsets = [0, 64], sizes = [8, 32], strides = [1, 1]} : vector<8x128xf32> to vector<8x32xf32>
    %119 = vector.extract_strided_slice %82 {offsets = [0, 64], sizes = [8, 32], strides = [1, 1]} : vector<8x128xf32> to vector<8x32xf32>
    %120 = vector.extract_strided_slice %83 {offsets = [0, 64], sizes = [8, 32], strides = [1, 1]} : vector<8x128xf32> to vector<8x32xf32>
    %cst_35 = arith.constant dense<0.000000e+00> : vector<8x8xf32>
    %121 = tpu.matmul %118, %119, %cst_35 {dimension_numbers = #tpu.dot_dimension_numbers<[1], [1], [0], [0], [0, 0, 1, 0], [], []>} : vector<8x32xf32>, vector<8x32xf32>, vector<8x8xf32> -> vector<8x8xf32>
    %cst_36 = arith.constant 0.176776692 : f32
    %122 = vector.broadcast %cst_36 : f32 to vector<8x8xf32>
    %123 = arith.mulf %121, %122 : vector<8x8xf32>
    %cst_37 = arith.constant dense<0xFF800000> : vector<8xf32>
    %124 = vector.multi_reduction <maximumf>, %123, %cst_37 [1] : vector<8x8xf32> to vector<8xf32>
    %125 = vector.shape_cast %124 : vector<8xf32> to vector<8x1xf32>
    %126 = vector.broadcast %125 : vector<8x1xf32> to vector<8x8xf32>
    %127 = arith.subf %123, %126 : vector<8x8xf32>
    %128 = math.exp %127 : vector<8x8xf32>
    %cst_38 = arith.constant dense<0.000000e+00> : vector<8xf32>
    %129 = vector.multi_reduction <add>, %128, %cst_38 [1] : vector<8x8xf32> to vector<8xf32>
    %130 = vector.shape_cast %129 : vector<8xf32> to vector<8x1xf32>
    %131 = tpu.reciprocal %130 {approx = true} : vector<8x1xf32> -> vector<8x1xf32>
    %132 = vector.broadcast %131 : vector<8x1xf32> to vector<8x8xf32>
    %133 = arith.mulf %128, %132 : vector<8x8xf32>
    %cst_39 = arith.constant dense<0.000000e+00> : vector<8x32xf32>
    %134 = tpu.matmul %133, %120, %cst_39 {dimension_numbers = #tpu.dot_dimension_numbers<[1], [0], [0], [1], [0, 0, 1, 1], [], []>} : vector<8x8xf32>, vector<8x32xf32>, vector<8x32xf32> -> vector<8x32xf32>
    %135 = vector.extract_strided_slice %81 {offsets = [0, 96], sizes = [8, 32], strides = [1, 1]} : vector<8x128xf32> to vector<8x32xf32>
    %136 = vector.extract_strided_slice %82 {offsets = [0, 96], sizes = [8, 32], strides = [1, 1]} : vector<8x128xf32> to vector<8x32xf32>
    %137 = vector.extract_strided_slice %83 {offsets = [0, 96], sizes = [8, 32], strides = [1, 1]} : vector<8x128xf32> to vector<8x32xf32>
    %cst_40 = arith.constant dense<0.000000e+00> : vector<8x8xf32>
    %138 = tpu.matmul %135, %136, %cst_40 {dimension_numbers = #tpu.dot_dimension_numbers<[1], [1], [0], [0], [0, 0, 1, 0], [], []>} : vector<8x32xf32>, vector<8x32xf32>, vector<8x8xf32> -> vector<8x8xf32>
    %cst_41 = arith.constant 0.176776692 : f32
    %139 = vector.broadcast %cst_41 : f32 to vector<8x8xf32>
    %140 = arith.mulf %138, %139 : vector<8x8xf32>
    %cst_42 = arith.constant dense<0xFF800000> : vector<8xf32>
    %141 = vector.multi_reduction <maximumf>, %140, %cst_42 [1] : vector<8x8xf32> to vector<8xf32>
    %142 = vector.shape_cast %141 : vector<8xf32> to vector<8x1xf32>
    %143 = vector.broadcast %142 : vector<8x1xf32> to vector<8x8xf32>
    %144 = arith.subf %140, %143 : vector<8x8xf32>
    %145 = math.exp %144 : vector<8x8xf32>
    %cst_43 = arith.constant dense<0.000000e+00> : vector<8xf32>
    %146 = vector.multi_reduction <add>, %145, %cst_43 [1] : vector<8x8xf32> to vector<8xf32>
    %147 = vector.shape_cast %146 : vector<8xf32> to vector<8x1xf32>
    %148 = tpu.reciprocal %147 {approx = true} : vector<8x1xf32> -> vector<8x1xf32>
    %149 = vector.broadcast %148 : vector<8x1xf32> to vector<8x8xf32>
    %150 = arith.mulf %145, %149 : vector<8x8xf32>
    %cst_44 = arith.constant dense<0.000000e+00> : vector<8x32xf32>
    %151 = tpu.matmul %150, %137, %cst_44 {dimension_numbers = #tpu.dot_dimension_numbers<[1], [0], [0], [1], [0, 0, 1, 1], [], []>} : vector<8x8xf32>, vector<8x32xf32>, vector<8x32xf32> -> vector<8x32xf32>
    %152 = tpu.concatenate %100, %117, %134, %151 in 1 : vector<8x32xf32>, vector<8x32xf32>, vector<8x32xf32>, vector<8x32xf32> -> vector<8x128xf32>
    %153 = tpu.concatenate %80, %152 in 0 : vector<8x128xf32>, vector<8x128xf32> -> vector<16x128xf32>
    %c0_45 = arith.constant 0 : index
    %c0_46 = arith.constant 0 : index
    %154 = vector.load %arg4[%c0_45, %c0_46] : memref<128x128xf32, #tpu.memory_space<vmem>>, vector<128x128xf32>
    %cst_47 = arith.constant dense<0.000000e+00> : vector<16x128xf32>
    %155 = tpu.matmul %153, %154, %cst_47 {dimension_numbers = #tpu.dot_dimension_numbers<[1], [0], [0], [1], [0, 0, 1, 1], [], []>} : vector<16x128xf32>, vector<128x128xf32>, vector<16x128xf32> -> vector<16x128xf32>
    %c0_48 = arith.constant 0 : index
    %c0_49 = arith.constant 0 : index
    %156 = vector.load %arg5[%c0_48, %c0_49] : memref<1x128xf32, #tpu.memory_space<vmem>>, vector<1x128xf32>
    %157 = vector.broadcast %156 : vector<1x128xf32> to vector<16x128xf32>
    %158 = arith.addf %155, %157 : vector<16x128xf32>
    %159 = arith.addf %0, %158 : vector<16x128xf32>
    %cst_50 = arith.constant dense<0.000000e+00> : vector<16xf32>
    %160 = vector.multi_reduction <add>, %159, %cst_50 [1] : vector<16x128xf32> to vector<16xf32>
    %161 = vector.shape_cast %160 : vector<16xf32> to vector<16x1xf32>
    %cst_51 = arith.constant 1.280000e+02 : f32
    %162 = vector.broadcast %cst_51 : f32 to vector<16x1xf32>
    %163 = arith.divf %161, %162 : vector<16x1xf32>
    %164 = vector.broadcast %163 : vector<16x1xf32> to vector<16x128xf32>
    %165 = arith.subf %159, %164 : vector<16x128xf32>
    %166 = arith.mulf %165, %165 : vector<16x128xf32>
    %cst_52 = arith.constant dense<0.000000e+00> : vector<16xf32>
    %167 = vector.multi_reduction <add>, %166, %cst_52 [1] : vector<16x128xf32> to vector<16xf32>
    %168 = vector.shape_cast %167 : vector<16xf32> to vector<16x1xf32>
    %cst_53 = arith.constant 1.280000e+02 : f32
    %169 = vector.broadcast %cst_53 : f32 to vector<16x1xf32>
    %170 = arith.divf %168, %169 : vector<16x1xf32>
    %171 = vector.broadcast %163 : vector<16x1xf32> to vector<16x128xf32>
    %172 = arith.subf %159, %171 : vector<16x128xf32>
    %cst_54 = arith.constant 9.99999974E-6 : f32
    %173 = vector.broadcast %cst_54 : f32 to vector<16x1xf32>
    %174 = arith.addf %170, %173 : vector<16x1xf32>
    %175 = math.rsqrt %174 : vector<16x1xf32>
    %176 = vector.broadcast %175 : vector<16x1xf32> to vector<16x128xf32>
    %177 = arith.mulf %172, %176 : vector<16x128xf32>
    %c0_55 = arith.constant 0 : index
    %c0_56 = arith.constant 0 : index
    %178 = vector.load %arg10[%c0_55, %c0_56] : memref<1x128xf32, #tpu.memory_space<vmem>>, vector<1x128xf32>
    %179 = vector.broadcast %178 : vector<1x128xf32> to vector<16x128xf32>
    %180 = arith.mulf %177, %179 : vector<16x128xf32>
    %c0_57 = arith.constant 0 : index
    %c0_58 = arith.constant 0 : index
    %181 = vector.load %arg11[%c0_57, %c0_58] : memref<1x128xf32, #tpu.memory_space<vmem>>, vector<1x128xf32>
    %182 = vector.broadcast %181 : vector<1x128xf32> to vector<16x128xf32>
    %183 = arith.addf %180, %182 : vector<16x128xf32>
    %c0_59 = arith.constant 0 : index
    %c0_60 = arith.constant 0 : index
    %184 = vector.load %arg6[%c0_59, %c0_60] : memref<128x64xf32, #tpu.memory_space<vmem>>, vector<128x64xf32>
    %cst_61 = arith.constant dense<0.000000e+00> : vector<16x64xf32>
    %185 = tpu.matmul %183, %184, %cst_61 {dimension_numbers = #tpu.dot_dimension_numbers<[1], [0], [0], [1], [0, 0, 1, 1], [], []>} : vector<16x128xf32>, vector<128x64xf32>, vector<16x64xf32> -> vector<16x64xf32>
    %c0_62 = arith.constant 0 : index
    %c0_63 = arith.constant 0 : index
    %186 = vector.load %arg7[%c0_62, %c0_63] : memref<1x64xf32, #tpu.memory_space<vmem>>, vector<1x64xf32>
    %187 = vector.broadcast %186 : vector<1x64xf32> to vector<16x64xf32>
    %188 = arith.addf %185, %187 : vector<16x64xf32>
    %189 = arith.mulf %188, %188 : vector<16x64xf32>
    %190 = arith.mulf %188, %189 : vector<16x64xf32>
    %cst_64 = arith.constant 4.471500e-02 : f32
    %191 = vector.broadcast %cst_64 : f32 to vector<16x64xf32>
    %192 = arith.mulf %191, %190 : vector<16x64xf32>
    %193 = arith.addf %188, %192 : vector<16x64xf32>
    %cst_65 = arith.constant 0.797884583 : f32
    %194 = vector.broadcast %cst_65 : f32 to vector<16x64xf32>
    %195 = arith.mulf %194, %193 : vector<16x64xf32>
    %196 = math.tanh %195 : vector<16x64xf32>
    %cst_66 = arith.constant 1.000000e+00 : f32
    %197 = vector.broadcast %cst_66 : f32 to vector<16x64xf32>
    %198 = arith.addf %197, %196 : vector<16x64xf32>
    %cst_67 = arith.constant 5.000000e-01 : f32
    %199 = vector.broadcast %cst_67 : f32 to vector<16x64xf32>
    %200 = arith.mulf %199, %198 : vector<16x64xf32>
    %201 = arith.mulf %188, %200 : vector<16x64xf32>
    %c0_68 = arith.constant 0 : index
    %c0_69 = arith.constant 0 : index
    %202 = vector.load %arg8[%c0_68, %c0_69] : memref<64x128xf32, #tpu.memory_space<vmem>>, vector<64x128xf32>
    %cst_70 = arith.constant dense<0.000000e+00> : vector<16x128xf32>
    %203 = tpu.matmul %201, %202, %cst_70 {dimension_numbers = #tpu.dot_dimension_numbers<[1], [0], [0], [1], [0, 0, 1, 1], [], []>} : vector<16x64xf32>, vector<64x128xf32>, vector<16x128xf32> -> vector<16x128xf32>
    %c0_71 = arith.constant 0 : index
    %c0_72 = arith.constant 0 : index
    %204 = vector.load %arg9[%c0_71, %c0_72] : memref<1x128xf32, #tpu.memory_space<vmem>>, vector<1x128xf32>
    %205 = vector.broadcast %204 : vector<1x128xf32> to vector<16x128xf32>
    %206 = arith.addf %203, %205 : vector<16x128xf32>
    %207 = arith.addf %183, %206 : vector<16x128xf32>
    %cst_73 = arith.constant dense<0.000000e+00> : vector<16xf32>
    %208 = vector.multi_reduction <add>, %207, %cst_73 [1] : vector<16x128xf32> to vector<16xf32>
    %209 = vector.shape_cast %208 : vector<16xf32> to vector<16x1xf32>
    %cst_74 = arith.constant 1.280000e+02 : f32
    %210 = vector.broadcast %cst_74 : f32 to vector<16x1xf32>
    %211 = arith.divf %209, %210 : vector<16x1xf32>
    %212 = vector.broadcast %211 : vector<16x1xf32> to vector<16x128xf32>
    %213 = arith.subf %207, %212 : vector<16x128xf32>
    %214 = arith.mulf %213, %213 : vector<16x128xf32>
    %cst_75 = arith.constant dense<0.000000e+00> : vector<16xf32>
    %215 = vector.multi_reduction <add>, %214, %cst_75 [1] : vector<16x128xf32> to vector<16xf32>
    %216 = vector.shape_cast %215 : vector<16xf32> to vector<16x1xf32>
    %cst_76 = arith.constant 1.280000e+02 : f32
    %217 = vector.broadcast %cst_76 : f32 to vector<16x1xf32>
    %218 = arith.divf %216, %217 : vector<16x1xf32>
    %219 = vector.broadcast %211 : vector<16x1xf32> to vector<16x128xf32>
    %220 = arith.subf %207, %219 : vector<16x128xf32>
    %cst_77 = arith.constant 9.99999974E-6 : f32
    %221 = vector.broadcast %cst_77 : f32 to vector<16x1xf32>
    %222 = arith.addf %218, %221 : vector<16x1xf32>
    %223 = math.rsqrt %222 : vector<16x1xf32>
    %224 = vector.broadcast %223 : vector<16x1xf32> to vector<16x128xf32>
    %225 = arith.mulf %220, %224 : vector<16x128xf32>
    %c0_78 = arith.constant 0 : index
    %c0_79 = arith.constant 0 : index
    %226 = vector.load %arg12[%c0_78, %c0_79] : memref<1x128xf32, #tpu.memory_space<vmem>>, vector<1x128xf32>
    %227 = vector.broadcast %226 : vector<1x128xf32> to vector<16x128xf32>
    %228 = arith.mulf %225, %227 : vector<16x128xf32>
    %c0_80 = arith.constant 0 : index
    %c0_81 = arith.constant 0 : index
    %229 = vector.load %arg13[%c0_80, %c0_81] : memref<1x128xf32, #tpu.memory_space<vmem>>, vector<1x128xf32>
    %230 = vector.broadcast %229 : vector<1x128xf32> to vector<16x128xf32>
    %231 = arith.addf %228, %230 : vector<16x128xf32>
    %c0_82 = arith.constant 0 : index
    %c0_83 = arith.constant 0 : index
    %232 = vector.load %arg14[%c0_82, %c0_83] : memref<16x128xf32, #tpu.memory_space<vmem>>, vector<16x128xf32>
    tpu.vector_store %arg14[%c0_82, %c0_83], %231 {strides = array<i32>} : memref<16x128xf32, #tpu.memory_space<vmem>>, vector<16x128xf32>,
    return
  }
  func.func @transform_0(%arg0: i32) -> (i32, i32) {
    %c0_i32 = arith.constant 0 : i32
    %c0_i32_0 = arith.constant 0 : i32
    %c0_i32_1 = arith.constant 0 : i32
    return %c0_i32, %c0_i32_0 : i32, i32
  }
  func.func @transform_1(%arg0: i32) -> (i32, i32) {
    %c0_i32 = arith.constant 0 : i32
    %c0_i32_0 = arith.constant 0 : i32
    %c0_i32_1 = arith.constant 0 : i32
    return %c0_i32, %c0_i32_0 : i32, i32
  }
  func.func @transform_2(%arg0: i32) -> (i32, i32) {
    %c0_i32 = arith.constant 0 : i32
    %c0_i32_0 = arith.constant 0 : i32
    %c0_i32_1 = arith.constant 0 : i32
    return %c0_i32, %c0_i32_0 : i32, i32
  }
  func.func @transform_3(%arg0: i32) -> (i32, i32) {
    %c0_i32 = arith.constant 0 : i32
    %c0_i32_0 = arith.constant 0 : i32
    %c0_i32_1 = arith.constant 0 : i32
    return %c0_i32, %c0_i32_0 : i32, i32
  }
  func.func @transform_4(%arg0: i32) -> (i32, i32) {
    %c0_i32 = arith.constant 0 : i32
    %c0_i32_0 = arith.constant 0 : i32
    %c0_i32_1 = arith.constant 0 : i32
    return %c0_i32, %c0_i32_0 : i32, i32
  }
  func.func @transform_5(%arg0: i32) -> (i32, i32) {
    %c0_i32 = arith.constant 0 : i32
    %c0_i32_0 = arith.constant 0 : i32
    %c0_i32_1 = arith.constant 0 : i32
    return %c0_i32, %c0_i32_0 : i32, i32
  }
  func.func @transform_6(%arg0: i32) -> (i32, i32) {
    %c0_i32 = arith.constant 0 : i32
    %c0_i32_0 = arith.constant 0 : i32
    %c0_i32_1 = arith.constant 0 : i32
    return %c0_i32, %c0_i32_0 : i32, i32
  }
  func.func @transform_7(%arg0: i32) -> (i32, i32) {
    %c0_i32 = arith.constant 0 : i32
    %c0_i32_0 = arith.constant 0 : i32
    %c0_i32_1 = arith.constant 0 : i32
    return %c0_i32, %c0_i32_0 : i32, i32
  }
  func.func @transform_8(%arg0: i32) -> (i32, i32) {
    %c0_i32 = arith.constant 0 : i32
    %c0_i32_0 = arith.constant 0 : i32
    %c0_i32_1 = arith.constant 0 : i32
    return %c0_i32, %c0_i32_0 : i32, i32
  }
  func.func @transform_9(%arg0: i32) -> (i32, i32) {
    %c0_i32 = arith.constant 0 : i32
    %c0_i32_0 = arith.constant 0 : i32
    %c0_i32_1 = arith.constant 0 : i32
    return %c0_i32, %c0_i32_0 : i32, i32
  }
  func.func @transform_10(%arg0: i32) -> (i32, i32) {
    %c0_i32 = arith.constant 0 : i32
    %c0_i32_0 = arith.constant 0 : i32
    %c0_i32_1 = arith.constant 0 : i32
    return %c0_i32, %c0_i32_0 : i32, i32
  }
  func.func @transform_11(%arg0: i32) -> (i32, i32) {
    %c0_i32 = arith.constant 0 : i32
    %c0_i32_0 = arith.constant 0 : i32
    %c0_i32_1 = arith.constant 0 : i32
    return %c0_i32, %c0_i32_0 : i32, i32
  }
  func.func @transform_12(%arg0: i32) -> (i32, i32) {
    %c0_i32 = arith.constant 0 : i32
    %c0_i32_0 = arith.constant 0 : i32
    %c0_i32_1 = arith.constant 0 : i32
    return %c0_i32, %c0_i32_0 : i32, i32
  }
  func.func @transform_13(%arg0: i32) -> (i32, i32) {
    %c0_i32 = arith.constant 0 : i32
    %c0_i32_0 = arith.constant 0 : i32
    %c0_i32_1 = arith.constant 0 : i32
    return %c0_i32, %c0_i32_0 : i32, i32
  }
}

module attributes {stable_mosaic.version = 11 : i64} {
  func.func @_gate_kernel(%arg0: i32, %arg1: memref<16x32xf32, #tpu.memory_space<vmem>>, %arg2: memref<16x128xf32, #tpu.memory_space<vmem>>, %arg3: memref<64x32xf32, #tpu.memory_space<vmem>>, %arg4: memref<1x32xf32, #tpu.memory_space<vmem>>, %arg5: memref<1x32xf32, #tpu.memory_space<vmem>>, %arg6: memref<1x1xf32, #tpu.memory_space<vmem>>, %arg7: memref<16x32xf32, #tpu.memory_space<vmem>>, %arg8: memref<16x128xf32, #tpu.memory_space<vmem>>, %arg9: memref<16x1xf32, #tpu.memory_space<vmem>>, %arg10: memref<16x1xf32, #tpu.memory_space<vmem>>, %arg11: memref<16x1xf32, #tpu.memory_space<vmem>>) attributes {dimension_semantics = [#tpu.dimension_semantics<arbitrary>], iteration_bounds = array<i64: 1>, scalar_prefetch = 0 : i64, scratch_operands = 0 : i64, tpu.core_type = #tpu.core_type<tc>, window_params = [{pipeline_mode = #tpu.pipeline_mode<synchronous>, transform_indices = @transform_0, window_bounds = array<i64: 16, 32>}, {pipeline_mode = #tpu.pipeline_mode<synchronous>, transform_indices = @transform_1, window_bounds = array<i64: 16, 128>}, {pipeline_mode = #tpu.pipeline_mode<synchronous>, transform_indices = @transform_2, window_bounds = array<i64: 64, 32>}, {pipeline_mode = #tpu.pipeline_mode<synchronous>, transform_indices = @transform_3, window_bounds = array<i64: 1, 32>}, {pipeline_mode = #tpu.pipeline_mode<synchronous>, transform_indices = @transform_4, window_bounds = array<i64: 1, 32>}, {pipeline_mode = #tpu.pipeline_mode<synchronous>, transform_indices = @transform_5, window_bounds = array<i64: 1, 1>}, {pipeline_mode = #tpu.pipeline_mode<synchronous>, transform_indices = @transform_6, window_bounds = array<i64: 16, 32>}, {pipeline_mode = #tpu.pipeline_mode<synchronous>, transform_indices = @transform_7, window_bounds = array<i64: 16, 128>}, {pipeline_mode = #tpu.pipeline_mode<synchronous>, transform_indices = @transform_8, window_bounds = array<i64: 16, 1>}, {pipeline_mode = #tpu.pipeline_mode<synchronous>, transform_indices = @transform_9, window_bounds = array<i64: 16, 1>}, {pipeline_mode = #tpu.pipeline_mode<synchronous>, transform_indices = @transform_10, window_bounds = array<i64: 16, 1>}]} {
    %c0 = arith.constant 0 : index
    %c0_0 = arith.constant 0 : index
    %0 = vector.load %arg1[%c0, %c0_0] : memref<16x32xf32, #tpu.memory_space<vmem>>, vector<16x32xf32>
    %c0_1 = arith.constant 0 : index
    %c0_2 = arith.constant 0 : index
    %1 = vector.load %arg2[%c0_1, %c0_2] : memref<16x128xf32, #tpu.memory_space<vmem>>, vector<16x128xf32>
    %cst = arith.constant 0.000000e+00 : f32
    %2 = vector.broadcast %cst : f32 to vector<16x32xf32>
    %cst_3 = arith.constant 0.000000e+00 : f32
    %3 = vector.broadcast %cst_3 : f32 to vector<16x32xf32>
    %4 = vector.extract_strided_slice %1 {offsets = [0, 0], sizes = [16, 32], strides = [1, 1]} : vector<16x128xf32> to vector<16x32xf32>
    %5 = arith.addf %2, %4 : vector<16x32xf32>
    %6 = arith.mulf %4, %4 : vector<16x32xf32>
    %7 = arith.addf %3, %6 : vector<16x32xf32>
    %8 = vector.extract_strided_slice %1 {offsets = [0, 32], sizes = [16, 32], strides = [1, 1]} : vector<16x128xf32> to vector<16x32xf32>
    %9 = arith.addf %5, %8 : vector<16x32xf32>
    %10 = arith.mulf %8, %8 : vector<16x32xf32>
    %11 = arith.addf %7, %10 : vector<16x32xf32>
    %12 = vector.extract_strided_slice %1 {offsets = [0, 64], sizes = [16, 32], strides = [1, 1]} : vector<16x128xf32> to vector<16x32xf32>
    %13 = arith.addf %9, %12 : vector<16x32xf32>
    %14 = arith.mulf %12, %12 : vector<16x32xf32>
    %15 = arith.addf %11, %14 : vector<16x32xf32>
    %16 = vector.extract_strided_slice %1 {offsets = [0, 96], sizes = [16, 32], strides = [1, 1]} : vector<16x128xf32> to vector<16x32xf32>
    %17 = arith.addf %13, %16 : vector<16x32xf32>
    %18 = arith.mulf %16, %16 : vector<16x32xf32>
    %19 = arith.addf %15, %18 : vector<16x32xf32>
    %cst_4 = arith.constant 2.500000e-01 : f32
    %20 = vector.broadcast %cst_4 : f32 to vector<16x32xf32>
    %21 = arith.mulf %17, %20 : vector<16x32xf32>
    %cst_5 = arith.constant 2.500000e-01 : f32
    %22 = vector.broadcast %cst_5 : f32 to vector<16x32xf32>
    %23 = arith.mulf %19, %22 : vector<16x32xf32>
    %24 = arith.mulf %21, %21 : vector<16x32xf32>
    %25 = arith.subf %23, %24 : vector<16x32xf32>
    %cst_6 = arith.constant dense<0.000000e+00> : vector<16xf32>
    %26 = vector.multi_reduction <add>, %25, %cst_6 [1] : vector<16x32xf32> to vector<16xf32>
    %27 = vector.shape_cast %26 : vector<16xf32> to vector<16x1xf32>
    %cst_7 = arith.constant 3.200000e+01 : f32
    %28 = vector.broadcast %cst_7 : f32 to vector<16x1xf32>
    %29 = arith.divf %27, %28 : vector<16x1xf32>
    %30 = tpu.concatenate %0, %21 in 1 : vector<16x32xf32>, vector<16x32xf32> -> vector<16x64xf32>
    %c0_8 = arith.constant 0 : index
    %c0_9 = arith.constant 0 : index
    %31 = vector.load %arg3[%c0_8, %c0_9] : memref<64x32xf32, #tpu.memory_space<vmem>>, vector<64x32xf32>
    %cst_10 = arith.constant dense<0.000000e+00> : vector<16x32xf32>
    %32 = tpu.matmul %30, %31, %cst_10 {dimension_numbers = #tpu.dot_dimension_numbers<[1], [0], [0], [1], [0, 0, 1, 1], [], []>} : vector<16x64xf32>, vector<64x32xf32>, vector<16x32xf32> -> vector<16x32xf32>
    %c0_11 = arith.constant 0 : index
    %c0_12 = arith.constant 0 : index
    %33 = vector.load %arg4[%c0_11, %c0_12] : memref<1x32xf32, #tpu.memory_space<vmem>>, vector<1x32xf32>
    %34 = vector.broadcast %33 : vector<1x32xf32> to vector<16x32xf32>
    %35 = arith.addf %32, %34 : vector<16x32xf32>
    %36 = arith.mulf %35, %35 : vector<16x32xf32>
    %37 = arith.mulf %35, %36 : vector<16x32xf32>
    %cst_13 = arith.constant 4.471500e-02 : f32
    %38 = vector.broadcast %cst_13 : f32 to vector<16x32xf32>
    %39 = arith.mulf %38, %37 : vector<16x32xf32>
    %40 = arith.addf %35, %39 : vector<16x32xf32>
    %cst_14 = arith.constant 0.797884583 : f32
    %41 = vector.broadcast %cst_14 : f32 to vector<16x32xf32>
    %42 = arith.mulf %41, %40 : vector<16x32xf32>
    %43 = math.tanh %42 : vector<16x32xf32>
    %cst_15 = arith.constant 1.000000e+00 : f32
    %44 = vector.broadcast %cst_15 : f32 to vector<16x32xf32>
    %45 = arith.addf %44, %43 : vector<16x32xf32>
    %cst_16 = arith.constant 5.000000e-01 : f32
    %46 = vector.broadcast %cst_16 : f32 to vector<16x32xf32>
    %47 = arith.mulf %46, %45 : vector<16x32xf32>
    %48 = arith.mulf %35, %47 : vector<16x32xf32>
    %c0_17 = arith.constant 0 : index
    %c0_18 = arith.constant 0 : index
    %49 = vector.load %arg5[%c0_17, %c0_18] : memref<1x32xf32, #tpu.memory_space<vmem>>, vector<1x32xf32>
    %50 = vector.broadcast %49 : vector<1x32xf32> to vector<16x32xf32>
    %51 = arith.mulf %48, %50 : vector<16x32xf32>
    %cst_19 = arith.constant dense<0.000000e+00> : vector<16xf32>
    %52 = vector.multi_reduction <add>, %51, %cst_19 [1] : vector<16x32xf32> to vector<16xf32>
    %53 = vector.shape_cast %52 : vector<16xf32> to vector<16x1xf32>
    %c0_20 = arith.constant 0 : index
    %c0_21 = arith.constant 0 : index
    %54 = vector.load %arg6[%c0_20, %c0_21] : memref<1x1xf32, #tpu.memory_space<vmem>>, vector<1x1xf32>
    %55 = vector.broadcast %54 : vector<1x1xf32> to vector<16x1xf32>
    %56 = arith.addf %53, %55 : vector<16x1xf32>
    %57 = arith.negf %56 : vector<16x1xf32>
    %58 = math.exp %57 : vector<16x1xf32>
    %cst_22 = arith.constant 1.000000e+00 : f32
    %59 = vector.broadcast %cst_22 : f32 to vector<16x1xf32>
    %60 = arith.addf %59, %58 : vector<16x1xf32>
    %61 = arith.divf %59, %60 : vector<16x1xf32>
    %cst_23 = arith.constant 5.000000e-01 : f32
    %62 = vector.broadcast %cst_23 : f32 to vector<16x1xf32>
    %63 = arith.cmpf ogt, %61, %62 : vector<16x1xf32>
    %64 = arith.extui %63 : vector<16x1xi1> to vector<16x1xi32>
    %65 = arith.sitofp %64 : vector<16x1xi32> to vector<16x1xf32>
    %66 = vector.broadcast %61 : vector<16x1xf32> to vector<16x32xf32>
    %67 = arith.mulf %66, %0 : vector<16x32xf32>
    %cst_24 = arith.constant 1.000000e+00 : f32
    %68 = vector.broadcast %cst_24 : f32 to vector<16x1xf32>
    %69 = arith.subf %68, %61 : vector<16x1xf32>
    %70 = vector.broadcast %69 : vector<16x1xf32> to vector<16x32xf32>
    %71 = arith.mulf %70, %21 : vector<16x32xf32>
    %72 = arith.addf %67, %71 : vector<16x32xf32>
    %c0_25 = arith.constant 0 : index
    %c0_26 = arith.constant 0 : index
    %73 = vector.load %arg7[%c0_25, %c0_26] : memref<16x32xf32, #tpu.memory_space<vmem>>, vector<16x32xf32>
    tpu.vector_store %arg7[%c0_25, %c0_26], %72 {strides = array<i32>} : memref<16x32xf32, #tpu.memory_space<vmem>>, vector<16x32xf32>,
    %cst_27 = arith.constant 1.000000e+00 : f32
    %74 = vector.broadcast %cst_27 : f32 to vector<16x1xf32>
    %75 = arith.subf %74, %65 : vector<16x1xf32>
    %76 = vector.broadcast %75 : vector<16x1xf32> to vector<16x128xf32>
    %77 = arith.mulf %1, %76 : vector<16x128xf32>
    %c0_28 = arith.constant 0 : index
    %c0_29 = arith.constant 0 : index
    %78 = vector.load %arg8[%c0_28, %c0_29] : memref<16x128xf32, #tpu.memory_space<vmem>>, vector<16x128xf32>
    tpu.vector_store %arg8[%c0_28, %c0_29], %77 {strides = array<i32>} : memref<16x128xf32, #tpu.memory_space<vmem>>, vector<16x128xf32>,
    %c0_30 = arith.constant 0 : index
    %c0_31 = arith.constant 0 : index
    %79 = vector.load %arg9[%c0_30, %c0_31] : memref<16x1xf32, #tpu.memory_space<vmem>>, vector<16x1xf32>
    tpu.vector_store %arg9[%c0_30, %c0_31], %29 {strides = array<i32>} : memref<16x1xf32, #tpu.memory_space<vmem>>, vector<16x1xf32>,
    %c0_32 = arith.constant 0 : index
    %c0_33 = arith.constant 0 : index
    %80 = vector.load %arg10[%c0_32, %c0_33] : memref<16x1xf32, #tpu.memory_space<vmem>>, vector<16x1xf32>
    tpu.vector_store %arg10[%c0_32, %c0_33], %61 {strides = array<i32>} : memref<16x1xf32, #tpu.memory_space<vmem>>, vector<16x1xf32>,
    %c0_34 = arith.constant 0 : index
    %c0_35 = arith.constant 0 : index
    %81 = vector.load %arg11[%c0_34, %c0_35] : memref<16x1xf32, #tpu.memory_space<vmem>>, vector<16x1xf32>
    tpu.vector_store %arg11[%c0_34, %c0_35], %65 {strides = array<i32>} : memref<16x1xf32, #tpu.memory_space<vmem>>, vector<16x1xf32>,
    return
  }
  func.func @transform_0(%arg0: i32) -> (i32, i32) {
    %c0_i32 = arith.constant 0 : i32
    %c0_i32_0 = arith.constant 0 : i32
    %c0_i32_1 = arith.constant 0 : i32
    return %c0_i32, %c0_i32_0 : i32, i32
  }
  func.func @transform_1(%arg0: i32) -> (i32, i32) {
    %c0_i32 = arith.constant 0 : i32
    %c0_i32_0 = arith.constant 0 : i32
    %c0_i32_1 = arith.constant 0 : i32
    return %c0_i32, %c0_i32_0 : i32, i32
  }
  func.func @transform_2(%arg0: i32) -> (i32, i32) {
    %c0_i32 = arith.constant 0 : i32
    %c0_i32_0 = arith.constant 0 : i32
    %c0_i32_1 = arith.constant 0 : i32
    return %c0_i32, %c0_i32_0 : i32, i32
  }
  func.func @transform_3(%arg0: i32) -> (i32, i32) {
    %c0_i32 = arith.constant 0 : i32
    %c0_i32_0 = arith.constant 0 : i32
    %c0_i32_1 = arith.constant 0 : i32
    return %c0_i32, %c0_i32_0 : i32, i32
  }
  func.func @transform_4(%arg0: i32) -> (i32, i32) {
    %c0_i32 = arith.constant 0 : i32
    %c0_i32_0 = arith.constant 0 : i32
    %c0_i32_1 = arith.constant 0 : i32
    return %c0_i32, %c0_i32_0 : i32, i32
  }
  func.func @transform_5(%arg0: i32) -> (i32, i32) {
    %c0_i32 = arith.constant 0 : i32
    %c0_i32_0 = arith.constant 0 : i32
    %c0_i32_1 = arith.constant 0 : i32
    return %c0_i32, %c0_i32_0 : i32, i32
  }
  func.func @transform_6(%arg0: i32) -> (i32, i32) {
    %c0_i32 = arith.constant 0 : i32
    %c0_i32_0 = arith.constant 0 : i32
    %c0_i32_1 = arith.constant 0 : i32
    return %c0_i32, %c0_i32_0 : i32, i32
  }
  func.func @transform_7(%arg0: i32) -> (i32, i32) {
    %c0_i32 = arith.constant 0 : i32
    %c0_i32_0 = arith.constant 0 : i32
    %c0_i32_1 = arith.constant 0 : i32
    return %c0_i32, %c0_i32_0 : i32, i32
  }
  func.func @transform_8(%arg0: i32) -> (i32, i32) {
    %c0_i32 = arith.constant 0 : i32
    %c0_i32_0 = arith.constant 0 : i32
    %c0_i32_1 = arith.constant 0 : i32
    return %c0_i32, %c0_i32_0 : i32, i32
  }
  func.func @transform_9(%arg0: i32) -> (i32, i32) {
    %c0_i32 = arith.constant 0 : i32
    %c0_i32_0 = arith.constant 0 : i32
    %c0_i32_1 = arith.constant 0 : i32
    return %c0_i32, %c0_i32_0 : i32, i32
  }
  func.func @transform_10(%arg0: i32) -> (i32, i32) {
    %c0_i32 = arith.constant 0 : i32
    %c0_i32_0 = arith.constant 0 : i32
    %c0_i32_1 = arith.constant 0 : i32
    return %c0_i32, %c0_i32_0 : i32, i32
  }
}

module attributes {stable_mosaic.version = 11 : i64} {
  func.func @_branch_kernel(%arg0: i32, %arg1: memref<16x32xf32, #tpu.memory_space<vmem>>, %arg2: memref<32x96xf32, #tpu.memory_space<vmem>>, %arg3: memref<1x96xf32, #tpu.memory_space<vmem>>, %arg4: memref<32x32xf32, #tpu.memory_space<vmem>>, %arg5: memref<1x32xf32, #tpu.memory_space<vmem>>, %arg6: memref<32x64xf32, #tpu.memory_space<vmem>>, %arg7: memref<1x64xf32, #tpu.memory_space<vmem>>, %arg8: memref<64x32xf32, #tpu.memory_space<vmem>>, %arg9: memref<1x32xf32, #tpu.memory_space<vmem>>, %arg10: memref<1x32xf32, #tpu.memory_space<vmem>>, %arg11: memref<1x32xf32, #tpu.memory_space<vmem>>, %arg12: memref<1x32xf32, #tpu.memory_space<vmem>>, %arg13: memref<1x32xf32, #tpu.memory_space<vmem>>, %arg14: memref<16x32xf32, #tpu.memory_space<vmem>>) attributes {dimension_semantics = [#tpu.dimension_semantics<arbitrary>], iteration_bounds = array<i64: 1>, scalar_prefetch = 0 : i64, scratch_operands = 0 : i64, tpu.core_type = #tpu.core_type<tc>, window_params = [{pipeline_mode = #tpu.pipeline_mode<synchronous>, transform_indices = @transform_0, window_bounds = array<i64: 16, 32>}, {pipeline_mode = #tpu.pipeline_mode<synchronous>, transform_indices = @transform_1, window_bounds = array<i64: 32, 96>}, {pipeline_mode = #tpu.pipeline_mode<synchronous>, transform_indices = @transform_2, window_bounds = array<i64: 1, 96>}, {pipeline_mode = #tpu.pipeline_mode<synchronous>, transform_indices = @transform_3, window_bounds = array<i64: 32, 32>}, {pipeline_mode = #tpu.pipeline_mode<synchronous>, transform_indices = @transform_4, window_bounds = array<i64: 1, 32>}, {pipeline_mode = #tpu.pipeline_mode<synchronous>, transform_indices = @transform_5, window_bounds = array<i64: 32, 64>}, {pipeline_mode = #tpu.pipeline_mode<synchronous>, transform_indices = @transform_6, window_bounds = array<i64: 1, 64>}, {pipeline_mode = #tpu.pipeline_mode<synchronous>, transform_indices = @transform_7, window_bounds = array<i64: 64, 32>}, {pipeline_mode = #tpu.pipeline_mode<synchronous>, transform_indices = @transform_8, window_bounds = array<i64: 1, 32>}, {pipeline_mode = #tpu.pipeline_mode<synchronous>, transform_indices = @transform_9, window_bounds = array<i64: 1, 32>}, {pipeline_mode = #tpu.pipeline_mode<synchronous>, transform_indices = @transform_10, window_bounds = array<i64: 1, 32>}, {pipeline_mode = #tpu.pipeline_mode<synchronous>, transform_indices = @transform_11, window_bounds = array<i64: 1, 32>}, {pipeline_mode = #tpu.pipeline_mode<synchronous>, transform_indices = @transform_12, window_bounds = array<i64: 1, 32>}, {pipeline_mode = #tpu.pipeline_mode<synchronous>, transform_indices = @transform_13, window_bounds = array<i64: 16, 32>}]} {
    %c0 = arith.constant 0 : index
    %c0_0 = arith.constant 0 : index
    %0 = vector.load %arg1[%c0, %c0_0] : memref<16x32xf32, #tpu.memory_space<vmem>>, vector<16x32xf32>
    %c0_1 = arith.constant 0 : index
    %c0_2 = arith.constant 0 : index
    %1 = vector.load %arg2[%c0_1, %c0_2] : memref<32x96xf32, #tpu.memory_space<vmem>>, vector<32x96xf32>
    %cst = arith.constant dense<0.000000e+00> : vector<16x96xf32>
    %2 = tpu.matmul %0, %1, %cst {dimension_numbers = #tpu.dot_dimension_numbers<[1], [0], [0], [1], [0, 0, 1, 1], [], []>} : vector<16x32xf32>, vector<32x96xf32>, vector<16x96xf32> -> vector<16x96xf32>
    %c0_3 = arith.constant 0 : index
    %c0_4 = arith.constant 0 : index
    %3 = vector.load %arg3[%c0_3, %c0_4] : memref<1x96xf32, #tpu.memory_space<vmem>>, vector<1x96xf32>
    %4 = vector.broadcast %3 : vector<1x96xf32> to vector<16x96xf32>
    %5 = arith.addf %2, %4 : vector<16x96xf32>
    %6 = vector.extract_strided_slice %5 {offsets = [0, 0], sizes = [16, 32], strides = [1, 1]} : vector<16x96xf32> to vector<16x32xf32>
    %7 = vector.extract_strided_slice %5 {offsets = [0, 32], sizes = [16, 32], strides = [1, 1]} : vector<16x96xf32> to vector<16x32xf32>
    %8 = vector.extract_strided_slice %5 {offsets = [0, 64], sizes = [16, 32], strides = [1, 1]} : vector<16x96xf32> to vector<16x32xf32>
    %9 = vector.extract_strided_slice %6 {offsets = [0, 0], sizes = [8, 32], strides = [1, 1]} : vector<16x32xf32> to vector<8x32xf32>
    %10 = vector.extract_strided_slice %7 {offsets = [0, 0], sizes = [8, 32], strides = [1, 1]} : vector<16x32xf32> to vector<8x32xf32>
    %11 = vector.extract_strided_slice %8 {offsets = [0, 0], sizes = [8, 32], strides = [1, 1]} : vector<16x32xf32> to vector<8x32xf32>
    %12 = vector.extract_strided_slice %9 {offsets = [0, 0], sizes = [8, 8], strides = [1, 1]} : vector<8x32xf32> to vector<8x8xf32>
    %13 = vector.extract_strided_slice %10 {offsets = [0, 0], sizes = [8, 8], strides = [1, 1]} : vector<8x32xf32> to vector<8x8xf32>
    %14 = vector.extract_strided_slice %11 {offsets = [0, 0], sizes = [8, 8], strides = [1, 1]} : vector<8x32xf32> to vector<8x8xf32>
    %cst_5 = arith.constant dense<0.000000e+00> : vector<8x8xf32>
    %15 = tpu.matmul %12, %13, %cst_5 {dimension_numbers = #tpu.dot_dimension_numbers<[1], [1], [0], [0], [0, 0, 1, 0], [], []>} : vector<8x8xf32>, vector<8x8xf32>, vector<8x8xf32> -> vector<8x8xf32>
    %cst_6 = arith.constant 0.353553385 : f32
    %16 = vector.broadcast %cst_6 : f32 to vector<8x8xf32>
    %17 = arith.mulf %15, %16 : vector<8x8xf32>
    %cst_7 = arith.constant dense<0xFF800000> : vector<8xf32>
    %18 = vector.multi_reduction <maximumf>, %17, %cst_7 [1] : vector<8x8xf32> to vector<8xf32>
    %19 = vector.shape_cast %18 : vector<8xf32> to vector<8x1xf32>
    %20 = vector.broadcast %19 : vector<8x1xf32> to vector<8x8xf32>
    %21 = arith.subf %17, %20 : vector<8x8xf32>
    %22 = math.exp %21 : vector<8x8xf32>
    %cst_8 = arith.constant dense<0.000000e+00> : vector<8xf32>
    %23 = vector.multi_reduction <add>, %22, %cst_8 [1] : vector<8x8xf32> to vector<8xf32>
    %24 = vector.shape_cast %23 : vector<8xf32> to vector<8x1xf32>
    %25 = tpu.reciprocal %24 {approx = true} : vector<8x1xf32> -> vector<8x1xf32>
    %26 = vector.broadcast %25 : vector<8x1xf32> to vector<8x8xf32>
    %27 = arith.mulf %22, %26 : vector<8x8xf32>
    %cst_9 = arith.constant dense<0.000000e+00> : vector<8x8xf32>
    %28 = tpu.matmul %27, %14, %cst_9 {dimension_numbers = #tpu.dot_dimension_numbers<[1], [0], [0], [1], [0, 0, 1, 1], [], []>} : vector<8x8xf32>, vector<8x8xf32>, vector<8x8xf32> -> vector<8x8xf32>
    %29 = vector.extract_strided_slice %9 {offsets = [0, 8], sizes = [8, 8], strides = [1, 1]} : vector<8x32xf32> to vector<8x8xf32>
    %30 = vector.extract_strided_slice %10 {offsets = [0, 8], sizes = [8, 8], strides = [1, 1]} : vector<8x32xf32> to vector<8x8xf32>
    %31 = vector.extract_strided_slice %11 {offsets = [0, 8], sizes = [8, 8], strides = [1, 1]} : vector<8x32xf32> to vector<8x8xf32>
    %cst_10 = arith.constant dense<0.000000e+00> : vector<8x8xf32>
    %32 = tpu.matmul %29, %30, %cst_10 {dimension_numbers = #tpu.dot_dimension_numbers<[1], [1], [0], [0], [0, 0, 1, 0], [], []>} : vector<8x8xf32>, vector<8x8xf32>, vector<8x8xf32> -> vector<8x8xf32>
    %cst_11 = arith.constant 0.353553385 : f32
    %33 = vector.broadcast %cst_11 : f32 to vector<8x8xf32>
    %34 = arith.mulf %32, %33 : vector<8x8xf32>
    %cst_12 = arith.constant dense<0xFF800000> : vector<8xf32>
    %35 = vector.multi_reduction <maximumf>, %34, %cst_12 [1] : vector<8x8xf32> to vector<8xf32>
    %36 = vector.shape_cast %35 : vector<8xf32> to vector<8x1xf32>
    %37 = vector.broadcast %36 : vector<8x1xf32> to vector<8x8xf32>
    %38 = arith.subf %34, %37 : vector<8x8xf32>
    %39 = math.exp %38 : vector<8x8xf32>
    %cst_13 = arith.constant dense<0.000000e+00> : vector<8xf32>
    %40 = vector.multi_reduction <add>, %39, %cst_13 [1] : vector<8x8xf32> to vector<8xf32>
    %41 = vector.shape_cast %40 : vector<8xf32> to vector<8x1xf32>
    %42 = tpu.reciprocal %41 {approx = true} : vector<8x1xf32> -> vector<8x1xf32>
    %43 = vector.broadcast %42 : vector<8x1xf32> to vector<8x8xf32>
    %44 = arith.mulf %39, %43 : vector<8x8xf32>
    %cst_14 = arith.constant dense<0.000000e+00> : vector<8x8xf32>
    %45 = tpu.matmul %44, %31, %cst_14 {dimension_numbers = #tpu.dot_dimension_numbers<[1], [0], [0], [1], [0, 0, 1, 1], [], []>} : vector<8x8xf32>, vector<8x8xf32>, vector<8x8xf32> -> vector<8x8xf32>
    %46 = vector.extract_strided_slice %9 {offsets = [0, 16], sizes = [8, 8], strides = [1, 1]} : vector<8x32xf32> to vector<8x8xf32>
    %47 = vector.extract_strided_slice %10 {offsets = [0, 16], sizes = [8, 8], strides = [1, 1]} : vector<8x32xf32> to vector<8x8xf32>
    %48 = vector.extract_strided_slice %11 {offsets = [0, 16], sizes = [8, 8], strides = [1, 1]} : vector<8x32xf32> to vector<8x8xf32>
    %cst_15 = arith.constant dense<0.000000e+00> : vector<8x8xf32>
    %49 = tpu.matmul %46, %47, %cst_15 {dimension_numbers = #tpu.dot_dimension_numbers<[1], [1], [0], [0], [0, 0, 1, 0], [], []>} : vector<8x8xf32>, vector<8x8xf32>, vector<8x8xf32> -> vector<8x8xf32>
    %cst_16 = arith.constant 0.353553385 : f32
    %50 = vector.broadcast %cst_16 : f32 to vector<8x8xf32>
    %51 = arith.mulf %49, %50 : vector<8x8xf32>
    %cst_17 = arith.constant dense<0xFF800000> : vector<8xf32>
    %52 = vector.multi_reduction <maximumf>, %51, %cst_17 [1] : vector<8x8xf32> to vector<8xf32>
    %53 = vector.shape_cast %52 : vector<8xf32> to vector<8x1xf32>
    %54 = vector.broadcast %53 : vector<8x1xf32> to vector<8x8xf32>
    %55 = arith.subf %51, %54 : vector<8x8xf32>
    %56 = math.exp %55 : vector<8x8xf32>
    %cst_18 = arith.constant dense<0.000000e+00> : vector<8xf32>
    %57 = vector.multi_reduction <add>, %56, %cst_18 [1] : vector<8x8xf32> to vector<8xf32>
    %58 = vector.shape_cast %57 : vector<8xf32> to vector<8x1xf32>
    %59 = tpu.reciprocal %58 {approx = true} : vector<8x1xf32> -> vector<8x1xf32>
    %60 = vector.broadcast %59 : vector<8x1xf32> to vector<8x8xf32>
    %61 = arith.mulf %56, %60 : vector<8x8xf32>
    %cst_19 = arith.constant dense<0.000000e+00> : vector<8x8xf32>
    %62 = tpu.matmul %61, %48, %cst_19 {dimension_numbers = #tpu.dot_dimension_numbers<[1], [0], [0], [1], [0, 0, 1, 1], [], []>} : vector<8x8xf32>, vector<8x8xf32>, vector<8x8xf32> -> vector<8x8xf32>
    %63 = vector.extract_strided_slice %9 {offsets = [0, 24], sizes = [8, 8], strides = [1, 1]} : vector<8x32xf32> to vector<8x8xf32>
    %64 = vector.extract_strided_slice %10 {offsets = [0, 24], sizes = [8, 8], strides = [1, 1]} : vector<8x32xf32> to vector<8x8xf32>
    %65 = vector.extract_strided_slice %11 {offsets = [0, 24], sizes = [8, 8], strides = [1, 1]} : vector<8x32xf32> to vector<8x8xf32>
    %cst_20 = arith.constant dense<0.000000e+00> : vector<8x8xf32>
    %66 = tpu.matmul %63, %64, %cst_20 {dimension_numbers = #tpu.dot_dimension_numbers<[1], [1], [0], [0], [0, 0, 1, 0], [], []>} : vector<8x8xf32>, vector<8x8xf32>, vector<8x8xf32> -> vector<8x8xf32>
    %cst_21 = arith.constant 0.353553385 : f32
    %67 = vector.broadcast %cst_21 : f32 to vector<8x8xf32>
    %68 = arith.mulf %66, %67 : vector<8x8xf32>
    %cst_22 = arith.constant dense<0xFF800000> : vector<8xf32>
    %69 = vector.multi_reduction <maximumf>, %68, %cst_22 [1] : vector<8x8xf32> to vector<8xf32>
    %70 = vector.shape_cast %69 : vector<8xf32> to vector<8x1xf32>
    %71 = vector.broadcast %70 : vector<8x1xf32> to vector<8x8xf32>
    %72 = arith.subf %68, %71 : vector<8x8xf32>
    %73 = math.exp %72 : vector<8x8xf32>
    %cst_23 = arith.constant dense<0.000000e+00> : vector<8xf32>
    %74 = vector.multi_reduction <add>, %73, %cst_23 [1] : vector<8x8xf32> to vector<8xf32>
    %75 = vector.shape_cast %74 : vector<8xf32> to vector<8x1xf32>
    %76 = tpu.reciprocal %75 {approx = true} : vector<8x1xf32> -> vector<8x1xf32>
    %77 = vector.broadcast %76 : vector<8x1xf32> to vector<8x8xf32>
    %78 = arith.mulf %73, %77 : vector<8x8xf32>
    %cst_24 = arith.constant dense<0.000000e+00> : vector<8x8xf32>
    %79 = tpu.matmul %78, %65, %cst_24 {dimension_numbers = #tpu.dot_dimension_numbers<[1], [0], [0], [1], [0, 0, 1, 1], [], []>} : vector<8x8xf32>, vector<8x8xf32>, vector<8x8xf32> -> vector<8x8xf32>
    %80 = tpu.concatenate %28, %45, %62, %79 in 1 : vector<8x8xf32>, vector<8x8xf32>, vector<8x8xf32>, vector<8x8xf32> -> vector<8x32xf32>
    %81 = vector.extract_strided_slice %6 {offsets = [8, 0], sizes = [8, 32], strides = [1, 1]} : vector<16x32xf32> to vector<8x32xf32>
    %82 = vector.extract_strided_slice %7 {offsets = [8, 0], sizes = [8, 32], strides = [1, 1]} : vector<16x32xf32> to vector<8x32xf32>
    %83 = vector.extract_strided_slice %8 {offsets = [8, 0], sizes = [8, 32], strides = [1, 1]} : vector<16x32xf32> to vector<8x32xf32>
    %84 = vector.extract_strided_slice %81 {offsets = [0, 0], sizes = [8, 8], strides = [1, 1]} : vector<8x32xf32> to vector<8x8xf32>
    %85 = vector.extract_strided_slice %82 {offsets = [0, 0], sizes = [8, 8], strides = [1, 1]} : vector<8x32xf32> to vector<8x8xf32>
    %86 = vector.extract_strided_slice %83 {offsets = [0, 0], sizes = [8, 8], strides = [1, 1]} : vector<8x32xf32> to vector<8x8xf32>
    %cst_25 = arith.constant dense<0.000000e+00> : vector<8x8xf32>
    %87 = tpu.matmul %84, %85, %cst_25 {dimension_numbers = #tpu.dot_dimension_numbers<[1], [1], [0], [0], [0, 0, 1, 0], [], []>} : vector<8x8xf32>, vector<8x8xf32>, vector<8x8xf32> -> vector<8x8xf32>
    %cst_26 = arith.constant 0.353553385 : f32
    %88 = vector.broadcast %cst_26 : f32 to vector<8x8xf32>
    %89 = arith.mulf %87, %88 : vector<8x8xf32>
    %cst_27 = arith.constant dense<0xFF800000> : vector<8xf32>
    %90 = vector.multi_reduction <maximumf>, %89, %cst_27 [1] : vector<8x8xf32> to vector<8xf32>
    %91 = vector.shape_cast %90 : vector<8xf32> to vector<8x1xf32>
    %92 = vector.broadcast %91 : vector<8x1xf32> to vector<8x8xf32>
    %93 = arith.subf %89, %92 : vector<8x8xf32>
    %94 = math.exp %93 : vector<8x8xf32>
    %cst_28 = arith.constant dense<0.000000e+00> : vector<8xf32>
    %95 = vector.multi_reduction <add>, %94, %cst_28 [1] : vector<8x8xf32> to vector<8xf32>
    %96 = vector.shape_cast %95 : vector<8xf32> to vector<8x1xf32>
    %97 = tpu.reciprocal %96 {approx = true} : vector<8x1xf32> -> vector<8x1xf32>
    %98 = vector.broadcast %97 : vector<8x1xf32> to vector<8x8xf32>
    %99 = arith.mulf %94, %98 : vector<8x8xf32>
    %cst_29 = arith.constant dense<0.000000e+00> : vector<8x8xf32>
    %100 = tpu.matmul %99, %86, %cst_29 {dimension_numbers = #tpu.dot_dimension_numbers<[1], [0], [0], [1], [0, 0, 1, 1], [], []>} : vector<8x8xf32>, vector<8x8xf32>, vector<8x8xf32> -> vector<8x8xf32>
    %101 = vector.extract_strided_slice %81 {offsets = [0, 8], sizes = [8, 8], strides = [1, 1]} : vector<8x32xf32> to vector<8x8xf32>
    %102 = vector.extract_strided_slice %82 {offsets = [0, 8], sizes = [8, 8], strides = [1, 1]} : vector<8x32xf32> to vector<8x8xf32>
    %103 = vector.extract_strided_slice %83 {offsets = [0, 8], sizes = [8, 8], strides = [1, 1]} : vector<8x32xf32> to vector<8x8xf32>
    %cst_30 = arith.constant dense<0.000000e+00> : vector<8x8xf32>
    %104 = tpu.matmul %101, %102, %cst_30 {dimension_numbers = #tpu.dot_dimension_numbers<[1], [1], [0], [0], [0, 0, 1, 0], [], []>} : vector<8x8xf32>, vector<8x8xf32>, vector<8x8xf32> -> vector<8x8xf32>
    %cst_31 = arith.constant 0.353553385 : f32
    %105 = vector.broadcast %cst_31 : f32 to vector<8x8xf32>
    %106 = arith.mulf %104, %105 : vector<8x8xf32>
    %cst_32 = arith.constant dense<0xFF800000> : vector<8xf32>
    %107 = vector.multi_reduction <maximumf>, %106, %cst_32 [1] : vector<8x8xf32> to vector<8xf32>
    %108 = vector.shape_cast %107 : vector<8xf32> to vector<8x1xf32>
    %109 = vector.broadcast %108 : vector<8x1xf32> to vector<8x8xf32>
    %110 = arith.subf %106, %109 : vector<8x8xf32>
    %111 = math.exp %110 : vector<8x8xf32>
    %cst_33 = arith.constant dense<0.000000e+00> : vector<8xf32>
    %112 = vector.multi_reduction <add>, %111, %cst_33 [1] : vector<8x8xf32> to vector<8xf32>
    %113 = vector.shape_cast %112 : vector<8xf32> to vector<8x1xf32>
    %114 = tpu.reciprocal %113 {approx = true} : vector<8x1xf32> -> vector<8x1xf32>
    %115 = vector.broadcast %114 : vector<8x1xf32> to vector<8x8xf32>
    %116 = arith.mulf %111, %115 : vector<8x8xf32>
    %cst_34 = arith.constant dense<0.000000e+00> : vector<8x8xf32>
    %117 = tpu.matmul %116, %103, %cst_34 {dimension_numbers = #tpu.dot_dimension_numbers<[1], [0], [0], [1], [0, 0, 1, 1], [], []>} : vector<8x8xf32>, vector<8x8xf32>, vector<8x8xf32> -> vector<8x8xf32>
    %118 = vector.extract_strided_slice %81 {offsets = [0, 16], sizes = [8, 8], strides = [1, 1]} : vector<8x32xf32> to vector<8x8xf32>
    %119 = vector.extract_strided_slice %82 {offsets = [0, 16], sizes = [8, 8], strides = [1, 1]} : vector<8x32xf32> to vector<8x8xf32>
    %120 = vector.extract_strided_slice %83 {offsets = [0, 16], sizes = [8, 8], strides = [1, 1]} : vector<8x32xf32> to vector<8x8xf32>
    %cst_35 = arith.constant dense<0.000000e+00> : vector<8x8xf32>
    %121 = tpu.matmul %118, %119, %cst_35 {dimension_numbers = #tpu.dot_dimension_numbers<[1], [1], [0], [0], [0, 0, 1, 0], [], []>} : vector<8x8xf32>, vector<8x8xf32>, vector<8x8xf32> -> vector<8x8xf32>
    %cst_36 = arith.constant 0.353553385 : f32
    %122 = vector.broadcast %cst_36 : f32 to vector<8x8xf32>
    %123 = arith.mulf %121, %122 : vector<8x8xf32>
    %cst_37 = arith.constant dense<0xFF800000> : vector<8xf32>
    %124 = vector.multi_reduction <maximumf>, %123, %cst_37 [1] : vector<8x8xf32> to vector<8xf32>
    %125 = vector.shape_cast %124 : vector<8xf32> to vector<8x1xf32>
    %126 = vector.broadcast %125 : vector<8x1xf32> to vector<8x8xf32>
    %127 = arith.subf %123, %126 : vector<8x8xf32>
    %128 = math.exp %127 : vector<8x8xf32>
    %cst_38 = arith.constant dense<0.000000e+00> : vector<8xf32>
    %129 = vector.multi_reduction <add>, %128, %cst_38 [1] : vector<8x8xf32> to vector<8xf32>
    %130 = vector.shape_cast %129 : vector<8xf32> to vector<8x1xf32>
    %131 = tpu.reciprocal %130 {approx = true} : vector<8x1xf32> -> vector<8x1xf32>
    %132 = vector.broadcast %131 : vector<8x1xf32> to vector<8x8xf32>
    %133 = arith.mulf %128, %132 : vector<8x8xf32>
    %cst_39 = arith.constant dense<0.000000e+00> : vector<8x8xf32>
    %134 = tpu.matmul %133, %120, %cst_39 {dimension_numbers = #tpu.dot_dimension_numbers<[1], [0], [0], [1], [0, 0, 1, 1], [], []>} : vector<8x8xf32>, vector<8x8xf32>, vector<8x8xf32> -> vector<8x8xf32>
    %135 = vector.extract_strided_slice %81 {offsets = [0, 24], sizes = [8, 8], strides = [1, 1]} : vector<8x32xf32> to vector<8x8xf32>
    %136 = vector.extract_strided_slice %82 {offsets = [0, 24], sizes = [8, 8], strides = [1, 1]} : vector<8x32xf32> to vector<8x8xf32>
    %137 = vector.extract_strided_slice %83 {offsets = [0, 24], sizes = [8, 8], strides = [1, 1]} : vector<8x32xf32> to vector<8x8xf32>
    %cst_40 = arith.constant dense<0.000000e+00> : vector<8x8xf32>
    %138 = tpu.matmul %135, %136, %cst_40 {dimension_numbers = #tpu.dot_dimension_numbers<[1], [1], [0], [0], [0, 0, 1, 0], [], []>} : vector<8x8xf32>, vector<8x8xf32>, vector<8x8xf32> -> vector<8x8xf32>
    %cst_41 = arith.constant 0.353553385 : f32
    %139 = vector.broadcast %cst_41 : f32 to vector<8x8xf32>
    %140 = arith.mulf %138, %139 : vector<8x8xf32>
    %cst_42 = arith.constant dense<0xFF800000> : vector<8xf32>
    %141 = vector.multi_reduction <maximumf>, %140, %cst_42 [1] : vector<8x8xf32> to vector<8xf32>
    %142 = vector.shape_cast %141 : vector<8xf32> to vector<8x1xf32>
    %143 = vector.broadcast %142 : vector<8x1xf32> to vector<8x8xf32>
    %144 = arith.subf %140, %143 : vector<8x8xf32>
    %145 = math.exp %144 : vector<8x8xf32>
    %cst_43 = arith.constant dense<0.000000e+00> : vector<8xf32>
    %146 = vector.multi_reduction <add>, %145, %cst_43 [1] : vector<8x8xf32> to vector<8xf32>
    %147 = vector.shape_cast %146 : vector<8xf32> to vector<8x1xf32>
    %148 = tpu.reciprocal %147 {approx = true} : vector<8x1xf32> -> vector<8x1xf32>
    %149 = vector.broadcast %148 : vector<8x1xf32> to vector<8x8xf32>
    %150 = arith.mulf %145, %149 : vector<8x8xf32>
    %cst_44 = arith.constant dense<0.000000e+00> : vector<8x8xf32>
    %151 = tpu.matmul %150, %137, %cst_44 {dimension_numbers = #tpu.dot_dimension_numbers<[1], [0], [0], [1], [0, 0, 1, 1], [], []>} : vector<8x8xf32>, vector<8x8xf32>, vector<8x8xf32> -> vector<8x8xf32>
    %152 = tpu.concatenate %100, %117, %134, %151 in 1 : vector<8x8xf32>, vector<8x8xf32>, vector<8x8xf32>, vector<8x8xf32> -> vector<8x32xf32>
    %153 = tpu.concatenate %80, %152 in 0 : vector<8x32xf32>, vector<8x32xf32> -> vector<16x32xf32>
    %c0_45 = arith.constant 0 : index
    %c0_46 = arith.constant 0 : index
    %154 = vector.load %arg4[%c0_45, %c0_46] : memref<32x32xf32, #tpu.memory_space<vmem>>, vector<32x32xf32>
    %cst_47 = arith.constant dense<0.000000e+00> : vector<16x32xf32>
    %155 = tpu.matmul %153, %154, %cst_47 {dimension_numbers = #tpu.dot_dimension_numbers<[1], [0], [0], [1], [0, 0, 1, 1], [], []>} : vector<16x32xf32>, vector<32x32xf32>, vector<16x32xf32> -> vector<16x32xf32>
    %c0_48 = arith.constant 0 : index
    %c0_49 = arith.constant 0 : index
    %156 = vector.load %arg5[%c0_48, %c0_49] : memref<1x32xf32, #tpu.memory_space<vmem>>, vector<1x32xf32>
    %157 = vector.broadcast %156 : vector<1x32xf32> to vector<16x32xf32>
    %158 = arith.addf %155, %157 : vector<16x32xf32>
    %159 = arith.addf %0, %158 : vector<16x32xf32>
    %cst_50 = arith.constant dense<0.000000e+00> : vector<16xf32>
    %160 = vector.multi_reduction <add>, %159, %cst_50 [1] : vector<16x32xf32> to vector<16xf32>
    %161 = vector.shape_cast %160 : vector<16xf32> to vector<16x1xf32>
    %cst_51 = arith.constant 3.200000e+01 : f32
    %162 = vector.broadcast %cst_51 : f32 to vector<16x1xf32>
    %163 = arith.divf %161, %162 : vector<16x1xf32>
    %164 = vector.broadcast %163 : vector<16x1xf32> to vector<16x32xf32>
    %165 = arith.subf %159, %164 : vector<16x32xf32>
    %166 = arith.mulf %165, %165 : vector<16x32xf32>
    %cst_52 = arith.constant dense<0.000000e+00> : vector<16xf32>
    %167 = vector.multi_reduction <add>, %166, %cst_52 [1] : vector<16x32xf32> to vector<16xf32>
    %168 = vector.shape_cast %167 : vector<16xf32> to vector<16x1xf32>
    %cst_53 = arith.constant 3.200000e+01 : f32
    %169 = vector.broadcast %cst_53 : f32 to vector<16x1xf32>
    %170 = arith.divf %168, %169 : vector<16x1xf32>
    %171 = vector.broadcast %163 : vector<16x1xf32> to vector<16x32xf32>
    %172 = arith.subf %159, %171 : vector<16x32xf32>
    %cst_54 = arith.constant 9.99999974E-6 : f32
    %173 = vector.broadcast %cst_54 : f32 to vector<16x1xf32>
    %174 = arith.addf %170, %173 : vector<16x1xf32>
    %175 = math.rsqrt %174 : vector<16x1xf32>
    %176 = vector.broadcast %175 : vector<16x1xf32> to vector<16x32xf32>
    %177 = arith.mulf %172, %176 : vector<16x32xf32>
    %c0_55 = arith.constant 0 : index
    %c0_56 = arith.constant 0 : index
    %178 = vector.load %arg10[%c0_55, %c0_56] : memref<1x32xf32, #tpu.memory_space<vmem>>, vector<1x32xf32>
    %179 = vector.broadcast %178 : vector<1x32xf32> to vector<16x32xf32>
    %180 = arith.mulf %177, %179 : vector<16x32xf32>
    %c0_57 = arith.constant 0 : index
    %c0_58 = arith.constant 0 : index
    %181 = vector.load %arg11[%c0_57, %c0_58] : memref<1x32xf32, #tpu.memory_space<vmem>>, vector<1x32xf32>
    %182 = vector.broadcast %181 : vector<1x32xf32> to vector<16x32xf32>
    %183 = arith.addf %180, %182 : vector<16x32xf32>
    %c0_59 = arith.constant 0 : index
    %c0_60 = arith.constant 0 : index
    %184 = vector.load %arg6[%c0_59, %c0_60] : memref<32x64xf32, #tpu.memory_space<vmem>>, vector<32x64xf32>
    %cst_61 = arith.constant dense<0.000000e+00> : vector<16x64xf32>
    %185 = tpu.matmul %183, %184, %cst_61 {dimension_numbers = #tpu.dot_dimension_numbers<[1], [0], [0], [1], [0, 0, 1, 1], [], []>} : vector<16x32xf32>, vector<32x64xf32>, vector<16x64xf32> -> vector<16x64xf32>
    %c0_62 = arith.constant 0 : index
    %c0_63 = arith.constant 0 : index
    %186 = vector.load %arg7[%c0_62, %c0_63] : memref<1x64xf32, #tpu.memory_space<vmem>>, vector<1x64xf32>
    %187 = vector.broadcast %186 : vector<1x64xf32> to vector<16x64xf32>
    %188 = arith.addf %185, %187 : vector<16x64xf32>
    %189 = arith.mulf %188, %188 : vector<16x64xf32>
    %190 = arith.mulf %188, %189 : vector<16x64xf32>
    %cst_64 = arith.constant 4.471500e-02 : f32
    %191 = vector.broadcast %cst_64 : f32 to vector<16x64xf32>
    %192 = arith.mulf %191, %190 : vector<16x64xf32>
    %193 = arith.addf %188, %192 : vector<16x64xf32>
    %cst_65 = arith.constant 0.797884583 : f32
    %194 = vector.broadcast %cst_65 : f32 to vector<16x64xf32>
    %195 = arith.mulf %194, %193 : vector<16x64xf32>
    %196 = math.tanh %195 : vector<16x64xf32>
    %cst_66 = arith.constant 1.000000e+00 : f32
    %197 = vector.broadcast %cst_66 : f32 to vector<16x64xf32>
    %198 = arith.addf %197, %196 : vector<16x64xf32>
    %cst_67 = arith.constant 5.000000e-01 : f32
    %199 = vector.broadcast %cst_67 : f32 to vector<16x64xf32>
    %200 = arith.mulf %199, %198 : vector<16x64xf32>
    %201 = arith.mulf %188, %200 : vector<16x64xf32>
    %c0_68 = arith.constant 0 : index
    %c0_69 = arith.constant 0 : index
    %202 = vector.load %arg8[%c0_68, %c0_69] : memref<64x32xf32, #tpu.memory_space<vmem>>, vector<64x32xf32>
    %cst_70 = arith.constant dense<0.000000e+00> : vector<16x32xf32>
    %203 = tpu.matmul %201, %202, %cst_70 {dimension_numbers = #tpu.dot_dimension_numbers<[1], [0], [0], [1], [0, 0, 1, 1], [], []>} : vector<16x64xf32>, vector<64x32xf32>, vector<16x32xf32> -> vector<16x32xf32>
    %c0_71 = arith.constant 0 : index
    %c0_72 = arith.constant 0 : index
    %204 = vector.load %arg9[%c0_71, %c0_72] : memref<1x32xf32, #tpu.memory_space<vmem>>, vector<1x32xf32>
    %205 = vector.broadcast %204 : vector<1x32xf32> to vector<16x32xf32>
    %206 = arith.addf %203, %205 : vector<16x32xf32>
    %207 = arith.addf %183, %206 : vector<16x32xf32>
    %cst_73 = arith.constant dense<0.000000e+00> : vector<16xf32>
    %208 = vector.multi_reduction <add>, %207, %cst_73 [1] : vector<16x32xf32> to vector<16xf32>
    %209 = vector.shape_cast %208 : vector<16xf32> to vector<16x1xf32>
    %cst_74 = arith.constant 3.200000e+01 : f32
    %210 = vector.broadcast %cst_74 : f32 to vector<16x1xf32>
    %211 = arith.divf %209, %210 : vector<16x1xf32>
    %212 = vector.broadcast %211 : vector<16x1xf32> to vector<16x32xf32>
    %213 = arith.subf %207, %212 : vector<16x32xf32>
    %214 = arith.mulf %213, %213 : vector<16x32xf32>
    %cst_75 = arith.constant dense<0.000000e+00> : vector<16xf32>
    %215 = vector.multi_reduction <add>, %214, %cst_75 [1] : vector<16x32xf32> to vector<16xf32>
    %216 = vector.shape_cast %215 : vector<16xf32> to vector<16x1xf32>
    %cst_76 = arith.constant 3.200000e+01 : f32
    %217 = vector.broadcast %cst_76 : f32 to vector<16x1xf32>
    %218 = arith.divf %216, %217 : vector<16x1xf32>
    %219 = vector.broadcast %211 : vector<16x1xf32> to vector<16x32xf32>
    %220 = arith.subf %207, %219 : vector<16x32xf32>
    %cst_77 = arith.constant 9.99999974E-6 : f32
    %221 = vector.broadcast %cst_77 : f32 to vector<16x1xf32>
    %222 = arith.addf %218, %221 : vector<16x1xf32>
    %223 = math.rsqrt %222 : vector<16x1xf32>
    %224 = vector.broadcast %223 : vector<16x1xf32> to vector<16x32xf32>
    %225 = arith.mulf %220, %224 : vector<16x32xf32>
    %c0_78 = arith.constant 0 : index
    %c0_79 = arith.constant 0 : index
    %226 = vector.load %arg12[%c0_78, %c0_79] : memref<1x32xf32, #tpu.memory_space<vmem>>, vector<1x32xf32>
    %227 = vector.broadcast %226 : vector<1x32xf32> to vector<16x32xf32>
    %228 = arith.mulf %225, %227 : vector<16x32xf32>
    %c0_80 = arith.constant 0 : index
    %c0_81 = arith.constant 0 : index
    %229 = vector.load %arg13[%c0_80, %c0_81] : memref<1x32xf32, #tpu.memory_space<vmem>>, vector<1x32xf32>
    %230 = vector.broadcast %229 : vector<1x32xf32> to vector<16x32xf32>
    %231 = arith.addf %228, %230 : vector<16x32xf32>
    %c0_82 = arith.constant 0 : index
    %c0_83 = arith.constant 0 : index
    %232 = vector.load %arg14[%c0_82, %c0_83] : memref<16x32xf32, #tpu.memory_space<vmem>>, vector<16x32xf32>
    tpu.vector_store %arg14[%c0_82, %c0_83], %231 {strides = array<i32>} : memref<16x32xf32, #tpu.memory_space<vmem>>, vector<16x32xf32>,
    return
  }
  func.func @transform_0(%arg0: i32) -> (i32, i32) {
    %c0_i32 = arith.constant 0 : i32
    %c0_i32_0 = arith.constant 0 : i32
    %c0_i32_1 = arith.constant 0 : i32
    return %c0_i32, %c0_i32_0 : i32, i32
  }
  func.func @transform_1(%arg0: i32) -> (i32, i32) {
    %c0_i32 = arith.constant 0 : i32
    %c0_i32_0 = arith.constant 0 : i32
    %c0_i32_1 = arith.constant 0 : i32
    return %c0_i32, %c0_i32_0 : i32, i32
  }
  func.func @transform_2(%arg0: i32) -> (i32, i32) {
    %c0_i32 = arith.constant 0 : i32
    %c0_i32_0 = arith.constant 0 : i32
    %c0_i32_1 = arith.constant 0 : i32
    return %c0_i32, %c0_i32_0 : i32, i32
  }
  func.func @transform_3(%arg0: i32) -> (i32, i32) {
    %c0_i32 = arith.constant 0 : i32
    %c0_i32_0 = arith.constant 0 : i32
    %c0_i32_1 = arith.constant 0 : i32
    return %c0_i32, %c0_i32_0 : i32, i32
  }
  func.func @transform_4(%arg0: i32) -> (i32, i32) {
    %c0_i32 = arith.constant 0 : i32
    %c0_i32_0 = arith.constant 0 : i32
    %c0_i32_1 = arith.constant 0 : i32
    return %c0_i32, %c0_i32_0 : i32, i32
  }
  func.func @transform_5(%arg0: i32) -> (i32, i32) {
    %c0_i32 = arith.constant 0 : i32
    %c0_i32_0 = arith.constant 0 : i32
    %c0_i32_1 = arith.constant 0 : i32
    return %c0_i32, %c0_i32_0 : i32, i32
  }
  func.func @transform_6(%arg0: i32) -> (i32, i32) {
    %c0_i32 = arith.constant 0 : i32
    %c0_i32_0 = arith.constant 0 : i32
    %c0_i32_1 = arith.constant 0 : i32
    return %c0_i32, %c0_i32_0 : i32, i32
  }
  func.func @transform_7(%arg0: i32) -> (i32, i32) {
    %c0_i32 = arith.constant 0 : i32
    %c0_i32_0 = arith.constant 0 : i32
    %c0_i32_1 = arith.constant 0 : i32
    return %c0_i32, %c0_i32_0 : i32, i32
  }
  func.func @transform_8(%arg0: i32) -> (i32, i32) {
    %c0_i32 = arith.constant 0 : i32
    %c0_i32_0 = arith.constant 0 : i32
    %c0_i32_1 = arith.constant 0 : i32
    return %c0_i32, %c0_i32_0 : i32, i32
  }
  func.func @transform_9(%arg0: i32) -> (i32, i32) {
    %c0_i32 = arith.constant 0 : i32
    %c0_i32_0 = arith.constant 0 : i32
    %c0_i32_1 = arith.constant 0 : i32
    return %c0_i32, %c0_i32_0 : i32, i32
  }
  func.func @transform_10(%arg0: i32) -> (i32, i32) {
    %c0_i32 = arith.constant 0 : i32
    %c0_i32_0 = arith.constant 0 : i32
    %c0_i32_1 = arith.constant 0 : i32
    return %c0_i32, %c0_i32_0 : i32, i32
  }
  func.func @transform_11(%arg0: i32) -> (i32, i32) {
    %c0_i32 = arith.constant 0 : i32
    %c0_i32_0 = arith.constant 0 : i32
    %c0_i32_1 = arith.constant 0 : i32
    return %c0_i32, %c0_i32_0 : i32, i32
  }
  func.func @transform_12(%arg0: i32) -> (i32, i32) {
    %c0_i32 = arith.constant 0 : i32
    %c0_i32_0 = arith.constant 0 : i32
    %c0_i32_1 = arith.constant 0 : i32
    return %c0_i32, %c0_i32_0 : i32, i32
  }
  func.func @transform_13(%arg0: i32) -> (i32, i32) {
    %c0_i32 = arith.constant 0 : i32
    %c0_i32_0 = arith.constant 0 : i32
    %c0_i32_1 = arith.constant 0 : i32
    return %c0_i32, %c0_i32_0 : i32, i32
  }
}

</mosaic_0001>

<bundles_post_ra>
// kernel: integrated_transformer_layer.5
= control target key start
LH: loop header
LB: loop body
LE: loop exit
PB: predicated region body
PF: predicated region fallthrough
CT: control target
= control target key end

     0   :  { %s680_s0 = inlined_call_operand.vmem [shape: f32[16,32], index: 0, kind: input, shape index: {}]   ;;  %s681_s1 = inlined_call_operand.vmem [shape: f32[16,128], index: 1, kind: input, shape index: {}]   ;;  %s682_s2 = inlined_call_operand.vmem [shape: f32[64,32], index: 2, kind: input, shape index: {}]   ;;  %s683_s3 = inlined_call_operand.vmem [shape: f32[1,32], index: 3, kind: input, shape index: {}]   ;;  %s684_s4 = inlined_call_operand.vmem [shape: f32[1,32], index: 4, kind: input, shape index: {}]   ;;  %s685_s5 = inlined_call_operand.<no memory space> [shape: f32[1,1], index: 5, kind: input, shape index: {}]   ;;  %s686_s6 = inlined_call_operand.hbm [shape: f32[16,32], index: 6, kind: output, shape index: {0}]   ;;  %s687_s7 = inlined_call_operand.hbm [shape: f32[16,128], index: 7, kind: output, shape index: {1}]   ;;  %s688_s8 = inlined_call_operand.vmem [shape: f32[16,1], index: 8, kind: output, shape index: {2}]   ;;  %s689_s9 = inlined_call_operand.vmem [shape: f32[16,1], index: 9, kind: output, shape index: {3}]   ;;  %s690_s10 = inlined_call_operand.vmem [shape: f32[16,1], index: 10, kind: output, shape index: {4}]  }
   0x1   :  { %v16_v0 = vstv %s685_s5 }
   0x2   :  { %17 = vst [vmem:[#allocation2] sm:$0x1] %v16_v0 }
   0x3   :  { %18 = vsyncpa [#allocation4], 0  ;;  %v551_v1 = vld [vmem:[%s681_s1] sm:$0xff]  ;;  %v129_v2 = vld [vmem:[%s682_s2 + $0x38] sm:$0xff]  ;;  %s481_s19 = smov 64   ;;  %s482_s20 = smov 96  }
   0x4   :  { %62 = vrot.lane.b32.xlu1 %v551_v1, %s481_s19  ;;  %44 = vrot.lane.b32.xlu0 %v551_v1, %s482_s20  ;;  %v128_v3 = vld [vmem:[%s682_s2 + $0x30] sm:$0xff]  ;;  %v566_v4 = vld [vmem:[%s681_s1 + $0x8] sm:$0xff] }
   0x5   :  { %395 = vmatprep.subr.mxu0 %v129_v2 }
   0x6   :  { %396 = vmatpush3.msra.mxu0 %v129_v2 }
   0x7   :  { %19 = vsyncpa [#allocation6], 0  ;;  %397 = vmatprep.subr.mxu0 %v128_v3  ;;  %v127_v5 = vld [vmem:[%s682_s2 + $0x28] sm:$0xff]  ;;  %v126_v6 = vld [vmem:[%s682_s2 + $0x20] sm:$0xff]  ;;  %s483_s1 = smov 32   ;;  %vm102_vm0 = vcmask 261120   ;;  %v39_v59 = vmul.f32 %v566_v4, %v566_v4  ;;  %v38_v60 = vmul.f32 %v551_v1, %v551_v1 }
   0x8   :  { %64 = vrot.lane.b32.xlu1 %v566_v4, %s481_s19  ;;  %46 = vrot.lane.b32.xlu0 %v566_v4, %s482_s20  ;;  %v125_v7 = vld [vmem:[%s682_s2 + $0x18] sm:$0xff]  ;;  %v124_v8 = vld [vmem:[%s682_s2 + $0x10] sm:$0xff]  ;;  %vm137_vm1 = vcmask 523264   ;;  %v484_v61 = vmov 0   ;;  %vm325_vm2 = vcmask 7168   ;;  %s486_s28 = smov [#allocation3]  }
   0x9   :  { %398 = vmatpush3.msra.mxu0 %v128_v3  ;;  %v123_v9 = vld [vmem:[%s682_s2 + $0x8] sm:$0xff]  ;;  %v122_v10 = vld [vmem:[%s682_s2] sm:$0xff]  ;;  %424 = vset.pattern.permute.xlu1 %v484_v61  ;;  %s337_s29 = sshll.u32 %s486_s28, 4  ;;  %s338_s29 = int_to_ptr.vmem [resolvable:$true] %s337_s29 }
   0xa   :  { %399 = vmatprep.subr.mxu0 %v127_v5  ;;  %v607_v25 = vld [vmem:[%s680_s0 + $0x8] sm:$0xff]  ;;  %v612_v26 = vld [vmem:[%s680_s0] sm:$0xff]  ;;  %423 = vset.pattern.permute.xlu0 %v484_v61  ;;  %s437_s11 = scalar_lea.vmem %s338_s29, 256  ;;  %p442_p1 = scmp.lt.s32.totalorder %s338_s29, %s338_s29 }
   0xb   :  { %400 = vmatpush3.msra.mxu0 %v127_v5  ;;  %v376_v31 = vld [vmem:[%s683_s3] ss:$0 sm:$0xff]  ;;  %p438_p0 = scmp.ne.s32.totalorder %s338_s29, %s437_s11  ;;  %p443_p2 = scmp.lt.s32.totalorder %s437_s11, %s437_s11 }
   0xc   :  { %80 = vrot.lane.b32.xlu1 %v566_v4, %s483_s1  ;;  %78 = vrot.lane.b32.xlu0 %v551_v1, %s483_s1  ;;  %v379_v51 = vld [vmem:[%s684_s4] ss:$0 sm:$0xff] }
   0xd   :  { %401 = vmatprep.subr.mxu0 %v126_v6  ;;  %v380_v62 = vld [vmem:[#allocation2] ss:$0 sm:$0xff]  ;;  %p444_p3 = por %p443_p2, %p442_p1 }
   0xe   :  { %402 = vmatpush3.msra.mxu0 %v126_v6 }
   0xf   :  { %403 = vmatprep.subr.mxu0 %v125_v7  ;;  %p445_p4 = pnand %p444_p3, %p438_p0 }
  0x10   :  { %404 = vmatpush3.msra.mxu0 %v125_v7 }
  0x11   :  { %405 = vmatprep.subr.mxu0 %v124_v8 }
  0x12   :  { %406 = vmatpush3.msra.mxu0 %v124_v8 }
  0x13   :  { %407 = vmatprep.subr.mxu0 %v123_v9 }
  0x14   :  { %408 = vmatpush3.msra.mxu0 %v123_v9 }
  0x15   :  { %409 = vmatprep.subr.mxu0 %v122_v10 }
  0x16   :  { %410 = vmatpush3.msra.mxu0 %v122_v10 }
  0x76   :  { %v63_v11 = vpop.permute.xlu1 %62  ;;  %v45_v12 = vpop.permute.xlu0 %44 }
  0x77   :  { %v50_v13 = vadd.f32 %v45_v12, %v551_v1 }
  0x79   :  { %v68_v18 = vadd.f32 %v63_v11, %v50_v13 }
  0x7a   :  { %v65_v14 = vpop.permute.xlu1 %64  ;;  %v47_v15 = vpop.permute.xlu0 %46 }
  0x7b   :  { %v51_v16 = vadd.f32 %v47_v15, %v566_v4 }
  0x7d   :  { %v69_v17 = vadd.f32 %v65_v14, %v51_v16 }
  0x7e   :  { %v81_v19 = vpop.permute.xlu1 %80  ;;  %v79_v20 = vpop.permute.xlu0 %78 }
  0x7f   :  { %v85_v21 = vadd.f32 %v81_v19, %v69_v17  ;;  %v84_v22 = vadd.f32 %v79_v20, %v68_v18 }
  0x81   :  { %v596_v23 = vmul.f32 0.25, %v85_v21  ;;  %v598_v24 = vmul.f32 0.25, %v84_v22 }
  0x83   :  { %116 = vrot.lane.b32.xlu1 %v596_v23, %s483_s1  ;;  %114 = vrot.lane.b32.xlu0 %v598_v24, %s483_s1  ;;  %v99_v20 = vmul.f32 %v596_v23, %v596_v23 }
  0xf5   :  { %v117_v27 = vpop.permute.xlu1 %116  ;;  %v115_v28 = vpop.permute.xlu0 %114 }
  0xf6   :  { %v121_v29 = vsel %vm102_vm0, %v607_v25, %v117_v27  ;;  %v120_v30 = vsel %vm102_vm0, %v612_v26, %v115_v28  ;;  %v98_v27 = vmul.f32 %v598_v24, %v598_v24 }
  0xf7   :  { %411 = vmatprep.mubr.msk.f32.mxu0 %vm137_vm1, %v120_v30 }
  0xf8   :  { %412 = vmatmul.mubr.msk.f32.vlgmr.msra.gmra.mxu0 %vm137_vm1, %v121_v29 }
 0x1b8   :  { %v413_v32 = vpop.f32.mrf.mxu0 }
 0x1b9   :  { %v216_v33 = vadd.f32 %v413_v32, %v376_v31 }
 0x1ba   :  { %v210_v34 = vpop.f32.mrf.mxu0 }
 0x1bb   :  { %v220_v35 = vmul.f32 %v216_v33, %v216_v33  ;;  %v211_v36 = vadd.f32 %v376_v31, %v210_v34 }
 0x1bd   :  { %v222_v37 = vmul.f32 %v220_v35, %v216_v33  ;;  %v219_v38 = vmul.f32 %v211_v36, %v211_v36 }
 0x1bf   :  { %v224_v39 = vmul.f32 0.044715, %v222_v37  ;;  %v221_v40 = vmul.f32 %v219_v38, %v211_v36  ;;  %v485_v37 = vmov 0.0  }
 0x1c1   :  { %v226_v41 = vadd.f32 %v224_v39, %v216_v33  ;;  %v223_v42 = vmul.f32 0.044715, %v221_v40 }
 0x1c3   :  { %v228_v43 = vmul.f32 0.7978846, %v226_v41  ;;  %v225_v44 = vadd.f32 %v223_v42, %v211_v36 }
 0x1c5   :  { %425 = vtanh.f32 %v228_v43  ;;  %v227_v45 = vmul.f32 0.7978846, %v225_v44 }
 0x1c7   :  { %427 = vtanh.f32 %v227_v45 }
 0x1d2   :  { %v426_v46 = vpop.eup %425 }
 0x1d3   :  { %v232_v47 = vadd.f32 1.0, %v426_v46 }
 0x1d4   :  { %v428_v48 = vpop.eup %427 }
 0x1d5   :  { %v234_v49 = vmul.f32 0.5, %v232_v47  ;;  %v231_v50 = vadd.f32 1.0, %v428_v48 }
 0x1d7   :  { %v236_v52 = vmul.f32 %v234_v49, %v216_v33  ;;  %v233_v53 = vmul.f32 0.5, %v231_v50 }
 0x1d9   :  { %v245_v54 = vmul.f32 %v379_v51, %v236_v52  ;;  %v235_v55 = vmul.f32 %v233_v53, %v211_v36 }
 0x1db   :  { %v249_v56 = vsel %vm102_vm0, %v245_v54, 0.0  ;;  %v244_v57 = vmul.f32 %v379_v51, %v235_v55 }
 0x1dc   :  { %250 = vadd.xlane.f32.xlu1 %v249_v56 }
 0x1dd   :  { %v246_v58 = vsel %vm102_vm0, %v244_v57, 0.0 }
 0x1de   :  { %247 = vadd.xlane.f32.xlu0 %v246_v58 }
 0x1ed   :  { %56 = vrot.lane.b32.xlu1 %v39_v59, %s482_s20 }
 0x1f1   :  { %72 = vrot.lane.b32.xlu1 %v39_v59, %s481_s19 }
 0x1f4   :  { %54 = vrot.lane.b32.xlu0 %v38_v60, %s482_s20 }
 0x1f5   :  { %88 = vrot.lane.b32.xlu1 %v39_v59, %s483_s1 }
 0x1f8   :  { %70 = vrot.lane.b32.xlu0 %v38_v60, %s481_s19 }
 0x1fc   :  { %86 = vrot.lane.b32.xlu0 %v38_v60, %s483_s1 }
 0x265   :  { %v251_v63 = vpop.xlane.xlu1 %250 }
 0x266   :  { %v260_v0 = vadd.f32 %v380_v62, %v251_v63 }
 0x267   :  { %v248_v2 = vpop.xlane.xlu0 %247 }
 0x268   :  { %v382_v3 = vmul.f32 -1.442695, %v260_v0  ;;  %v259_v5 = vadd.f32 %v380_v62, %v248_v2 }
 0x269   :  { %v57_v6 = vpop.permute.xlu1 %56 }
 0x26a   :  { %429 = vpow2.f32 %v382_v3  ;;  %v381_v7 = vmul.f32 -1.442695, %v259_v5  ;;  %v61_v11 = vadd.f32 %v57_v6, %v39_v59 }
 0x26b   :  { %v55_v8 = vpop.permute.xlu0 %54 }
 0x26c   :  { %431 = vpow2.f32 %v381_v7  ;;  %v60_v9 = vadd.f32 %v55_v8, %v38_v60 }
 0x26d   :  { %v73_v10 = vpop.permute.xlu1 %72 }
 0x26e   :  { %v77_v13 = vadd.f32 %v73_v10, %v61_v11 }
 0x26f   :  { %v71_v12 = vpop.permute.xlu0 %70 }
 0x270   :  { %v76_v14 = vadd.f32 %v71_v12, %v60_v9 }
 0x271   :  { %v89_v15 = vpop.permute.xlu1 %88 }
 0x272   :  { %v93_v16 = vadd.f32 %v89_v15, %v77_v13 }
 0x273   :  { %v87_v17 = vpop.permute.xlu0 %86 }
 0x274   :  { %v97_v18 = vmul.f32 0.25, %v93_v16  ;;  %v92_v19 = vadd.f32 %v87_v17, %v76_v14 }
 0x276   :  { %v96_v21 = vmul.f32 0.25, %v92_v19  ;;  %v101_v22 = vsub.f32 %v97_v18, %v99_v20 }
 0x277   :  { %v430_v28 = vpop.eup %429 }
 0x278   :  { %v268_v29 = vadd.f32 1.0, %v430_v28  ;;  %v106_v30 = vsel %vm102_vm0, %v101_v22, 0.0  ;;  %v100_v31 = vsub.f32 %v96_v21, %v98_v27 }
 0x279   :  { %v432_v32 = vpop.eup %431  ;;  %107 = vadd.xlane.f32.xlu1 %v106_v30 }
 0x27a   :  { %433 = vrcp.f32 %v268_v29  ;;  %v267_v33 = vadd.f32 1.0, %v432_v32  ;;  %v103_v34 = vsel %vm102_vm0, %v100_v31, 0.0 }
 0x27b   :  { %104 = vadd.xlane.f32.xlu0 %v103_v34 }
 0x27c   :  { %435 = vrcp.f32 %v267_v33 }
 0x287   :  { %v434_v35 = vpop.eup %433 }
 0x288   :  { %329 = vst.msk [vmem:[%s689_s9 + $0x8] sm:$0xff] %vm325_vm2, %v434_v35  ;;  %vm274_vm3 = vcmp.gt.f32.partialorder %v434_v35, 0.5  ;;  %v292_v40 = vsub.f32 1.0, %v434_v35 }
 0x289   :  { %v436_v36 = vpop.eup %435  ;;  %v384_v38 = vsel %vm274_vm3, 1.0, %v485_v37 }
 0x28a   :  { %286 = vperm.xlu1 %424, %v434_v35   ;;  %vm273_vm4 = vcmp.gt.f32.partialorder %v436_v36, 0.5  ;;  %328 = vst.msk [vmem:[%s689_s9] sm:$0xff] %vm325_vm2, %v436_v36  ;;  %331 = vst.msk [vmem:[%s690_s10 + $0x8] sm:$0xff] %vm325_vm2, %v384_v38  ;;  %v291_v41 = vsub.f32 1.0, %v436_v36  ;;  %v310_v43 = vsub.f32 1.0, %v384_v38 }
 0x28b   :  { %v383_v39 = vsel %vm273_vm4, 1.0, %v485_v37 }
 0x28c   :  { %330 = vst.msk [vmem:[%s690_s10] sm:$0xff] %vm325_vm2, %v383_v39  ;;  %v309_v42 = vsub.f32 1.0, %v383_v39 }
 0x28e   :  { %300 = vperm.xlu1 %424, %v292_v40  }
 0x291   :  { %281 = vperm.xlu0 %423, %v436_v36  }
 0x292   :  { %295 = vperm.xlu1 %424, %v291_v41  }
 0x296   :  { %313 = vperm.xlu1 %424, %v309_v42  }
 0x29a   :  { %318 = vperm.xlu1 %424, %v310_v43  }
 0x302   :  { %v108_v44 = vpop.xlane.xlu1 %107 }
 0x303   :  { %v111_v45 = vmul.f32 0.03125, %v108_v44 }
 0x304   :  { %v105_v46 = vpop.xlane.xlu0 %104 }
 0x305   :  { %327 = vst.msk [vmem:[%s688_s8 + $0x8] sm:$0xff] %vm325_vm2, %v111_v45  ;;  %v110_v47 = vmul.f32 0.03125, %v105_v46 }
 0x306   :  { %v287_v48 = vpop.permute.xlu1 %286 }
 0x307   :  { %326 = vst.msk [vmem:[%s688_s8] sm:$0xff] %vm325_vm2, %v110_v47  ;;  %v290_v50 = vmul.f32 %v287_v48, %v607_v25  ;;  %s487_s8 = smov [#allocation5]  }
 0x308   :  { %s349_s30 = sshll.u32 %s487_s8, 4  ;;  %s350_s30 = int_to_ptr.vmem [resolvable:$true] %s349_s30 }
 0x30a   :  { %v301_v49 = vpop.permute.xlu1 %300 }
 0x30b   :  { %v304_v51 = vmul.f32 %v301_v49, %v596_v23 }
 0x30c   :  { %v282_v52 = vpop.permute.xlu0 %281 }
 0x30d   :  { %v306_v53 = vadd.f32 %v304_v51, %v290_v50  ;;  %v289_v55 = vmul.f32 %v282_v52, %v612_v26 }
 0x30e   :  { %v296_v54 = vpop.permute.xlu1 %295 }
 0x30f   :  { %308 = vst.msk [vmem:[#allocation3 + $0x8] sm:$0xff] %vm102_vm0, %v306_v53  ;;  %v303_v56 = vmul.f32 %v296_v54, %v598_v24 }
 0x311   :  { %v305_v57 = vadd.f32 %v303_v56, %v289_v55 }
 0x312   :  { %v314_v58 = vpop.permute.xlu1 %313 }
 0x313   :  { %307 = vst.msk [vmem:[#allocation3] sm:$0xff] %vm102_vm0, %v305_v57  ;;  %v321_v25 = vmul.f32 %v314_v58, %v551_v1 }
 0x314   :  { %448 = shalt.err (!%p445_p4)
}
 0x315   :  { %s488_s12 = smov 128   ;;  %s489_s13 = smov 8   ;;  %323 = vst [vmem:[#allocation5] sm:$0xff] %v321_v25 }
 0x316   :  { %343 = dma.vmem_to_hbm [thread:$0]  %s338_s29, 256, %s686_s6, [#allocation4], %s488_s12, %s488_s12, %s489_s13   ;;  %v319_v23 = vpop.permute.xlu1 %318 }
 0x317   :  { %v322_v24 = vmul.f32 %v319_v23, %v566_v4  ;;  %s457_s2 = scalar_lea.vmem %s350_s30, 256  ;;  %p462_p6 = scmp.lt.s32.totalorder %s350_s30, %s350_s30 }
 0x318   :  { %p458_p5 = scmp.ne.s32.totalorder %s350_s30, %s457_s2  ;;  %p463_p7 = scmp.lt.s32.totalorder %s457_s2, %s457_s2 }
 0x319   :  { %324 = vst [vmem:[#allocation5 + $0x8] sm:$0xff] %v322_v24 }
 0x31a   :  { %p464_p8 = por %p463_p7, %p462_p6 }
 0x31c   :  { %p465_p9 = pnand %p464_p8, %p458_p5 }
 0x31e   :  { %468 = shalt.err (!%p465_p9)
}
 0x31f   :  { %355 = dma.vmem_to_hbm [thread:$0]  %s350_s30, 256, %s687_s7, [#allocation6], %s488_s12, %s488_s12, %s489_s13  }
 0x320   :  { %477 = dma.done.wait [#allocation4], 256  }
 0x321   :  { %478 = vsyncadd [#allocation4], 4294967040 }
 0x322   :  { %479 = dma.done.wait [#allocation6], 256  }
 0x323   :  { %480 = vsyncadd [#allocation6], 4294967040 }
 0x324   :  { %374 = vsyncpa [#allocation4], 1 }
 0x325   :  { %375 = vsyncpa [#allocation6], 1 }

// kernel: integrated_transformer_layer.4
= control target key start
LH: loop header
LB: loop body
LE: loop exit
PB: predicated region body
PF: predicated region fallthrough
CT: control target
= control target key end

     0   :  { %18 = vsyncpa [#allocation3], 0  ;;  %s2455_s25 = smov [#allocation2]   ;;  %s2850_s0 = inlined_call_operand.vmem [shape: f32[16,128], index: 0, kind: input, shape index: {}]   ;;  %s2851_s1 = inlined_call_operand.hbm [shape: f32[128,384], index: 1, kind: input, shape index: {}]   ;;  %s2852_s2 = inlined_call_operand.vmem [shape: f32[1,384], index: 2, kind: input, shape index: {}]   ;;  %s2853_s3 = inlined_call_operand.vmem [shape: f32[128,128], index: 3, kind: input, shape index: {}]   ;;  %s2854_s4 = inlined_call_operand.vmem [shape: f32[1,128], index: 4, kind: input, shape index: {}]   ;;  %s2855_s5 = inlined_call_operand.vmem [shape: f32[128,64], index: 5, kind: input, shape index: {}]   ;;  %s2856_s6 = inlined_call_operand.vmem [shape: f32[1,64], index: 6, kind: input, shape index: {}]   ;;  %s2857_s7 = inlined_call_operand.vmem [shape: f32[64,128], index: 7, kind: input, shape index: {}]   ;;  %s2858_s8 = inlined_call_operand.vmem [shape: f32[1,128], index: 8, kind: input, shape index: {}]   ;;  %s2859_s9 = inlined_call_operand.vmem [shape: f32[1,128], index: 9, kind: input, shape index: {}]   ;;  %s2860_s10 = inlined_call_operand.vmem [shape: f32[1,128], index: 10, kind: input, shape index: {}]   ;;  %s2861_s11 = inlined_call_operand.vmem [shape: f32[1,128], index: 11, kind: input, shape index: {}]   ;;  %s2862_s12 = inlined_call_operand.vmem [shape: f32[1,128], index: 12, kind: input, shape index: {}]   ;;  %s2863_s13 = inlined_call_operand.vmem [shape: f32[16,128], index: 13, kind: output, shape index: {}]  }
   0x1   :  { %s26_s26 = sshll.u32 %s2455_s25, 4  ;;  %s27_s26 = int_to_ptr.vmem [resolvable:$true] %s26_s26 }
   0x2   :  { %s2441_s27 = scalar_lea.vmem %s27_s26, 6144  ;;  %p2446_p1 = scmp.lt.s32.totalorder %s27_s26, %s27_s26 }
   0x3   :  { %p2442_p0 = scmp.ne.s32.totalorder %s27_s26, %s2441_s27  ;;  %p2447_p2 = scmp.lt.s32.totalorder %s2441_s27, %s2441_s27 }
   0x5   :  { %p2448_p3 = por %p2447_p2, %p2446_p1 }
   0x7   :  { %p2449_p4 = pnand %p2448_p3, %p2442_p0 }
   0x9   :  { %2452 = shalt.err (!%p2449_p4)
}
   0xa   :  { %s2456_s28 = smov 384   ;;  %s2457_s29 = smov 24  }
   0xb   :  { %32 = dma.hbm_to_vmem [thread:$0]  %s2851_s1, 6144, %s27_s26, [#allocation3], %s2456_s28, %s2456_s28, %s2457_s29  }
   0xc   :  { %2453 = dma.done.wait [#allocation3], 6144  }
   0xd   :  { %2454 = vsyncadd [#allocation3], 4294961152  ;;  %v2458_v0 = vmov 0.0   ;;  %v106_v1 = vld [vmem:[#allocation2 + $0x170] sm:$0xff]  ;;  %v105_v2 = vld [vmem:[#allocation2 + $0x168] sm:$0xff]  ;;  %vm2459_vm0 = vmmov 0   ;;  %v110_v51 = vlaneseq }
   0xe   :  { %189 = vmatprep.mubr.f32.mxu0 %v2458_v0  ;;  %v103_v3 = vld [vmem:[#allocation2 + $0x158] sm:$0xff]  ;;  %125 = vmatprep.subr.mxu0 %v106_v1  ;;  %v102_v4 = vld [vmem:[#allocation2 + $0x150] sm:$0xff]  ;;  %v100_v5 = vld [vmem:[#allocation2 + $0x140] sm:$0xff]  ;;  %vm277_vm1 = vcmask 261120   ;;  %s2460_s19 = smov 64   ;;  %s2461_s20 = smov 96  }
   0xf   :  { %126 = vmatpush1.msra.mxu0 %v105_v2  ;;  %v99_v6 = vld [vmem:[#allocation2 + $0x138] sm:$0xff]  ;;  %v97_v7 = vld [vmem:[#allocation2 + $0x128] sm:$0xff]  ;;  %v96_v8 = vld [vmem:[#allocation2 + $0x120] sm:$0xff]  ;;  %v111_v52 = vshrl.u32 %v110_v51, 7  ;;  %vm355_vm2 = vcmask 64512   ;;  %vm952_vm3 = vcmask 523264  }
  0x10   :  { %127 = vmatprep.subr.mxu0 %v103_v3  ;;  %v94_v9 = vld [vmem:[#allocation2 + $0x110] sm:$0xff]  ;;  %v93_v10 = vld [vmem:[#allocation2 + $0x108] sm:$0xff]  ;;  %v91_v11 = vld [vmem:[#allocation2 + $0xf8] sm:$0xff]  ;;  %vm954_vm4 = vcmask 785408  }
  0x11   :  { %128 = vmatpush1.msra.mxu0 %v102_v4  ;;  %v90_v12 = vld [vmem:[#allocation2 + $0xf0] sm:$0xff]  ;;  %v88_v13 = vld [vmem:[#allocation2 + $0xe0] sm:$0xff]  ;;  %v87_v15 = vld [vmem:[#allocation2 + $0xd8] sm:$0xff]  ;;  %v116_v53 = vsub.s32 1, %v111_v52  ;;  %v112_v55 = vsub.s32 0, %v111_v52  ;;  %v120_v3 = vsub.s32 2, %v111_v52 }
  0x12   :  { %129 = vmatprep.subr.mxu0 %v100_v5  ;;  %v2540_v14 = vld [vmem:[%s2850_s0] sm:$0xff]  ;;  %v85_v16 = vld [vmem:[#allocation2 + $0xc8] sm:$0xff]  ;;  %v82_v18 = vld [vmem:[#allocation2 + $0xb0] sm:$0xff] }
  0x13   :  { %130 = vmatpush1.msra.mxu0 %v99_v6  ;;  %2194 = vmatprep.mubr.f32.mxu1 %v2540_v14  ;;  %v84_v17 = vld [vmem:[#allocation2 + $0xc0] sm:$0xff]  ;;  %v81_v19 = vld [vmem:[#allocation2 + $0xa8] sm:$0xff]  ;;  %v79_v20 = vld [vmem:[#allocation2 + $0x98] sm:$0xff] }
  0x14   :  { %131 = vmatprep.subr.mxu0 %v97_v7  ;;  %v78_v21 = vld [vmem:[#allocation2 + $0x90] sm:$0xff]  ;;  %v76_v22 = vld [vmem:[#allocation2 + $0x80] sm:$0xff]  ;;  %v75_v23 = vld [vmem:[#allocation2 + $0x78] sm:$0xff] }
  0x15   :  { %132 = vmatpush1.msra.mxu0 %v96_v8  ;;  %v73_v24 = vld [vmem:[#allocation2 + $0x68] sm:$0xff]  ;;  %v72_v25 = vld [vmem:[#allocation2 + $0x60] sm:$0xff]  ;;  %v70_v26 = vld [vmem:[#allocation2 + $0x50] sm:$0xff] }
  0x16   :  { %133 = vmatprep.subr.mxu0 %v94_v9  ;;  %v69_v27 = vld [vmem:[#allocation2 + $0x48] sm:$0xff]  ;;  %v67_v28 = vld [vmem:[#allocation2 + $0x38] sm:$0xff]  ;;  %v66_v29 = vld [vmem:[#allocation2 + $0x30] sm:$0xff] }
  0x17   :  { %134 = vmatpush1.msra.mxu0 %v93_v10  ;;  %v64_v30 = vld [vmem:[#allocation2 + $0x20] sm:$0xff]  ;;  %v63_v31 = vld [vmem:[#allocation2 + $0x18] sm:$0xff]  ;;  %v61_v32 = vld [vmem:[#allocation2 + $0x8] sm:$0xff] }
  0x18   :  { %135 = vmatprep.subr.mxu0 %v91_v11  ;;  %v60_v33 = vld [vmem:[#allocation2] sm:$0xff]  ;;  %v2549_v34 = vld [vmem:[%s2850_s0 + $0x8] sm:$0xff]  ;;  %v107_v35 = vld [vmem:[#allocation2 + $0x178] sm:$0xff] }
  0x19   :  { %136 = vmatpush1.msra.mxu0 %v90_v12  ;;  %v104_v36 = vld [vmem:[#allocation2 + $0x160] sm:$0xff]  ;;  %2162 = vmatprep.subr.mxu1 %v107_v35  ;;  %v101_v37 = vld [vmem:[#allocation2 + $0x148] sm:$0xff]  ;;  %v98_v38 = vld [vmem:[#allocation2 + $0x130] sm:$0xff] }
  0x1a   :  { %137 = vmatprep.subr.mxu0 %v88_v13  ;;  %2163 = vmatpush3.msra.mxu1 %v107_v35  ;;  %v95_v39 = vld [vmem:[#allocation2 + $0x118] sm:$0xff]  ;;  %v92_v40 = vld [vmem:[#allocation2 + $0x100] sm:$0xff]  ;;  %v89_v41 = vld [vmem:[#allocation2 + $0xe8] sm:$0xff] }
  0x1b   :  { %138 = vmatpush1.msra.mxu0 %v87_v15  ;;  %2164 = vmatprep.subr.mxu1 %v104_v36  ;;  %v86_v42 = vld [vmem:[#allocation2 + $0xd0] sm:$0xff]  ;;  %v83_v43 = vld [vmem:[#allocation2 + $0xb8] sm:$0xff]  ;;  %v80_v44 = vld [vmem:[#allocation2 + $0xa0] sm:$0xff] }
  0x1c   :  { %139 = vmatprep.subr.mxu0 %v85_v16  ;;  %2165 = vmatpush3.msra.mxu1 %v104_v36  ;;  %v77_v45 = vld [vmem:[#allocation2 + $0x88] sm:$0xff]  ;;  %v74_v46 = vld [vmem:[#allocation2 + $0x70] sm:$0xff]  ;;  %v71_v47 = vld [vmem:[#allocation2 + $0x58] sm:$0xff] }
  0x1d   :  { %140 = vmatpush1.msra.mxu0 %v84_v17  ;;  %2166 = vmatprep.subr.mxu1 %v101_v37  ;;  %v68_v48 = vld [vmem:[#allocation2 + $0x40] sm:$0xff]  ;;  %v65_v49 = vld [vmem:[#allocation2 + $0x28] sm:$0xff]  ;;  %v62_v50 = vld [vmem:[#allocation2 + $0x10] sm:$0xff] }
  0x1e   :  { %141 = vmatprep.subr.mxu0 %v82_v18  ;;  %2167 = vmatpush3.msra.mxu1 %v101_v37  ;;  %v108_v54 = vld [vmem:[%s2852_s2] sm:$0x7]  ;;  %s2462_s2 = smov 32  }
  0x1f   :  { %142 = vmatpush1.msra.mxu0 %v81_v19  ;;  %2168 = vmatprep.subr.mxu1 %v98_v38  ;;  %v117_v56 = vrot.slane %v108_v54, %v116_v53  ;;  %v113_v59 = vrot.slane %v108_v54, %v112_v55  ;;  %v121_v6 = vrot.slane %v108_v54, %v120_v3 }
  0x20   :  { %143 = vmatprep.subr.mxu0 %v79_v20  ;;  %2169 = vmatpush3.msra.mxu1 %v98_v38 }
  0x21   :  { %144 = vmatpush1.msra.mxu0 %v78_v21  ;;  %2170 = vmatprep.subr.mxu1 %v95_v39 }
  0x22   :  { %145 = vmatprep.subr.mxu0 %v76_v22  ;;  %2171 = vmatpush3.msra.mxu1 %v95_v39 }
  0x23   :  { %146 = vmatpush1.msra.mxu0 %v75_v23  ;;  %2172 = vmatprep.subr.mxu1 %v92_v40 }
  0x24   :  { %147 = vmatprep.subr.mxu0 %v73_v24  ;;  %2173 = vmatpush3.msra.mxu1 %v92_v40 }
  0x25   :  { %148 = vmatpush1.msra.mxu0 %v72_v25  ;;  %2174 = vmatprep.subr.mxu1 %v89_v41 }
  0x26   :  { %149 = vmatprep.subr.mxu0 %v70_v26  ;;  %2175 = vmatpush3.msra.mxu1 %v89_v41 }
  0x27   :  { %150 = vmatpush1.msra.mxu0 %v69_v27  ;;  %2176 = vmatprep.subr.mxu1 %v86_v42 }
  0x28   :  { %151 = vmatprep.subr.mxu0 %v67_v28  ;;  %2177 = vmatpush3.msra.mxu1 %v86_v42 }
  0x29   :  { %152 = vmatpush1.msra.mxu0 %v66_v29  ;;  %2178 = vmatprep.subr.mxu1 %v83_v43 }
  0x2a   :  { %153 = vmatprep.subr.mxu0 %v64_v30  ;;  %2179 = vmatpush3.msra.mxu1 %v83_v43 }
  0x2b   :  { %154 = vmatpush1.msra.mxu0 %v63_v31  ;;  %2180 = vmatprep.subr.mxu1 %v80_v44 }
  0x2c   :  { %155 = vmatprep.subr.mxu0 %v61_v32  ;;  %2181 = vmatpush3.msra.mxu1 %v80_v44 }
  0x2d   :  { %156 = vmatpush1.msra.mxu0 %v60_v33  ;;  %2182 = vmatprep.subr.mxu1 %v77_v45 }
  0x2e   :  { %190 = vmatmul.mubr.f32.vlgmr.msra.gmra.mxu0 %v2540_v14  ;;  %2197 = vmatprep.subr.mxu0 %v2458_v0 }
  0x2f   :  { %195 = vmatprep.mubr.f32.mxu0 %v2458_v0  ;;  %2183 = vmatpush3.msra.mxu1 %v77_v45 }
  0x30   :  { %2184 = vmatprep.subr.mxu1 %v74_v46 }
  0x31   :  { %2185 = vmatpush3.msra.mxu1 %v74_v46 }
  0x32   :  { %196 = vmatmul.mubr.f32.gmra.mxu0 %v2549_v34  ;;  %2186 = vmatprep.subr.mxu1 %v71_v47 }
  0x33   :  { %2199 = vmatprep.mubr.msk.f32.mxu0 %vm2459_vm0, %v2458_v0  ;;  %2187 = vmatpush3.msra.mxu1 %v71_v47 }
  0x34   :  { %2188 = vmatprep.subr.mxu1 %v68_v48 }
  0x35   :  { %2189 = vmatpush3.msra.mxu1 %v68_v48 }
  0x36   :  { %2190 = vmatprep.subr.mxu1 %v65_v49 }
  0x37   :  { %2191 = vmatpush3.msra.mxu1 %v65_v49 }
  0x38   :  { %2192 = vmatprep.subr.mxu1 %v62_v50 }
  0x39   :  { %2193 = vmatpush3.msra.mxu1 %v62_v50 }
  0x3a   :  { %2195 = vmatmul.mubr.f32.vlgmr.msra.gmra.mxu1 %v2549_v34  ;;  %2207 = vmatprep.subr.mxu1 %v2458_v0 }
  0x3b   :  { %2209 = vmatprep.mubr.msk.f32.mxu1 %vm2459_vm0, %v2458_v0 }
  0xee   :  { %v191_v57 = vpop.f32.mrf.mxu0 }
  0xef   :  { %v192_v61 = vadd.f32 %v191_v57, %v113_v59 }
  0xf0   :  { %v193_v58 = vpop.f32.mrf.mxu0 }
  0xf1   :  { %v194_v60 = vadd.f32 %v193_v58, %v117_v56 }
  0xf2   :  { %v197_v62 = vpop.f32.mrf.mxu0 }
  0xf3   :  { %609 = vrot.lane.b32.xlu1 %v194_v60, %s2460_s19  ;;  %442 = vrot.lane.b32.xlu0 %v194_v60, %s2461_s20  ;;  %v198_v1 = vadd.f32 %v197_v62, %v113_v59 }
  0xf4   :  { %2198 = vmatpush3.xpose.msk.msra.mxu0 %vm277_vm1, %v194_v60  ;;  %v199_v63 = vpop.f32.mrf.mxu0 }
  0xf5   :  { %2202 = vmatprep.subr.mxu0 %v2458_v0  ;;  %v200_v2 = vadd.f32 %v199_v63, %v117_v56 }
  0xf7   :  { %2200 = vmatmul.mubr.msk.f32.vlgmr.msra.gmra.mxu0 %vm277_vm1, %v192_v61  ;;  %607 = vrot.lane.b32.xlu1 %v192_v61, %s2460_s19 }
  0xf8   :  { %440 = vrot.lane.b32.xlu0 %v192_v61, %s2461_s20  ;;  %2204 = vmatprep.mubr.msk.f32.mxu0 %vm2459_vm0, %v2458_v0 }
  0xfa   :  { %v2196_v7 = vpop.f32.mrf.mxu1 }
  0xfb   :  { %773 = vrot.lane.b32.xlu1 %v192_v61, %s2462_s2  ;;  %v2580_v10 = vadd.f32 %v2196_v7, %v121_v6 }
  0xfc   :  { %775 = vrot.lane.b32.xlu0 %v194_v60, %s2462_s2  ;;  %v268_v11 = vpop.f32.mrf.mxu1 }
  0xfd   :  { %v2586_v12 = vadd.f32 %v268_v11, %v121_v6 }
  0xff   :  { %1117 = vrot.lane.b32.xlu1 %v198_v1, %s2461_s20  ;;  %2203 = vmatpush3.msra.mxu0 %v2586_v12 }
 0x100   :  { %1119 = vrot.lane.b32.xlu0 %v200_v2, %s2461_s20  ;;  %2212 = vmatprep.subr.mxu0 %v2458_v0 }
 0x103   :  { %1284 = vrot.lane.b32.xlu1 %v198_v1, %s2460_s19 }
 0x104   :  { %1286 = vrot.lane.b32.xlu0 %v200_v2, %s2460_s19 }
 0x107   :  { %1450 = vrot.lane.b32.xlu1 %v198_v1, %s2462_s2 }
 0x108   :  { %1452 = vrot.lane.b32.xlu0 %v200_v2, %s2462_s2 }
 0x165   :  { %v610_v4 = vpop.permute.xlu1 %609  ;;  %v443_v5 = vpop.permute.xlu0 %442 }
 0x166   :  { %2208 = vmatpush3.xpose.msk.msra.mxu1 %vm277_vm1, %v443_v5 }
 0x167   :  { %2217 = vmatprep.subr.mxu1 %v2458_v0 }
 0x169   :  { %v608_v8 = vpop.permute.xlu1 %607 }
 0x16a   :  { %v441_v9 = vpop.permute.xlu0 %440 }
 0x16b   :  { %2210 = vmatmul.mubr.msk.f32.vlgmr.msra.gmra.mxu1 %vm277_vm1, %v441_v9 }
 0x16c   :  { %2218 = vmatpush3.xpose.msk.msra.mxu1 %vm277_vm1, %v610_v4  ;;  %2219 = vmatprep.mubr.msk.f32.mxu1 %vm2459_vm0, %v2458_v0 }
 0x16d   :  { %2227 = vmatprep.subr.mxu1 %v2458_v0  ;;  %v774_v15 = vpop.permute.xlu1 %773 }
 0x16e   :  { %v776_v13 = vpop.permute.xlu0 %775 }
 0x16f   :  { %2220 = vmatmul.mubr.msk.f32.vlgmr.msra.gmra.mxu1 %vm277_vm1, %v608_v8 }
 0x170   :  { %2228 = vmatpush3.xpose.msk.msra.mxu1 %vm277_vm1, %v776_v13  ;;  %2229 = vmatprep.mubr.msk.f32.mxu1 %vm2459_vm0, %v2458_v0 }
 0x171   :  { %2237 = vmatprep.subr.mxu1 %v2458_v0  ;;  %v1118_v17 = vpop.permute.xlu1 %1117 }
 0x172   :  { %v1120_v16 = vpop.permute.xlu0 %1119 }
 0x173   :  { %2230 = vmatmul.mubr.msk.f32.vlgmr.msra.gmra.mxu1 %vm277_vm1, %v774_v15 }
 0x174   :  { %2238 = vmatpush3.xpose.msk.msra.mxu1 %vm277_vm1, %v200_v2  ;;  %2239 = vmatprep.mubr.msk.f32.mxu1 %vm2459_vm0, %v2458_v0 }
 0x175   :  { %2247 = vmatprep.subr.mxu1 %v2458_v0  ;;  %v1285_v19 = vpop.permute.xlu1 %1284 }
 0x176   :  { %v1287_v18 = vpop.permute.xlu0 %1286 }
 0x177   :  { %2240 = vmatmul.mubr.msk.f32.vlgmr.msra.gmra.mxu1 %vm277_vm1, %v198_v1 }
 0x178   :  { %2248 = vmatpush3.xpose.msk.msra.mxu1 %vm277_vm1, %v1120_v16  ;;  %2249 = vmatprep.mubr.msk.f32.mxu1 %vm2459_vm0, %v2458_v0 }
 0x179   :  { %2257 = vmatprep.subr.mxu1 %v2458_v0  ;;  %v1451_v21 = vpop.permute.xlu1 %1450 }
 0x17a   :  { %v1453_v20 = vpop.permute.xlu0 %1452 }
 0x17b   :  { %2250 = vmatmul.mubr.msk.f32.vlgmr.msra.gmra.mxu1 %vm277_vm1, %v1118_v17 }
 0x17c   :  { %2258 = vmatpush3.xpose.msk.msra.mxu1 %vm277_vm1, %v1287_v18  ;;  %2259 = vmatprep.mubr.msk.f32.mxu1 %vm2459_vm0, %v2458_v0 }
 0x17d   :  { %2267 = vmatprep.subr.mxu1 %v2458_v0 }
 0x17f   :  { %2260 = vmatmul.mubr.msk.f32.vlgmr.msra.gmra.mxu1 %vm277_vm1, %v1285_v19 }
 0x180   :  { %2268 = vmatpush3.xpose.msk.msra.mxu1 %vm277_vm1, %v1453_v20  ;;  %2269 = vmatprep.mubr.msk.f32.mxu1 %vm2459_vm0, %v2458_v0 }
 0x183   :  { %2270 = vmatmul.mubr.msk.f32.vlgmr.msra.gmra.mxu1 %vm277_vm1, %v1451_v21 }
 0x1b7   :  { %v350_v22 = vpop.f32.mrf.mxu0 }
 0x1b8   :  { %v354_v23 = vmul.f32 0.17677669, %v350_v22 }
 0x1b9   :  { %v2201_v24 = vpop.f32.mrf.mxu0 }
 0x1ba   :  { %v356_v25 = vsel %vm355_vm2, %v354_v23, -inf }
 0x1bb   :  { %357 = vmax.xlane.f32.xlu0 %v356_v25 }
 0x22b   :  { %v514_v26 = vpop.f32.mrf.mxu1 }
 0x22c   :  { %v518_v27 = vmul.f32 0.17677669, %v514_v26 }
 0x22d   :  { %v2211_v28 = vpop.f32.mrf.mxu1 }
 0x22e   :  { %v519_v29 = vsel %vm355_vm2, %v518_v27, -inf }
 0x22f   :  { %520 = vmax.xlane.f32.xlu1 %v519_v29  ;;  %v681_v30 = vpop.f32.mrf.mxu1 }
 0x230   :  { %v685_v31 = vmul.f32 0.17677669, %v681_v30 }
 0x231   :  { %v2221_v32 = vpop.f32.mrf.mxu1 }
 0x232   :  { %v686_v33 = vsel %vm355_vm2, %v685_v31, -inf }
 0x233   :  { %v847_v35 = vpop.f32.mrf.mxu1  ;;  %687 = vmax.xlane.f32.xlu0 %v686_v33 }
 0x234   :  { %v851_v36 = vmul.f32 0.17677669, %v847_v35 }
 0x235   :  { %v2231_v37 = vpop.f32.mrf.mxu1 }
 0x236   :  { %v852_v38 = vsel %vm355_vm2, %v851_v36, -inf }
 0x237   :  { %v1028_v39 = vpop.f32.mrf.mxu1  ;;  %853 = vmax.xlane.f32.xlu0 %v852_v38 }
 0x238   :  { %v1032_v40 = vmul.f32 0.17677669, %v1028_v39 }
 0x239   :  { %v2241_v41 = vpop.f32.mrf.mxu1 }
 0x23a   :  { %v1033_v42 = vsel %vm355_vm2, %v1032_v40, -inf }
 0x23b   :  { %1034 = vmax.xlane.f32.xlu1 %v1033_v42  ;;  %v1191_v43 = vpop.f32.mrf.mxu1 }
 0x23c   :  { %v1195_v44 = vmul.f32 0.17677669, %v1191_v43 }
 0x23d   :  { %v2251_v45 = vpop.f32.mrf.mxu1 }
 0x23e   :  { %v1196_v46 = vsel %vm355_vm2, %v1195_v44, -inf }
 0x23f   :  { %v1358_v47 = vpop.f32.mrf.mxu1  ;;  %1197 = vmax.xlane.f32.xlu0 %v1196_v46 }
 0x240   :  { %v1362_v48 = vmul.f32 0.17677669, %v1358_v47 }
 0x241   :  { %v2261_v49 = vpop.f32.mrf.mxu1 }
 0x242   :  { %v1363_v50 = vsel %vm355_vm2, %v1362_v48, -inf }
 0x243   :  { %1364 = vmax.xlane.f32.xlu1 %v1363_v50  ;;  %v1524_v51 = vpop.f32.mrf.mxu1 }
 0x244   :  { %v1528_v52 = vmul.f32 0.17677669, %v1524_v51  ;;  %v358_v55 = vpop.xlane.xlu0 %357 }
 0x245   :  { %v2271_v53 = vpop.f32.mrf.mxu1  ;;  %v359_v56 = vsub.f32 %v354_v23, %v358_v55 }
 0x246   :  { %v1529_v54 = vsel %vm355_vm2, %v1528_v52, -inf }
 0x247   :  { %1530 = vmax.xlane.f32.xlu0 %v1529_v54  ;;  %v360_v57 = vmul.f32 1.442695, %v359_v56 }
 0x249   :  { %2389 = vpow2.f32 %v360_v57 }
 0x254   :  { %531 = vrot.lane.b32.xlu1 %v2586_v12, %s2461_s20 }
 0x256   :  { %v2390_v58 = vpop.eup %2389 }
 0x257   :  { %v362_v59 = vsel %vm355_vm2, %v2390_v58, 0.0 }
 0x278   :  { %363 = vadd.xlane.f32.xlu1 %v362_v59 }
 0x289   :  { %863 = vrot.lane.b32.xlu1 %v2586_v12, %s2462_s2 }
 0x2b8   :  { %v521_v60 = vpop.xlane.xlu1 %520 }
 0x2b9   :  { %v522_v61 = vsub.f32 %v518_v27, %v521_v60 }
 0x2bb   :  { %v523_v62 = vmul.f32 1.442695, %v522_v61 }
 0x2bc   :  { %v688_v63 = vpop.xlane.xlu0 %687 }
 0x2bd   :  { %2391 = vpow2.f32 %v523_v62  ;;  %v689_v1 = vsub.f32 %v685_v31, %v688_v63 }
 0x2bf   :  { %v690_v2 = vmul.f32 1.442695, %v689_v1 }
 0x2c0   :  { %v854_v7 = vpop.xlane.xlu0 %853 }
 0x2c1   :  { %2393 = vpow2.f32 %v690_v2  ;;  %v855_v8 = vsub.f32 %v851_v36, %v854_v7  ;;  %v1641_v7 = vld [vmem:[%s2853_s3 + $0x50] sm:$0xff] }
 0x2c3   :  { %v856_v15 = vmul.f32 1.442695, %v855_v8  ;;  %v1640_v8 = vld [vmem:[%s2853_s3 + $0x48] sm:$0xff] }
 0x2c4   :  { %v1035_v9 = vpop.xlane.xlu1 %1034 }
 0x2c5   :  { %v1036_v13 = vsub.f32 %v1032_v40, %v1035_v9  ;;  %2395 = vpow2.f32 %v856_v15  ;;  %v1639_v9 = vld [vmem:[%s2853_s3 + $0x40] sm:$0xff] }
 0x2c7   :  { %v1037_v19 = vmul.f32 1.442695, %v1036_v13  ;;  %v1637_v13 = vld [vmem:[%s2853_s3 + $0x30] sm:$0xff] }
 0x2c8   :  { %v1198_v11 = vpop.xlane.xlu0 %1197 }
 0x2c9   :  { %v1199_v16 = vsub.f32 %v1195_v44, %v1198_v11  ;;  %2397 = vpow2.f32 %v1037_v19  ;;  %v1638_v11 = vld [vmem:[%s2853_s3 + $0x38] sm:$0xff]  ;;  %v1636_v19 = vld [vmem:[%s2853_s3 + $0x28] sm:$0xff] }
 0x2ca   :  { %v2392_v3 = vpop.eup %2391 }
 0x2cb   :  { %v525_v4 = vsel %vm355_vm2, %v2392_v3, 0.0  ;;  %v1200_v21 = vmul.f32 1.442695, %v1199_v16 }
 0x2cc   :  { %526 = vadd.xlane.f32.xlu0 %v525_v4  ;;  %v1365_v17 = vpop.xlane.xlu1 %1364  ;;  %v1645_v4 = vld [vmem:[%s2853_s3 + $0x70] sm:$0xff] }
 0x2cd   :  { %v1366_v20 = vsub.f32 %v1362_v48, %v1365_v17  ;;  %2399 = vpow2.f32 %v1200_v21  ;;  %v1635_v21 = vld [vmem:[%s2853_s3 + $0x20] sm:$0xff] }
 0x2ce   :  { %v2630_v5 = vpop.eup %2393 }
 0x2cf   :  { %v692_v6 = vsel %vm355_vm2, %v2630_v5, 0.0  ;;  %v1367_v23 = vmul.f32 1.442695, %v1366_v20 }
 0x2d0   :  { %693 = vadd.xlane.f32.xlu1 %v692_v6  ;;  %v1531_v18 = vpop.xlane.xlu0 %1530  ;;  %v532_v25 = vpop.permute.xlu1 %531  ;;  %v1642_v6 = vld [vmem:[%s2853_s3 + $0x58] sm:$0xff] }
 0x2d1   :  { %v1532_v22 = vsub.f32 %v1528_v52, %v1531_v18  ;;  %2401 = vpow2.f32 %v1367_v23  ;;  %v1634_v23 = vld [vmem:[%s2853_s3 + $0x18] sm:$0xff] }
 0x2d3   :  { %v1533_v24 = vmul.f32 1.442695, %v1532_v22 }
 0x2d5   :  { %2403 = vpow2.f32 %v1533_v24  ;;  %v1633_v24 = vld [vmem:[%s2853_s3 + $0x10] sm:$0xff] }
 0x2e1   :  { %1208 = vrot.lane.b32.xlu1 %v2580_v10, %s2461_s20 }
 0x2e2   :  { %697 = vrot.lane.b32.xlu0 %v2586_v12, %s2460_s19  ;;  %v2396_v12 = vpop.eup %2395 }
 0x2e3   :  { %v2398_v26 = vpop.eup %2397  ;;  %v858_v27 = vsel %vm355_vm2, %v2396_v12, 0.0 }
 0x2e4   :  { %v2639_v28 = vpop.eup %2399  ;;  %v1039_v31 = vsel %vm355_vm2, %v2398_v26, 0.0 }
 0x2e5   :  { %v2641_v30 = vpop.eup %2401  ;;  %v1202_v32 = vsel %vm355_vm2, %v2639_v28, 0.0 }
 0x2e6   :  { %v2646_v33 = vpop.eup %2403  ;;  %v1369_v35 = vsel %vm355_vm2, %v2641_v30, 0.0 }
 0x2e7   :  { %v1535_v36 = vsel %vm355_vm2, %v2646_v33, 0.0 }
 0x301   :  { %v364_v29 = vpop.xlane.xlu1 %363  ;;  %859 = vadd.xlane.f32.xlu0 %v858_v27  ;;  %v1631_v27 = vld [vmem:[%s2853_s3] sm:$0xff] }
 0x302   :  { %2405 = vrcp.f32 %v364_v29 }
 0x305   :  { %1040 = vadd.xlane.f32.xlu1 %v1039_v31  ;;  %1203 = vadd.xlane.f32.xlu0 %v1202_v32  ;;  %v864_v39 = vpop.permute.xlu1 %863 }
 0x309   :  { %1370 = vadd.xlane.f32.xlu1 %v1369_v35  ;;  %1536 = vadd.xlane.f32.xlu0 %v1535_v36 }
 0x30f   :  { %v2406_v37 = vpop.eup %2405 }
 0x310   :  { %v366_v38 = vmul.f32 %v2406_v37, %v2390_v58 }
 0x312   :  { %2205 = vmatmul.mubr.msk.f32.vlgmr.msra.gmra.mxu0 %vm355_vm2, %v366_v38 }
 0x313   :  { %2213 = vmatpush3.msra.mxu0 %v532_v25  ;;  %2214 = vmatprep.mubr.msk.f32.mxu0 %vm2459_vm0, %v2458_v0 }
 0x314   :  { %2222 = vmatprep.subr.mxu0 %v2458_v0 }
 0x31a   :  { %1540 = vrot.lane.b32.xlu1 %v2580_v10, %s2462_s2 }
 0x31f   :  { %1374 = vrot.lane.b32.xlu0 %v2580_v10, %s2460_s19 }
 0x355   :  { %v527_v40 = vpop.xlane.xlu0 %526 }
 0x356   :  { %2407 = vrcp.f32 %v527_v40 }
 0x359   :  { %v694_v41 = vpop.xlane.xlu1 %693  ;;  %v698_v44 = vpop.permute.xlu0 %697 }
 0x35a   :  { %2409 = vrcp.f32 %v694_v41 }
 0x35d   :  { %v1209_v47 = vpop.permute.xlu1 %1208 }
 0x363   :  { %v2408_v42 = vpop.eup %2407 }
 0x364   :  { %v529_v43 = vmul.f32 %v2408_v42, %v2392_v3  ;;  %v1646_v3 = vld [vmem:[%s2853_s3 + $0x78] sm:$0xff] }
 0x365   :  { %2277 = vmatprep.subr.mxu1 %v1646_v3 }
 0x366   :  { %2215 = vmatmul.mubr.msk.f32.vlgmr.msra.gmra.mxu0 %vm355_vm2, %v529_v43  ;;  %2278 = vmatpush3.msra.mxu1 %v1646_v3 }
 0x367   :  { %v2410_v45 = vpop.eup %2409  ;;  %2223 = vmatpush3.msra.mxu0 %v698_v44  ;;  %2224 = vmatprep.mubr.msk.f32.mxu0 %vm2459_vm0, %v2458_v0 }
 0x368   :  { %2232 = vmatprep.subr.mxu0 %v2458_v0  ;;  %v696_v46 = vmul.f32 %v2410_v45, %v2630_v5  ;;  %2279 = vmatprep.subr.mxu1 %v1645_v4  ;;  %v1643_v5 = vld [vmem:[%s2853_s3 + $0x60] sm:$0xff] }
 0x369   :  { %2280 = vmatpush3.msra.mxu1 %v1645_v4 }
 0x36a   :  { %2225 = vmatmul.mubr.msk.f32.vlgmr.msra.gmra.mxu0 %vm355_vm2, %v696_v46 }
 0x36b   :  { %2233 = vmatpush3.msra.mxu0 %v864_v39  ;;  %2234 = vmatprep.mubr.msk.f32.mxu0 %vm2459_vm0, %v2458_v0 }
 0x36c   :  { %2242 = vmatprep.subr.mxu0 %v2458_v0 }
 0x38a   :  { %v860_v48 = vpop.xlane.xlu0 %859 }
 0x38b   :  { %2411 = vrcp.f32 %v860_v48 }
 0x38e   :  { %v1041_v49 = vpop.xlane.xlu1 %1040  ;;  %v1204_v50 = vpop.xlane.xlu0 %1203 }
 0x38f   :  { %2413 = vrcp.f32 %v1041_v49 }
 0x390   :  { %2415 = vrcp.f32 %v1204_v50 }
 0x392   :  { %v1371_v51 = vpop.xlane.xlu1 %1370  ;;  %v1537_v52 = vpop.xlane.xlu0 %1536 }
 0x393   :  { %2417 = vrcp.f32 %v1371_v51 }
 0x394   :  { %2419 = vrcp.f32 %v1537_v52 }
 0x396   :  { %v1375_v60 = vpop.permute.xlu0 %1374  ;;  %v1541_v62 = vpop.permute.xlu1 %1540 }
 0x398   :  { %v2412_v53 = vpop.eup %2411 }
 0x399   :  { %v862_v54 = vmul.f32 %v2412_v53, %v2396_v12  ;;  %v2057_v53 = vld [vmem:[%s2854_s4] ss:$0 sm:$0xff] }
 0x39b   :  { %2235 = vmatmul.mubr.msk.f32.vlgmr.msra.gmra.mxu0 %vm355_vm2, %v862_v54 }
 0x39c   :  { %v2414_v55 = vpop.eup %2413  ;;  %2243 = vmatpush3.msra.mxu0 %v2580_v10  ;;  %2244 = vmatprep.mubr.msk.f32.mxu0 %vm2459_vm0, %v2458_v0 }
 0x39d   :  { %2252 = vmatprep.subr.mxu0 %v2458_v0  ;;  %v1043_v56 = vmul.f32 %v2414_v55, %v2398_v26  ;;  %v2416_v57 = vpop.eup %2415  ;;  %v1632_v26 = vld [vmem:[%s2853_s3 + $0x8] sm:$0xff] }
 0x39e   :  { %v1206_v58 = vmul.f32 %v2416_v57, %v2639_v28 }
 0x39f   :  { %2245 = vmatmul.mubr.msk.f32.vlgmr.msra.gmra.mxu0 %vm355_vm2, %v1043_v56 }
 0x3a0   :  { %2253 = vmatpush3.msra.mxu0 %v1209_v47  ;;  %2254 = vmatprep.mubr.msk.f32.mxu0 %vm2459_vm0, %v2458_v0  ;;  %v2418_v59 = vpop.eup %2417 }
 0x3a1   :  { %2262 = vmatprep.subr.mxu0 %v2458_v0  ;;  %v1373_v10 = vmul.f32 %v2418_v59, %v2641_v30  ;;  %v2420_v61 = vpop.eup %2419 }
 0x3a2   :  { %v1539_v63 = vmul.f32 %v2420_v61, %v2646_v33  ;;  %v1785_v61 = vld [vmem:[%s2855_s5 + $0x68] sm:$0xff] }
 0x3a3   :  { %2255 = vmatmul.mubr.msk.f32.vlgmr.msra.gmra.mxu0 %vm355_vm2, %v1206_v58 }
 0x3a4   :  { %2263 = vmatpush3.msra.mxu0 %v1375_v60  ;;  %2264 = vmatprep.mubr.msk.f32.mxu0 %vm2459_vm0, %v2458_v0  ;;  %v1787_v60 = vld [vmem:[%s2855_s5 + $0x78] sm:$0xff] }
 0x3a5   :  { %2272 = vmatprep.subr.mxu0 %v2458_v0 }
 0x3a7   :  { %2265 = vmatmul.mubr.msk.f32.vlgmr.msra.gmra.mxu0 %vm355_vm2, %v1373_v10  ;;  %v1786_v10 = vld [vmem:[%s2855_s5 + $0x70] sm:$0xff] }
 0x3a8   :  { %2273 = vmatpush3.msra.mxu0 %v1541_v62  ;;  %2274 = vmatprep.mubr.msk.f32.mxu0 %vm2459_vm0, %v2458_v0  ;;  %v1644_v0 = vld [vmem:[%s2853_s3 + $0x68] sm:$0xff] }
 0x3a9   :  { %2281 = vmatprep.subr.mxu1 %v1644_v0  ;;  %2312 = vmatprep.subr.mxu0 %v1787_v60 }
 0x3aa   :  { %2282 = vmatpush3.msra.mxu1 %v1644_v0  ;;  %v1784_v0 = vld [vmem:[%s2855_s5 + $0x60] sm:$0xff] }
 0x3ab   :  { %2275 = vmatmul.mubr.msk.f32.vlgmr.msra.gmra.mxu0 %vm355_vm2, %v1539_v63  ;;  %2283 = vmatprep.subr.mxu1 %v1643_v5 }
 0x3ac   :  { %2284 = vmatpush3.msra.mxu1 %v1643_v5  ;;  %2313 = vmatpush3.msra.mxu0 %v1787_v60  ;;  %v1783_v5 = vld [vmem:[%s2855_s5 + $0x58] sm:$0xff] }
 0x3ad   :  { %2285 = vmatprep.subr.mxu1 %v1642_v6  ;;  %2314 = vmatprep.subr.mxu0 %v1786_v10 }
 0x3ae   :  { %2286 = vmatpush3.msra.mxu1 %v1642_v6  ;;  %2315 = vmatpush3.msra.mxu0 %v1786_v10  ;;  %v1782_v6 = vld [vmem:[%s2855_s5 + $0x50] sm:$0xff] }
 0x3af   :  { %2287 = vmatprep.subr.mxu1 %v1641_v7  ;;  %2316 = vmatprep.subr.mxu0 %v1785_v61 }
 0x3b0   :  { %2288 = vmatpush3.msra.mxu1 %v1641_v7  ;;  %2317 = vmatpush3.msra.mxu0 %v1785_v61  ;;  %v1781_v7 = vld [vmem:[%s2855_s5 + $0x48] sm:$0xff] }
 0x3b1   :  { %2289 = vmatprep.subr.mxu1 %v1640_v8  ;;  %2318 = vmatprep.subr.mxu0 %v1784_v0 }
 0x3b2   :  { %2290 = vmatpush3.msra.mxu1 %v1640_v8  ;;  %2319 = vmatpush3.msra.mxu0 %v1784_v0  ;;  %v1780_v8 = vld [vmem:[%s2855_s5 + $0x40] sm:$0xff] }
 0x3b3   :  { %2291 = vmatprep.subr.mxu1 %v1639_v9  ;;  %2320 = vmatprep.subr.mxu0 %v1783_v5 }
 0x3b4   :  { %2292 = vmatpush3.msra.mxu1 %v1639_v9  ;;  %2321 = vmatpush3.msra.mxu0 %v1783_v5  ;;  %v1779_v9 = vld [vmem:[%s2855_s5 + $0x38] sm:$0xff] }
 0x3b5   :  { %2293 = vmatprep.subr.mxu1 %v1638_v11  ;;  %2322 = vmatprep.subr.mxu0 %v1782_v6 }
 0x3b6   :  { %2294 = vmatpush3.msra.mxu1 %v1638_v11  ;;  %2323 = vmatpush3.msra.mxu0 %v1782_v6  ;;  %v1778_v11 = vld [vmem:[%s2855_s5 + $0x30] sm:$0xff] }
 0x3b7   :  { %2295 = vmatprep.subr.mxu1 %v1637_v13  ;;  %2324 = vmatprep.subr.mxu0 %v1781_v7 }
 0x3b8   :  { %2296 = vmatpush3.msra.mxu1 %v1637_v13  ;;  %2325 = vmatpush3.msra.mxu0 %v1781_v7  ;;  %v1777_v13 = vld [vmem:[%s2855_s5 + $0x28] sm:$0xff] }
 0x3b9   :  { %2297 = vmatprep.subr.mxu1 %v1636_v19  ;;  %2326 = vmatprep.subr.mxu0 %v1780_v8 }
 0x3ba   :  { %2298 = vmatpush3.msra.mxu1 %v1636_v19  ;;  %2327 = vmatpush3.msra.mxu0 %v1780_v8  ;;  %v1772_v19 = vld [vmem:[%s2855_s5] sm:$0xff] }
 0x3bb   :  { %2299 = vmatprep.subr.mxu1 %v1635_v21  ;;  %2328 = vmatprep.subr.mxu0 %v1779_v9 }
 0x3bc   :  { %2300 = vmatpush3.msra.mxu1 %v1635_v21  ;;  %2329 = vmatpush3.msra.mxu0 %v1779_v9 }
 0x3bd   :  { %2301 = vmatprep.subr.mxu1 %v1634_v23  ;;  %2330 = vmatprep.subr.mxu0 %v1778_v11 }
 0x3be   :  { %2302 = vmatpush3.msra.mxu1 %v1634_v23  ;;  %2331 = vmatpush3.msra.mxu0 %v1778_v11 }
 0x3bf   :  { %2303 = vmatprep.subr.mxu1 %v1633_v24  ;;  %2332 = vmatprep.subr.mxu0 %v1777_v13 }
 0x3c0   :  { %2304 = vmatpush3.msra.mxu1 %v1633_v24  ;;  %2333 = vmatpush3.msra.mxu0 %v1777_v13 }
 0x3c1   :  { %2305 = vmatprep.subr.mxu1 %v1632_v26 }
 0x3c2   :  { %2306 = vmatpush3.msra.mxu1 %v1632_v26 }
 0x3c3   :  { %2307 = vmatprep.subr.mxu1 %v1631_v27 }
 0x3c4   :  { %2308 = vmatpush3.msra.mxu1 %v1631_v27  ;;  %v2058_v27 = vld [vmem:[%s2859_s9] ss:$0 sm:$0xff] }
 0x3d2   :  { %v2689_v1 = vpop.f32.mrf.mxu0 }
 0x3d4   :  { %v2206_v2 = vpop.f32.mrf.mxu0 }
 0x426   :  { %v603_v15 = vpop.f32.mrf.mxu0 }
 0x428   :  { %v2216_v16 = vpop.f32.mrf.mxu0 }
 0x429   :  { %v1775_v16 = vld [vmem:[%s2855_s5 + $0x18] sm:$0xff] }
 0x42a   :  { %v769_v17 = vpop.f32.mrf.mxu0 }
 0x42c   :  { %v2226_v18 = vpop.f32.mrf.mxu0 }
 0x42d   :  { %v1773_v18 = vld [vmem:[%s2855_s5 + $0x8] sm:$0xff] }
 0x45b   :  { %v935_v20 = vpop.f32.mrf.mxu0 }
 0x45d   :  { %v2236_v22 = vpop.f32.mrf.mxu0 }
 0x45f   :  { %v1113_v12 = vpop.f32.mrf.mxu0 }
 0x461   :  { %v2246_v25 = vpop.f32.mrf.mxu0 }
 0x463   :  { %v1280_v28 = vpop.f32.mrf.mxu0 }
 0x464   :  { %v2374_v29 = vpack.i.bf16 %v1280_v28, %v603_v15  ;;  %v1776_v15 = vld [vmem:[%s2855_s5 + $0x20] sm:$0xff] }
 0x465   :  { %v2256_v30 = vpop.f32.mrf.mxu0  ;;  %2334 = vmatprep.subr.mxu0 %v1776_v15 }
 0x466   :  { %2375 = vrot.lane.b32.xlu0 %v2374_v29, %s2462_s2  ;;  %2335 = vmatpush3.msra.mxu0 %v1776_v15 }
 0x467   :  { %v1446_v31 = vpop.f32.mrf.mxu0  ;;  %2336 = vmatprep.subr.mxu0 %v1775_v16 }
 0x468   :  { %v2379_v32 = vpack.i.bf16 %v1446_v31, %v769_v17  ;;  %v1774_v17 = vld [vmem:[%s2855_s5 + $0x10] sm:$0xff]  ;;  %2337 = vmatpush3.msra.mxu0 %v1775_v16 }
 0x469   :  { %v2266_v33 = vpop.f32.mrf.mxu0  ;;  %2338 = vmatprep.subr.mxu0 %v1774_v17 }
 0x46a   :  { %2380 = vrot.lane.b32.xlu1 %v2379_v32, %s2460_s19  ;;  %2339 = vmatpush3.msra.mxu0 %v1774_v17  ;;  %v2059_v32 = vld [vmem:[%s2860_s10] ss:$0 sm:$0xff] }
 0x46b   :  { %v1612_v35 = vpop.f32.mrf.mxu0  ;;  %2340 = vmatprep.subr.mxu0 %v1773_v18 }
 0x46c   :  { %v2384_v36 = vpack.i.bf16 %v1612_v35, %v935_v20  ;;  %2341 = vmatpush3.msra.mxu0 %v1773_v18 }
 0x46d   :  { %v2276_v37 = vpop.f32.mrf.mxu0  ;;  %2342 = vmatprep.subr.mxu0 %v1772_v19 }
 0x46e   :  { %2385 = vrot.lane.b32.xlu0 %v2384_v36, %s2461_s20  ;;  %2343 = vmatpush3.msra.mxu0 %v1772_v19  ;;  %v1895_v36 = vld [vmem:[%s2857_s7 + $0x38] sm:$0xff]  ;;  %v1894_v37 = vld [vmem:[%s2857_s7 + $0x30] sm:$0xff] }
 0x46f   :  { %2347 = vmatprep.subr.mxu1 %v1895_v36 }
 0x4d8   :  { %v2376_v38 = vpop.permute.xlu0 %2375 }
 0x4d9   :  { %v2378_v40 = vunpack.i.h.bf16 %v2376_v38  ;;  %v2377_v41 = vunpack.i.l.bf16 %v2376_v38  ;;  %v1893_v38 = vld [vmem:[%s2857_s7 + $0x28] sm:$0xff] }
 0x4db   :  { %v1628_v45 = vsel %vm277_vm1, %v1113_v12, %v2378_v40  ;;  %v951_v48 = vsel %vm277_vm1, %v2689_v1, %v2377_v41  ;;  %v1891_v40 = vld [vmem:[%s2857_s7 + $0x18] sm:$0xff]  ;;  %v1890_v41 = vld [vmem:[%s2857_s7 + $0x10] sm:$0xff] }
 0x4dc   :  { %v2381_v39 = vpop.permute.xlu1 %2380 }
 0x4dd   :  { %v2383_v42 = vunpack.i.h.bf16 %v2381_v39  ;;  %v2382_v43 = vunpack.i.l.bf16 %v2381_v39  ;;  %v1892_v39 = vld [vmem:[%s2857_s7 + $0x20] sm:$0xff] }
 0x4df   :  { %v953_v49 = vsel %vm952_vm3, %v951_v48, %v2382_v43  ;;  %v1629_v50 = vsel %vm952_vm3, %v1628_v45, %v2383_v42  ;;  %v1889_v42 = vld [vmem:[%s2857_s7 + $0x8] sm:$0xff]  ;;  %v1888_v43 = vld [vmem:[%s2857_s7] sm:$0xff] }
 0x4e0   :  { %v2386_v44 = vpop.permute.xlu0 %2385 }
 0x4e1   :  { %v2388_v46 = vunpack.i.h.bf16 %v2386_v44  ;;  %v2387_v47 = vunpack.i.l.bf16 %v2386_v44  ;;  %v2060_v44 = vld [vmem:[%s2856_s6] ss:$0 sm:$0xff] }
 0x4e3   :  { %v955_v51 = vsel %vm954_vm4, %v953_v49, %v2387_v47  ;;  %v1630_v52 = vsel %vm954_vm4, %v1629_v50, %v2388_v46 }
 0x4e4   :  { %2309 = vmatprep.mubr.f32.mxu1 %v955_v51 }
 0x4e5   :  { %2310 = vmatmul.mubr.f32.vlgmr.msra.gmra.mxu1 %v1630_v52 }
 0x4e6   :  { %2348 = vmatpush3.msra.mxu1 %v1895_v36 }
 0x4e7   :  { %2349 = vmatprep.subr.mxu1 %v1894_v37 }
 0x4e8   :  { %2350 = vmatpush3.msra.mxu1 %v1894_v37 }
 0x4e9   :  { %2351 = vmatprep.subr.mxu1 %v1893_v38 }
 0x4ea   :  { %2352 = vmatpush3.msra.mxu1 %v1893_v38 }
 0x4eb   :  { %2353 = vmatprep.subr.mxu1 %v1892_v39 }
 0x4ec   :  { %2354 = vmatpush3.msra.mxu1 %v1892_v39 }
 0x4ed   :  { %2355 = vmatprep.subr.mxu1 %v1891_v40 }
 0x4ee   :  { %2356 = vmatpush3.msra.mxu1 %v1891_v40 }
 0x4ef   :  { %2357 = vmatprep.subr.mxu1 %v1890_v41 }
 0x4f0   :  { %2358 = vmatpush3.msra.mxu1 %v1890_v41 }
 0x4f1   :  { %2359 = vmatprep.subr.mxu1 %v1889_v42 }
 0x4f2   :  { %2360 = vmatpush3.msra.mxu1 %v1889_v42 }
 0x4f3   :  { %2361 = vmatprep.subr.mxu1 %v1888_v43 }
 0x4f4   :  { %2362 = vmatpush3.msra.mxu1 %v1888_v43 }
 0x5a5   :  { %v2311_v54 = vpop.f32.mrf.mxu1 }
 0x5a6   :  { %v1726_v55 = vadd.f32 %v2311_v54, %v2057_v53 }
 0x5a7   :  { %v1720_v56 = vpop.f32.mrf.mxu1 }
 0x5a8   :  { %v1721_v57 = vadd.f32 %v2057_v53, %v1720_v56  ;;  %v1730_v58 = vadd.f32 %v1726_v55, %v2549_v34 }
 0x5aa   :  { %1733 = vadd.xlane.f32.xlu0 %v1730_v58  ;;  %v1729_v59 = vadd.f32 %v1721_v57, %v2540_v14 }
 0x5ac   :  { %1731 = vadd.xlane.f32.xlu1 %v1729_v59 }
 0x633   :  { %v1734_v14 = vpop.xlane.xlu0 %1733 }
 0x634   :  { %v1737_v34 = vmul.f32 0.0078125, %v1734_v14 }
 0x635   :  { %v1732_v62 = vpop.xlane.xlu1 %1731 }
 0x636   :  { %v1739_v63 = vsub.f32 %v1730_v58, %v1737_v34  ;;  %v1736_v1 = vmul.f32 0.0078125, %v1732_v62 }
 0x638   :  { %v1738_v2 = vsub.f32 %v1729_v59, %v1736_v1  ;;  %v1741_v3 = vmul.f32 %v1739_v63, %v1739_v63  ;;  %v2061_v1 = vld [vmem:[%s2858_s8] ss:$0 sm:$0xff] }
 0x63a   :  { %1744 = vadd.xlane.f32.xlu1 %v1741_v3  ;;  %v1740_v4 = vmul.f32 %v1738_v2, %v1738_v2 }
 0x63c   :  { %1742 = vadd.xlane.f32.xlu0 %v1740_v4 }
 0x6c3   :  { %v1745_v20 = vpop.xlane.xlu1 %1744 }
 0x6c4   :  { %v1747_v21 = vmul.f32 0.0078125, %v1745_v20 }
 0x6c5   :  { %v1743_v22 = vpop.xlane.xlu0 %1742 }
 0x6c6   :  { %v1749_v23 = vadd.f32 1e-05, %v1747_v21  ;;  %v1746_v24 = vmul.f32 0.0078125, %v1743_v22 }
 0x6c8   :  { %2421 = vrsqrt.f32 %v1749_v23  ;;  %v1748_v12 = vadd.f32 1e-05, %v1746_v24 }
 0x6ca   :  { %2423 = vrsqrt.f32 %v1748_v12  ;;  %v2064_v12 = vld [vmem:[%s2861_s11] ss:$0 sm:$0xff] }
 0x6d5   :  { %v2422_v25 = vpop.eup %2421 }
 0x6d6   :  { %v1753_v26 = vmul.f32 %v2422_v25, %v1739_v63 }
 0x6d7   :  { %v2424_v28 = vpop.eup %2423 }
 0x6d8   :  { %v1752_v29 = vmul.f32 %v2424_v28, %v1738_v2  ;;  %v1762_v30 = vmul.f32 %v2058_v27, %v1753_v26 }
 0x6da   :  { %v1761_v31 = vmul.f32 %v2058_v27, %v1752_v29  ;;  %v1771_v35 = vadd.f32 %v2059_v32, %v1762_v30  ;;  %v2065_v27 = vld [vmem:[%s2862_s12] ss:$0 sm:$0xff] }
 0x6dc   :  { %v1770_v33 = vadd.f32 %v2059_v32, %v1761_v31 }
 0x6de   :  { %2344 = vmatprep.mubr.f32.mxu0 %v1770_v33 }
 0x6df   :  { %2345 = vmatmul.mubr.f32.vlgmr.msra.gmra.mxu0 %v1771_v35 }
 0x79f   :  { %v2346_v45 = vpop.f32.mrf.mxu0 }
 0x7a0   :  { %v1867_v46 = vadd.f32 %v2346_v45, %v2060_v44 }
 0x7a1   :  { %v1861_v47 = vpop.f32.mrf.mxu0 }
 0x7a2   :  { %v1871_v48 = vmul.f32 %v1867_v46, %v1867_v46  ;;  %v1862_v49 = vadd.f32 %v2060_v44, %v1861_v47 }
 0x7a4   :  { %v1873_v50 = vmul.f32 %v1871_v48, %v1867_v46  ;;  %v1870_v51 = vmul.f32 %v1862_v49, %v1862_v49 }
 0x7a6   :  { %v1875_v52 = vmul.f32 0.044715, %v1873_v50  ;;  %v1872_v53 = vmul.f32 %v1870_v51, %v1862_v49 }
 0x7a8   :  { %v1877_v54 = vadd.f32 %v1875_v52, %v1867_v46  ;;  %v1874_v55 = vmul.f32 0.044715, %v1872_v53 }
 0x7aa   :  { %v1879_v56 = vmul.f32 0.7978846, %v1877_v54  ;;  %v1876_v57 = vadd.f32 %v1874_v55, %v1862_v49 }
 0x7ac   :  { %2425 = vtanh.f32 %v1879_v56  ;;  %v1878_v58 = vmul.f32 0.7978846, %v1876_v57 }
 0x7ae   :  { %2427 = vtanh.f32 %v1878_v58 }
 0x7b9   :  { %v2426_v59 = vpop.eup %2425 }
 0x7ba   :  { %v1883_v60 = vadd.f32 1.0, %v2426_v59 }
 0x7bb   :  { %v2428_v10 = vpop.eup %2427 }
 0x7bc   :  { %v1882_v61 = vadd.f32 1.0, %v2428_v10  ;;  %v1885_v14 = vmul.f32 0.5, %v1883_v60 }
 0x7be   :  { %v1884_v34 = vmul.f32 0.5, %v1882_v61  ;;  %v1887_v63 = vmul.f32 %v1885_v14, %v1867_v46 }
 0x7c0   :  { %v1886_v62 = vmul.f32 %v1884_v34, %v1862_v49 }
 0x7c2   :  { %2363 = vmatprep.mubr.msk.f32.mxu1 %vm952_vm3, %v1886_v62 }
 0x7c3   :  { %2364 = vmatmul.mubr.msk.f32.vlgmr.msra.gmra.mxu1 %vm952_vm3, %v1887_v63 }
 0x883   :  { %v2365_v2 = vpop.f32.mrf.mxu1 }
 0x884   :  { %v1981_v3 = vadd.f32 %v2365_v2, %v2061_v1 }
 0x885   :  { %v1975_v4 = vpop.f32.mrf.mxu1 }
 0x886   :  { %v1976_v0 = vadd.f32 %v2061_v1, %v1975_v4  ;;  %v1985_v5 = vadd.f32 %v1981_v3, %v1771_v35 }
 0x888   :  { %1988 = vadd.xlane.f32.xlu1 %v1985_v5  ;;  %v1984_v6 = vadd.f32 %v1976_v0, %v1770_v33 }
 0x88a   :  { %1986 = vadd.xlane.f32.xlu0 %v1984_v6 }
 0x911   :  { %v1989_v7 = vpop.xlane.xlu1 %1988 }
 0x912   :  { %v1991_v8 = vmul.f32 0.0078125, %v1989_v7 }
 0x913   :  { %v1987_v9 = vpop.xlane.xlu0 %1986 }
 0x914   :  { %v1993_v11 = vsub.f32 %v1985_v5, %v1991_v8  ;;  %v1990_v13 = vmul.f32 0.0078125, %v1987_v9 }
 0x916   :  { %v1992_v15 = vsub.f32 %v1984_v6, %v1990_v13  ;;  %v1995_v16 = vmul.f32 %v1993_v11, %v1993_v11 }
 0x918   :  { %1998 = vadd.xlane.f32.xlu1 %v1995_v16  ;;  %v1994_v17 = vmul.f32 %v1992_v15, %v1992_v15 }
 0x91a   :  { %1996 = vadd.xlane.f32.xlu0 %v1994_v17 }
 0x9a1   :  { %v1999_v18 = vpop.xlane.xlu1 %1998 }
 0x9a2   :  { %v2001_v19 = vmul.f32 0.0078125, %v1999_v18 }
 0x9a3   :  { %v1997_v20 = vpop.xlane.xlu0 %1996 }
 0x9a4   :  { %v2003_v21 = vadd.f32 1e-05, %v2001_v19  ;;  %v2000_v22 = vmul.f32 0.0078125, %v1997_v20 }
 0x9a6   :  { %2429 = vrsqrt.f32 %v2003_v21  ;;  %v2002_v23 = vadd.f32 1e-05, %v2000_v22 }
 0x9a8   :  { %2431 = vrsqrt.f32 %v2002_v23 }
 0x9b3   :  { %v2430_v24 = vpop.eup %2429 }
 0x9b4   :  { %v2007_v25 = vmul.f32 %v2430_v24, %v1993_v11 }
 0x9b5   :  { %v2432_v26 = vpop.eup %2431 }
 0x9b6   :  { %v2016_v28 = vmul.f32 %v2064_v12, %v2007_v25  ;;  %v2006_v29 = vmul.f32 %v2432_v26, %v1992_v15 }
 0x9b8   :  { %v2025_v30 = vadd.f32 %v2065_v27, %v2016_v28  ;;  %v2015_v31 = vmul.f32 %v2064_v12, %v2006_v29 }
 0x9ba   :  { %2027 = vst [vmem:[%s2863_s13 + $0x8] sm:$0xff] %v2025_v30  ;;  %v2024_v32 = vadd.f32 %v2065_v27, %v2015_v31 }
 0x9bc   :  { %2026 = vst [vmem:[%s2863_s13] sm:$0xff] %v2024_v32 }
 0x9bd   :  { %2032 = vsyncpa [#allocation3], 1 }

// kernel: integrated_transformer_layer.3
= control target key start
LH: loop header
LB: loop body
LE: loop exit
PB: predicated region body
PF: predicated region fallthrough
CT: control target
= control target key end

     0   :  { %vm57_vm0 = vcmask 261120   ;;  %v2188_v6 = vmov 0.0   ;;  %vm2189_vm1 = vmmov 0   ;;  %s2190_s20 = smov 120   ;;  %s2191_s21 = smov 96   ;;  %vm142_vm2 = vcmask 64512   ;;  %s2543_s1 = inlined_call_operand.vmem [shape: f32[32,96], index: 1, kind: input, shape index: {}]   ;;  %s2544_s0 = inlined_call_operand.vmem [shape: f32[16,32], index: 0, kind: input, shape index: {}]   ;;  %s2545_s2 = inlined_call_operand.vmem [shape: f32[1,96], index: 2, kind: input, shape index: {}]   ;;  %s2546_s3 = inlined_call_operand.vmem [shape: f32[32,32], index: 3, kind: input, shape index: {}]   ;;  %s2547_s4 = inlined_call_operand.vmem [shape: f32[1,32], index: 4, kind: input, shape index: {}]   ;;  %s2548_s5 = inlined_call_operand.vmem [shape: f32[32,64], index: 5, kind: input, shape index: {}]   ;;  %s2549_s9 = inlined_call_operand.vmem [shape: f32[1,32], index: 9, kind: input, shape index: {}]   ;;  %s2550_s10 = inlined_call_operand.vmem [shape: f32[1,32], index: 10, kind: input, shape index: {}]   ;;  %s2551_s7 = inlined_call_operand.vmem [shape: f32[64,32], index: 7, kind: input, shape index: {}]   ;;  %s2552_s6 = inlined_call_operand.vmem [shape: f32[1,64], index: 6, kind: input, shape index: {}]   ;;  %s2553_s8 = inlined_call_operand.vmem [shape: f32[1,32], index: 8, kind: input, shape index: {}]   ;;  %s2554_s11 = inlined_call_operand.vmem [shape: f32[1,32], index: 11, kind: input, shape index: {}]   ;;  %s2555_s12 = inlined_call_operand.vmem [shape: f32[1,32], index: 12, kind: input, shape index: {}]   ;;  %s2556_s13 = inlined_call_operand.vmem [shape: f32[16,32], index: 13, kind: output, shape index: {}]  }
   0x1   :  { %v49_v0 = vld [vmem:[%s2543_s1 + $0x18] sm:$0xff]  ;;  %v48_v1 = vld [vmem:[%s2543_s1 + $0x10] sm:$0xff]  ;;  %v2283_v2 = vld [vmem:[%s2544_s0] sm:$0xff]  ;;  %2017 = vmatprep.subr.mxu0 %v2188_v6  ;;  %2019 = vmatprep.mubr.msk.f32.mxu0 %vm2189_vm1, %v2188_v6  ;;  %s2192_s22 = smov 80   ;;  %s2193_s23 = smov 88   ;;  %vm816_vm3 = vcmask 130048  }
   0x2   :  { %1996 = vmatprep.subr.mxu1 %v49_v0  ;;  %v47_v3 = vld [vmem:[%s2543_s1 + $0x8] sm:$0xff]  ;;  %2004 = vmatprep.mubr.msk.f32.mxu1 %vm57_vm0, %v2283_v2  ;;  %v46_v4 = vld [vmem:[%s2543_s1] sm:$0xff]  ;;  %s2194_s24 = smov 72   ;;  %s2195_s25 = smov 112   ;;  %vm818_vm4 = vcmask 195584   ;;  %vm1762_vm5 = vcmask 523264  }
   0x3   :  { %1997 = vmatpush3.msra.mxu1 %v49_v0  ;;  %v2296_v5 = vld [vmem:[%s2544_s0 + $0x8] sm:$0xff]  ;;  %v1896_v8 = vld [vmem:[%s2545_s2] ss:$0 sm:$0xff]  ;;  %s2196_s2 = smov 104   ;;  %s2197_s26 = smov 56  }
   0x4   :  { %1998 = vmatprep.subr.mxu1 %v48_v1  ;;  %s2198_s27 = smov 64   ;;  %s2199_s28 = smov 40  }
   0x5   :  { %1999 = vmatpush3.msra.mxu1 %v48_v1  ;;  %s2200_s29 = smov 48   ;;  %s2201_s30 = smov 8  }
   0x6   :  { %2000 = vmatprep.subr.mxu1 %v47_v3  ;;  %s2202_s14 = smov 16   ;;  %s2203_s15 = smov 24  }
   0x7   :  { %2001 = vmatpush3.msra.mxu1 %v47_v3 }
   0x8   :  { %2002 = vmatprep.subr.mxu1 %v46_v4 }
   0x9   :  { %2003 = vmatpush3.msra.mxu1 %v46_v4 }
   0xa   :  { %2005 = vmatmul.mubr.msk.f32.vlgmr.msra.gmra.mxu1 %vm57_vm0, %v2296_v5  ;;  %2007 = vmatprep.subr.mxu1 %v2188_v6 }
   0xb   :  { %2009 = vmatprep.mubr.msk.f32.mxu1 %vm2189_vm1, %v2188_v6 }
  0xca   :  { %v2006_v7 = vpop.f32.mrf.mxu1 }
  0xcb   :  { %v2317_v11 = vadd.f32 %v2006_v7, %v1896_v8 }
  0xcc   :  { %v130_v9 = vpop.f32.mrf.mxu1 }
  0xcd   :  { %v2309_v10 = vadd.f32 %v1896_v8, %v130_v9 }
  0xcf   :  { %305 = vrot.lane.b32.xlu1 %v2309_v10, %s2190_s20  ;;  %140 = vrot.lane.b32.xlu0 %v2309_v10, %s2191_s21 }
  0xd3   :  { %473 = vrot.lane.b32.xlu1 %v2309_v10, %s2192_s22  ;;  %307 = vrot.lane.b32.xlu0 %v2309_v10, %s2193_s23 }
  0xd7   :  { %639 = vrot.lane.b32.xlu1 %v2309_v10, %s2194_s24  ;;  %471 = vrot.lane.b32.xlu0 %v2309_v10, %s2195_s25 }
  0xdb   :  { %821 = vrot.lane.b32.xlu1 %v2317_v11, %s2191_s21  ;;  %637 = vrot.lane.b32.xlu0 %v2309_v10, %s2196_s2 }
  0xdf   :  { %985 = vrot.lane.b32.xlu1 %v2317_v11, %s2190_s20  ;;  %987 = vrot.lane.b32.xlu0 %v2317_v11, %s2193_s23 }
  0xe3   :  { %1151 = vrot.lane.b32.xlu1 %v2317_v11, %s2195_s25  ;;  %1153 = vrot.lane.b32.xlu0 %v2317_v11, %s2192_s22 }
  0xe7   :  { %1317 = vrot.lane.b32.xlu1 %v2317_v11, %s2196_s2  ;;  %1319 = vrot.lane.b32.xlu0 %v2317_v11, %s2194_s24 }
  0xeb   :  { %395 = vrot.lane.b32.xlu1 %v2309_v10, %s2197_s26  ;;  %229 = vrot.lane.b32.xlu0 %v2309_v10, %s2198_s27 }
 0x141   :  { %v306_v12 = vpop.permute.xlu1 %305  ;;  %v141_v13 = vpop.permute.xlu0 %140 }
 0x142   :  { %2008 = vmatpush3.xpose.msk.msra.mxu1 %vm142_vm2, %v141_v13 }
 0x143   :  { %2012 = vmatprep.subr.mxu1 %v2188_v6 }
 0x145   :  { %v474_v14 = vpop.permute.xlu1 %473  ;;  %2010 = vmatmul.mubr.msk.f32.vlgmr.msra.gmra.mxu1 %vm142_vm2, %v2309_v10  ;;  %v308_v15 = vpop.permute.xlu0 %307 }
 0x146   :  { %2018 = vmatpush3.xpose.msk.msra.mxu0 %vm142_vm2, %v308_v15  ;;  %2014 = vmatprep.mubr.msk.f32.mxu1 %vm2189_vm1, %v2188_v6 }
 0x147   :  { %2027 = vmatprep.subr.mxu0 %v2188_v6 }
 0x149   :  { %v640_v16 = vpop.permute.xlu1 %639  ;;  %2020 = vmatmul.mubr.msk.f32.vlgmr.msra.gmra.mxu0 %vm142_vm2, %v306_v12  ;;  %v472_v17 = vpop.permute.xlu0 %471 }
 0x14a   :  { %2028 = vmatpush3.xpose.msk.msra.mxu0 %vm142_vm2, %v474_v14  ;;  %2029 = vmatprep.mubr.msk.f32.mxu0 %vm2189_vm1, %v2188_v6 }
 0x14b   :  { %2037 = vmatprep.subr.mxu0 %v2188_v6 }
 0x14d   :  { %2030 = vmatmul.mubr.msk.f32.vlgmr.msra.gmra.mxu0 %vm142_vm2, %v472_v17  ;;  %v638_v18 = vpop.permute.xlu0 %637  ;;  %v822_v19 = vpop.permute.xlu1 %821 }
 0x14e   :  { %2038 = vmatpush3.xpose.msk.msra.mxu0 %vm142_vm2, %v640_v16  ;;  %2039 = vmatprep.mubr.msk.f32.mxu0 %vm2189_vm1, %v2188_v6 }
 0x14f   :  { %2047 = vmatprep.subr.mxu0 %v2188_v6 }
 0x151   :  { %2040 = vmatmul.mubr.msk.f32.vlgmr.msra.gmra.mxu0 %vm142_vm2, %v638_v18  ;;  %v988_v20 = vpop.permute.xlu0 %987  ;;  %v986_v21 = vpop.permute.xlu1 %985 }
 0x152   :  { %2048 = vmatpush3.xpose.msk.msra.mxu0 %vm142_vm2, %v822_v19  ;;  %2049 = vmatprep.mubr.msk.f32.mxu0 %vm2189_vm1, %v2188_v6 }
 0x153   :  { %2057 = vmatprep.subr.mxu0 %v2188_v6 }
 0x155   :  { %2050 = vmatmul.mubr.msk.f32.vlgmr.msra.gmra.mxu0 %vm142_vm2, %v2317_v11  ;;  %v1154_v22 = vpop.permute.xlu0 %1153  ;;  %v1152_v24 = vpop.permute.xlu1 %1151 }
 0x156   :  { %2058 = vmatpush3.xpose.msk.msra.mxu0 %vm142_vm2, %v988_v20  ;;  %2059 = vmatprep.mubr.msk.f32.mxu0 %vm2189_vm1, %v2188_v6 }
 0x157   :  { %2067 = vmatprep.subr.mxu0 %v2188_v6 }
 0x159   :  { %2060 = vmatmul.mubr.msk.f32.vlgmr.msra.gmra.mxu0 %vm142_vm2, %v986_v21  ;;  %v1320_v23 = vpop.permute.xlu0 %1319  ;;  %v1318_v26 = vpop.permute.xlu1 %1317 }
 0x15a   :  { %2068 = vmatpush3.xpose.msk.msra.mxu0 %vm142_vm2, %v1154_v22  ;;  %2069 = vmatprep.mubr.msk.f32.mxu0 %vm2189_vm1, %v2188_v6 }
 0x15b   :  { %2077 = vmatprep.subr.mxu0 %v2188_v6 }
 0x15d   :  { %2070 = vmatmul.mubr.msk.f32.vlgmr.msra.gmra.mxu0 %vm142_vm2, %v1152_v24  ;;  %v230_v25 = vpop.permute.xlu0 %229  ;;  %v2383_v59 = vpop.permute.xlu1 %395 }
 0x15e   :  { %2013 = vmatpush3.msra.mxu1 %v230_v25  ;;  %2078 = vmatpush3.xpose.msk.msra.mxu0 %vm142_vm2, %v1320_v23 }
 0x15f   :  { %2079 = vmatprep.mubr.msk.f32.mxu0 %vm2189_vm1, %v2188_v6  ;;  %2022 = vmatprep.subr.mxu1 %v2188_v6 }
 0x161   :  { %2080 = vmatmul.mubr.msk.f32.vlgmr.msra.gmra.mxu0 %vm142_vm2, %v1318_v26 }
 0x205   :  { %v213_v27 = vpop.f32.mrf.mxu1 }
 0x206   :  { %v217_v28 = vmul.f32 0.35355338, %v213_v27 }
 0x207   :  { %v2011_v29 = vpop.f32.mrf.mxu1 }
 0x208   :  { %v218_v30 = vsel %vm142_vm2, %v217_v28, -inf }
 0x209   :  { %219 = vmax.xlane.f32.xlu0 %v218_v30  ;;  %v379_v31 = vpop.f32.mrf.mxu0 }
 0x20a   :  { %v383_v32 = vmul.f32 0.35355338, %v379_v31 }
 0x20b   :  { %v2021_v33 = vpop.f32.mrf.mxu0 }
 0x20c   :  { %v384_v34 = vsel %vm142_vm2, %v383_v32, -inf }
 0x20d   :  { %385 = vmax.xlane.f32.xlu1 %v384_v34  ;;  %v545_v35 = vpop.f32.mrf.mxu0 }
 0x20e   :  { %v549_v36 = vmul.f32 0.35355338, %v545_v35 }
 0x20f   :  { %v2031_v37 = vpop.f32.mrf.mxu0 }
 0x210   :  { %v550_v38 = vsel %vm142_vm2, %v549_v36, -inf }
 0x211   :  { %551 = vmax.xlane.f32.xlu0 %v550_v38  ;;  %v711_v39 = vpop.f32.mrf.mxu0 }
 0x212   :  { %v715_v40 = vmul.f32 0.35355338, %v711_v39 }
 0x213   :  { %v2041_v41 = vpop.f32.mrf.mxu0 }
 0x214   :  { %v716_v42 = vsel %vm142_vm2, %v715_v40, -inf }
 0x215   :  { %717 = vmax.xlane.f32.xlu0 %v716_v42  ;;  %v893_v43 = vpop.f32.mrf.mxu0 }
 0x216   :  { %v897_v44 = vmul.f32 0.35355338, %v893_v43 }
 0x217   :  { %v2051_v45 = vpop.f32.mrf.mxu0 }
 0x218   :  { %v898_v46 = vsel %vm142_vm2, %v897_v44, -inf }
 0x219   :  { %899 = vmax.xlane.f32.xlu1 %v898_v46  ;;  %v1059_v47 = vpop.f32.mrf.mxu0 }
 0x21a   :  { %v1063_v48 = vmul.f32 0.35355338, %v1059_v47 }
 0x21b   :  { %v2061_v49 = vpop.f32.mrf.mxu0 }
 0x21c   :  { %v1064_v50 = vsel %vm142_vm2, %v1063_v48, -inf }
 0x21d   :  { %1065 = vmax.xlane.f32.xlu0 %v1064_v50  ;;  %v1225_v51 = vpop.f32.mrf.mxu0 }
 0x21e   :  { %v1229_v52 = vmul.f32 0.35355338, %v1225_v51 }
 0x21f   :  { %v2071_v53 = vpop.f32.mrf.mxu0 }
 0x220   :  { %v1230_v54 = vsel %vm142_vm2, %v1229_v52, -inf }
 0x221   :  { %1231 = vmax.xlane.f32.xlu1 %v1230_v54  ;;  %v1391_v55 = vpop.f32.mrf.mxu0 }
 0x222   :  { %v1395_v56 = vmul.f32 0.35355338, %v1391_v55 }
 0x223   :  { %v2081_v57 = vpop.f32.mrf.mxu0 }
 0x224   :  { %v1396_v58 = vsel %vm142_vm2, %v1395_v56, -inf }
 0x225   :  { %1397 = vmax.xlane.f32.xlu0 %v1396_v58 }
 0x232   :  { %727 = vrot.lane.b32.xlu1 %v2309_v10, %s2199_s28 }
 0x23b   :  { %561 = vrot.lane.b32.xlu0 %v2309_v10, %s2200_s29 }
 0x292   :  { %v220_v60 = vpop.xlane.xlu0 %219 }
 0x293   :  { %v221_v61 = vsub.f32 %v217_v28, %v220_v60 }
 0x295   :  { %v222_v62 = vmul.f32 1.442695, %v221_v61 }
 0x296   :  { %v386_v63 = vpop.xlane.xlu1 %385 }
 0x297   :  { %2144 = vpow2.f32 %v222_v62  ;;  %v387_v0 = vsub.f32 %v383_v32, %v386_v63 }
 0x299   :  { %v388_v1 = vmul.f32 1.442695, %v387_v0 }
 0x29a   :  { %v552_v3 = vpop.xlane.xlu0 %551 }
 0x29b   :  { %2146 = vpow2.f32 %v388_v1  ;;  %v553_v4 = vsub.f32 %v549_v36, %v552_v3 }
 0x29d   :  { %v554_v7 = vmul.f32 1.442695, %v553_v4 }
 0x29e   :  { %v718_v8 = vpop.xlane.xlu0 %717 }
 0x29f   :  { %2148 = vpow2.f32 %v554_v7  ;;  %v719_v9 = vsub.f32 %v715_v40, %v718_v8 }
 0x2a1   :  { %v720_v12 = vmul.f32 1.442695, %v719_v9 }
 0x2a2   :  { %v900_v20 = vpop.xlane.xlu1 %899 }
 0x2a3   :  { %2150 = vpow2.f32 %v720_v12  ;;  %v901_v21 = vsub.f32 %v897_v44, %v900_v20 }
 0x2a4   :  { %v2145_v13 = vpop.eup %2144 }
 0x2a5   :  { %v224_v10 = vsel %vm142_vm2, %v2145_v13, 0.0  ;;  %v902_v25 = vmul.f32 1.442695, %v901_v21 }
 0x2a6   :  { %225 = vadd.xlane.f32.xlu1 %v224_v10  ;;  %v1066_v22 = vpop.xlane.xlu0 %1065 }
 0x2a7   :  { %v1067_v24 = vsub.f32 %v1063_v48, %v1066_v22  ;;  %2152 = vpow2.f32 %v902_v25 }
 0x2a8   :  { %v2147_v14 = vpop.eup %2146 }
 0x2a9   :  { %v390_v15 = vsel %vm142_vm2, %v2147_v14, 0.0  ;;  %v1068_v28 = vmul.f32 1.442695, %v1067_v24 }
 0x2aa   :  { %391 = vadd.xlane.f32.xlu0 %v390_v15  ;;  %v1232_v23 = vpop.xlane.xlu1 %1231 }
 0x2ab   :  { %v1233_v26 = vsub.f32 %v1229_v52, %v1232_v23  ;;  %2154 = vpow2.f32 %v1068_v28 }
 0x2ac   :  { %v2149_v16 = vpop.eup %2148 }
 0x2ad   :  { %v556_v17 = vsel %vm142_vm2, %v2149_v16, 0.0  ;;  %v1234_v29 = vmul.f32 1.442695, %v1233_v26 }
 0x2ae   :  { %557 = vadd.xlane.f32.xlu1 %v556_v17  ;;  %v1398_v27 = vpop.xlane.xlu0 %1397  ;;  %v728_v40 = vpop.permute.xlu1 %727  ;;  %v1500_v17 = vld [vmem:[%s2546_s3 + $0x10] sm:$0xff] }
 0x2af   :  { %v1399_v30 = vsub.f32 %v1395_v56, %v1398_v27  ;;  %2156 = vpow2.f32 %v1234_v29 }
 0x2b0   :  { %v2388_v18 = vpop.eup %2150 }
 0x2b1   :  { %v722_v19 = vsel %vm142_vm2, %v2388_v18, 0.0  ;;  %v1400_v31 = vmul.f32 1.442695, %v1399_v30 }
 0x2b2   :  { %723 = vadd.xlane.f32.xlu0 %v722_v19  ;;  %v562_v41 = vpop.permute.xlu0 %561  ;;  %v1498_v19 = vld [vmem:[%s2546_s3] sm:$0xff] }
 0x2b3   :  { %2158 = vpow2.f32 %v1400_v31 }
 0x2b4   :  { %v2153_v32 = vpop.eup %2152 }
 0x2b5   :  { %v904_v34 = vsel %vm142_vm2, %v2153_v32, 0.0 }
 0x2b8   :  { %v2396_v33 = vpop.eup %2154 }
 0x2b9   :  { %v1070_v37 = vsel %vm142_vm2, %v2396_v33, 0.0 }
 0x2bc   :  { %v2399_v35 = vpop.eup %2156 }
 0x2bd   :  { %v1236_v36 = vsel %vm142_vm2, %v2399_v35, 0.0 }
 0x2bf   :  { %1075 = vrot.lane.b32.xlu1 %v2317_v11, %s2197_s26 }
 0x2c0   :  { %v2405_v38 = vpop.eup %2158 }
 0x2c1   :  { %v1402_v39 = vsel %vm142_vm2, %v2405_v38, 0.0 }
 0x2c8   :  { %909 = vrot.lane.b32.xlu0 %v2317_v11, %s2198_s27 }
 0x2e3   :  { %905 = vadd.xlane.f32.xlu1 %v904_v34 }
 0x2e7   :  { %1237 = vadd.xlane.f32.xlu1 %v1236_v36  ;;  %1071 = vadd.xlane.f32.xlu0 %v1070_v37 }
 0x2eb   :  { %1403 = vadd.xlane.f32.xlu1 %v1402_v39 }
 0x2fc   :  { %1407 = vrot.lane.b32.xlu1 %v2317_v11, %s2199_s28 }
 0x2fd   :  { %1241 = vrot.lane.b32.xlu0 %v2317_v11, %s2200_s29 }
 0x32f   :  { %v226_v42 = vpop.xlane.xlu1 %225 }
 0x330   :  { %2160 = vrcp.f32 %v226_v42 }
 0x333   :  { %v392_v43 = vpop.xlane.xlu0 %391 }
 0x334   :  { %2162 = vrcp.f32 %v392_v43 }
 0x337   :  { %v558_v44 = vpop.xlane.xlu1 %557 }
 0x338   :  { %2164 = vrcp.f32 %v558_v44 }
 0x33b   :  { %v724_v45 = vpop.xlane.xlu0 %723  ;;  %v1076_v54 = vpop.permute.xlu1 %1075 }
 0x33c   :  { %2166 = vrcp.f32 %v724_v45 }
 0x33d   :  { %v2161_v46 = vpop.eup %2160 }
 0x33e   :  { %v228_v47 = vmul.f32 %v2161_v46, %v2145_v13 }
 0x33f   :  { %v910_v53 = vpop.permute.xlu0 %909 }
 0x340   :  { %2015 = vmatmul.mubr.msk.f32.vlgmr.msra.gmra.mxu1 %vm142_vm2, %v228_v47 }
 0x341   :  { %v2163_v48 = vpop.eup %2162  ;;  %2023 = vmatpush3.msra.mxu1 %v2383_v59  ;;  %2024 = vmatprep.mubr.msk.f32.mxu1 %vm2189_vm1, %v2188_v6 }
 0x342   :  { %2032 = vmatprep.subr.mxu1 %v2188_v6  ;;  %v394_v11 = vmul.f32 %v2163_v48, %v2147_v14 }
 0x344   :  { %2025 = vmatmul.mubr.msk.f32.vlgmr.msra.gmra.mxu1 %vm142_vm2, %v394_v11 }
 0x345   :  { %v2165_v49 = vpop.eup %2164  ;;  %2033 = vmatpush3.msra.mxu1 %v562_v41  ;;  %2034 = vmatprep.mubr.msk.f32.mxu1 %vm2189_vm1, %v2188_v6 }
 0x346   :  { %2042 = vmatprep.subr.mxu1 %v2188_v6  ;;  %v560_v50 = vmul.f32 %v2165_v49, %v2149_v16 }
 0x348   :  { %2035 = vmatmul.mubr.msk.f32.vlgmr.msra.gmra.mxu1 %vm142_vm2, %v560_v50 }
 0x349   :  { %v2167_v51 = vpop.eup %2166  ;;  %2043 = vmatpush3.msra.mxu1 %v728_v40  ;;  %2044 = vmatprep.mubr.msk.f32.mxu1 %vm2189_vm1, %v2188_v6  ;;  %v1923_v40 = vld [vmem:[%s2547_s4] ss:$0 sm:$0xff] }
 0x34a   :  { %2052 = vmatprep.subr.mxu1 %v2188_v6  ;;  %v726_v52 = vmul.f32 %v2167_v51, %v2388_v18  ;;  %v1499_v18 = vld [vmem:[%s2546_s3 + $0x8] sm:$0xff] }
 0x34c   :  { %2045 = vmatmul.mubr.msk.f32.vlgmr.msra.gmra.mxu1 %vm142_vm2, %v726_v52 }
 0x34d   :  { %2053 = vmatpush3.msra.mxu1 %v910_v53  ;;  %2054 = vmatprep.mubr.msk.f32.mxu1 %vm2189_vm1, %v2188_v6 }
 0x34e   :  { %2062 = vmatprep.subr.mxu1 %v2188_v6 }
 0x36c   :  { %v906_v55 = vpop.xlane.xlu1 %905 }
 0x36d   :  { %2168 = vrcp.f32 %v906_v55 }
 0x370   :  { %v1238_v56 = vpop.xlane.xlu1 %1237  ;;  %v1072_v57 = vpop.xlane.xlu0 %1071 }
 0x371   :  { %2170 = vrcp.f32 %v1072_v57  ;;  %v1639_v57 = vld [vmem:[%s2548_s5 + $0x10] sm:$0xff] }
 0x372   :  { %2172 = vrcp.f32 %v1238_v56 }
 0x374   :  { %v1404_v58 = vpop.xlane.xlu1 %1403  ;;  %v1242_v0 = vpop.permute.xlu0 %1241 }
 0x375   :  { %2174 = vrcp.f32 %v1404_v58  ;;  %v1638_v58 = vld [vmem:[%s2548_s5 + $0x8] sm:$0xff] }
 0x378   :  { %v1408_v4 = vpop.permute.xlu1 %1407 }
 0x37a   :  { %v2169_v59 = vpop.eup %2168 }
 0x37b   :  { %v908_v60 = vmul.f32 %v2169_v59, %v2153_v32  ;;  %v1637_v59 = vld [vmem:[%s2548_s5] sm:$0xff] }
 0x37d   :  { %2055 = vmatmul.mubr.msk.f32.vlgmr.msra.gmra.mxu1 %vm142_vm2, %v908_v60 }
 0x37e   :  { %2063 = vmatpush3.msra.mxu1 %v1076_v54  ;;  %2064 = vmatprep.mubr.msk.f32.mxu1 %vm2189_vm1, %v2188_v6  ;;  %v2171_v61 = vpop.eup %2170 }
 0x37f   :  { %2072 = vmatprep.subr.mxu1 %v2188_v6  ;;  %v1074_v62 = vmul.f32 %v2171_v61, %v2396_v33  ;;  %v2173_v63 = vpop.eup %2172 }
 0x380   :  { %v1240_v1 = vmul.f32 %v2173_v63, %v2399_v35 }
 0x381   :  { %2065 = vmatmul.mubr.msk.f32.vlgmr.msra.gmra.mxu1 %vm142_vm2, %v1074_v62 }
 0x382   :  { %2073 = vmatpush3.msra.mxu1 %v1242_v0  ;;  %2074 = vmatprep.mubr.msk.f32.mxu1 %vm2189_vm1, %v2188_v6  ;;  %v2175_v3 = vpop.eup %2174 }
 0x383   :  { %2082 = vmatprep.subr.mxu1 %v2188_v6  ;;  %v1406_v7 = vmul.f32 %v2175_v3, %v2405_v38 }
 0x385   :  { %2075 = vmatmul.mubr.msk.f32.vlgmr.msra.gmra.mxu1 %vm142_vm2, %v1240_v1 }
 0x386   :  { %2083 = vmatpush3.msra.mxu1 %v1408_v4  ;;  %2084 = vmatprep.mubr.msk.f32.mxu1 %vm2189_vm1, %v2188_v6  ;;  %v1501_v6 = vld [vmem:[%s2546_s3 + $0x18] sm:$0xff]  ;;  %v1926_v4 = vld [vmem:[%s2549_s9] ss:$0 sm:$0xff] }
 0x387   :  { %2087 = vmatprep.subr.mxu0 %v1501_v6 }
 0x388   :  { %2088 = vmatpush3.msra.mxu0 %v1501_v6  ;;  %v1753_v6 = vld [vmem:[%s2551_s7 + $0x30] sm:$0xff] }
 0x389   :  { %2085 = vmatmul.mubr.msk.f32.vlgmr.msra.gmra.mxu1 %vm142_vm2, %v1406_v7  ;;  %2089 = vmatprep.subr.mxu0 %v1500_v17 }
 0x38a   :  { %2090 = vmatpush3.msra.mxu0 %v1500_v17  ;;  %v1752_v17 = vld [vmem:[%s2551_s7 + $0x28] sm:$0xff] }
 0x38b   :  { %2091 = vmatprep.subr.mxu0 %v1499_v18 }
 0x38c   :  { %2092 = vmatpush3.msra.mxu0 %v1499_v18  ;;  %v1751_v18 = vld [vmem:[%s2551_s7 + $0x20] sm:$0xff] }
 0x38d   :  { %2093 = vmatprep.subr.mxu0 %v1498_v19 }
 0x38e   :  { %2094 = vmatpush3.msra.mxu0 %v1498_v19  ;;  %v1750_v19 = vld [vmem:[%s2551_s7 + $0x18] sm:$0xff] }
 0x400   :  { %v301_v8 = vpop.f32.mrf.mxu1 }
 0x402   :  { %v2016_v9 = vpop.f32.mrf.mxu1 }
 0x404   :  { %v467_v12 = vpop.f32.mrf.mxu1 }
 0x405   :  { %804 = vrot.lane.b32.xlu0 %v467_v12, %s2201_s30 }
 0x406   :  { %v2026_v13 = vpop.f32.mrf.mxu1 }
 0x408   :  { %v633_v10 = vpop.f32.mrf.mxu1 }
 0x409   :  { %808 = vrot.lane.b32.xlu1 %v633_v10, %s2202_s14 }
 0x40a   :  { %v2036_v14 = vpop.f32.mrf.mxu1 }
 0x40c   :  { %v799_v15 = vpop.f32.mrf.mxu1 }
 0x40d   :  { %812 = vrot.lane.b32.xlu1 %v799_v15, %s2203_s15 }
 0x40e   :  { %v2046_v16 = vpop.f32.mrf.mxu1 }
 0x40f   :  { %v1754_v16 = vld [vmem:[%s2551_s7 + $0x38] sm:$0xff] }
 0x410   :  { %2109 = vmatprep.subr.mxu0 %v1754_v16 }
 0x43d   :  { %v981_v20 = vpop.f32.mrf.mxu1 }
 0x43f   :  { %v2056_v21 = vpop.f32.mrf.mxu1 }
 0x440   :  { %v1748_v21 = vld [vmem:[%s2551_s7 + $0x8] sm:$0xff] }
 0x441   :  { %v1147_v22 = vpop.f32.mrf.mxu1 }
 0x442   :  { %1484 = vrot.lane.b32.xlu0 %v1147_v22, %s2201_s30  ;;  %v1747_v22 = vld [vmem:[%s2551_s7] sm:$0xff] }
 0x443   :  { %v2066_v23 = vpop.f32.mrf.mxu1 }
 0x444   :  { %v1928_v23 = vld [vmem:[%s2552_s6] ss:$0 sm:$0xff] }
 0x445   :  { %v1313_v24 = vpop.f32.mrf.mxu1 }
 0x446   :  { %1488 = vrot.lane.b32.xlu0 %v1313_v24, %s2202_s14 }
 0x447   :  { %v2076_v25 = vpop.f32.mrf.mxu1 }
 0x449   :  { %v1479_v26 = vpop.f32.mrf.mxu1 }
 0x44a   :  { %1492 = vrot.lane.b32.xlu1 %v1479_v26, %s2203_s15 }
 0x44b   :  { %v2086_v27 = vpop.f32.mrf.mxu1 }
 0x477   :  { %v805_v28 = vpop.permute.xlu0 %804 }
 0x478   :  { %v815_v30 = vsel %vm142_vm2, %v301_v8, %v805_v28  ;;  %v1927_v8 = vld [vmem:[%s2550_s10] ss:$0 sm:$0xff] }
 0x47b   :  { %v809_v29 = vpop.permute.xlu1 %808 }
 0x47c   :  { %v817_v31 = vsel %vm816_vm3, %v815_v30, %v809_v29 }
 0x47f   :  { %v813_v32 = vpop.permute.xlu1 %812 }
 0x480   :  { %v819_v33 = vsel %vm818_vm4, %v817_v31, %v813_v32 }
 0x481   :  { %2095 = vmatprep.mubr.msk.f32.mxu0 %vm57_vm0, %v819_v33 }
 0x4b4   :  { %v1485_v34 = vpop.permute.xlu0 %1484 }
 0x4b5   :  { %v1495_v36 = vsel %vm142_vm2, %v981_v20, %v1485_v34  ;;  %v1749_v20 = vld [vmem:[%s2551_s7 + $0x10] sm:$0xff] }
 0x4b8   :  { %v1489_v35 = vpop.permute.xlu0 %1488 }
 0x4b9   :  { %v1496_v37 = vsel %vm816_vm3, %v1495_v36, %v1489_v35 }
 0x4bc   :  { %v1493_v38 = vpop.permute.xlu1 %1492 }
 0x4bd   :  { %v1497_v39 = vsel %vm818_vm4, %v1496_v37, %v1493_v38 }
 0x4be   :  { %2096 = vmatmul.mubr.msk.f32.vlgmr.msra.gmra.mxu0 %vm57_vm0, %v1497_v39 }
 0x4bf   :  { %2110 = vmatpush3.msra.mxu0 %v1754_v16 }
 0x4c0   :  { %2111 = vmatprep.subr.mxu0 %v1753_v6 }
 0x4c1   :  { %2112 = vmatpush3.msra.mxu0 %v1753_v6 }
 0x4c2   :  { %2113 = vmatprep.subr.mxu0 %v1752_v17 }
 0x4c3   :  { %2114 = vmatpush3.msra.mxu0 %v1752_v17 }
 0x4c4   :  { %2115 = vmatprep.subr.mxu0 %v1751_v18 }
 0x4c5   :  { %2116 = vmatpush3.msra.mxu0 %v1751_v18 }
 0x4c6   :  { %2117 = vmatprep.subr.mxu0 %v1750_v19 }
 0x4c7   :  { %2118 = vmatpush3.msra.mxu0 %v1750_v19 }
 0x4c8   :  { %2119 = vmatprep.subr.mxu0 %v1749_v20 }
 0x4c9   :  { %2120 = vmatpush3.msra.mxu0 %v1749_v20 }
 0x4ca   :  { %2121 = vmatprep.subr.mxu0 %v1748_v21 }
 0x4cb   :  { %2122 = vmatpush3.msra.mxu0 %v1748_v21 }
 0x4cc   :  { %2123 = vmatprep.subr.mxu0 %v1747_v22 }
 0x4cd   :  { %2124 = vmatpush3.msra.mxu0 %v1747_v22 }
 0x57e   :  { %v2097_v41 = vpop.f32.mrf.mxu0 }
 0x57f   :  { %v1587_v42 = vadd.f32 %v2097_v41, %v1923_v40 }
 0x580   :  { %v1581_v43 = vpop.f32.mrf.mxu0 }
 0x581   :  { %v1582_v44 = vadd.f32 %v1923_v40, %v1581_v43  ;;  %v1591_v45 = vadd.f32 %v1587_v42, %v2296_v5 }
 0x583   :  { %v1595_v46 = vsel %vm57_vm0, %v1591_v45, 0.0  ;;  %v1590_v47 = vadd.f32 %v1582_v44, %v2283_v2  ;;  %v1640_v2 = vld [vmem:[%s2548_s5 + $0x18] sm:$0xff] }
 0x584   :  { %1596 = vadd.xlane.f32.xlu1 %v1595_v46  ;;  %2098 = vmatprep.subr.mxu1 %v1640_v2  ;;  %v1931_v46 = vld [vmem:[%s2553_s8] ss:$0 sm:$0xff] }
 0x585   :  { %v1592_v48 = vsel %vm57_vm0, %v1590_v47, 0.0  ;;  %2099 = vmatpush3.msra.mxu1 %v1640_v2 }
 0x586   :  { %1593 = vadd.xlane.f32.xlu0 %v1592_v48  ;;  %2100 = vmatprep.subr.mxu1 %v1639_v57 }
 0x587   :  { %2101 = vmatpush3.msra.mxu1 %v1639_v57 }
 0x588   :  { %2102 = vmatprep.subr.mxu1 %v1638_v58 }
 0x589   :  { %2103 = vmatpush3.msra.mxu1 %v1638_v58 }
 0x58a   :  { %2104 = vmatprep.subr.mxu1 %v1637_v59 }
 0x58b   :  { %2105 = vmatpush3.msra.mxu1 %v1637_v59 }
 0x60d   :  { %v1597_v11 = vpop.xlane.xlu1 %1596 }
 0x60e   :  { %v1600_v49 = vmul.f32 0.03125, %v1597_v11 }
 0x60f   :  { %v1594_v50 = vpop.xlane.xlu0 %1593 }
 0x610   :  { %v1599_v51 = vmul.f32 0.03125, %v1594_v50  ;;  %v1602_v52 = vsub.f32 %v1591_v45, %v1600_v49 }
 0x612   :  { %v1601_v53 = vsub.f32 %v1590_v47, %v1599_v51  ;;  %v1604_v56 = vmul.f32 %v1602_v52, %v1602_v52 }
 0x614   :  { %v1603_v54 = vmul.f32 %v1601_v53, %v1601_v53  ;;  %v1608_v5 = vsel %vm57_vm0, %v1604_v56, 0.0 }
 0x616   :  { %v1605_v55 = vsel %vm57_vm0, %v1603_v54, 0.0 }
 0x617   :  { %1606 = vadd.xlane.f32.xlu0 %v1605_v55 }
 0x61b   :  { %1609 = vadd.xlane.f32.xlu0 %v1608_v5 }
 0x6a0   :  { %v1607_v60 = vpop.xlane.xlu0 %1606 }
 0x6a1   :  { %v1611_v61 = vmul.f32 0.03125, %v1607_v60 }
 0x6a3   :  { %v1613_v62 = vadd.f32 1e-05, %v1611_v61 }
 0x6a4   :  { %v1610_v63 = vpop.xlane.xlu0 %1609 }
 0x6a5   :  { %2176 = vrsqrt.f32 %v1613_v62  ;;  %v1612_v0 = vmul.f32 0.03125, %v1610_v63 }
 0x6a7   :  { %v1614_v1 = vadd.f32 1e-05, %v1612_v0 }
 0x6a9   :  { %2178 = vrsqrt.f32 %v1614_v1 }
 0x6b2   :  { %v2177_v3 = vpop.eup %2176 }
 0x6b3   :  { %v1617_v7 = vmul.f32 %v2177_v3, %v1601_v53 }
 0x6b5   :  { %v1626_v9 = vmul.f32 %v1926_v4, %v1617_v7 }
 0x6b6   :  { %v2179_v12 = vpop.eup %2178 }
 0x6b7   :  { %v1618_v13 = vmul.f32 %v2179_v12, %v1602_v52  ;;  %v2489_v10 = vadd.f32 %v1927_v8, %v1626_v9 }
 0x6b9   :  { %v1627_v14 = vmul.f32 %v1926_v4, %v1618_v13  ;;  %2106 = vmatprep.mubr.msk.f32.mxu1 %vm57_vm0, %v2489_v10  ;;  %v1935_v13 = vld [vmem:[%s2555_s12] ss:$0 sm:$0xff] }
 0x6bb   :  { %v1636_v15 = vadd.f32 %v1927_v8, %v1627_v14  ;;  %v1934_v8 = vld [vmem:[%s2554_s11] ss:$0 sm:$0xff] }
 0x6bd   :  { %2107 = vmatmul.mubr.msk.f32.vlgmr.msra.gmra.mxu1 %vm57_vm0, %v1636_v15 }
 0x77d   :  { %v2108_v24 = vpop.f32.mrf.mxu1 }
 0x77e   :  { %v1726_v25 = vadd.f32 %v2108_v24, %v1928_v23 }
 0x77f   :  { %v1720_v26 = vpop.f32.mrf.mxu1 }
 0x780   :  { %v1730_v27 = vmul.f32 %v1726_v25, %v1726_v25  ;;  %v1721_v28 = vadd.f32 %v1928_v23, %v1720_v26 }
 0x782   :  { %v1732_v29 = vmul.f32 %v1730_v27, %v1726_v25  ;;  %v1729_v30 = vmul.f32 %v1721_v28, %v1721_v28 }
 0x784   :  { %v1734_v31 = vmul.f32 0.044715, %v1732_v29  ;;  %v1731_v32 = vmul.f32 %v1729_v30, %v1721_v28 }
 0x786   :  { %v1736_v33 = vadd.f32 %v1734_v31, %v1726_v25  ;;  %v1733_v34 = vmul.f32 0.044715, %v1731_v32 }
 0x788   :  { %v1738_v35 = vmul.f32 0.7978846, %v1736_v33  ;;  %v1735_v36 = vadd.f32 %v1733_v34, %v1721_v28 }
 0x78a   :  { %2180 = vtanh.f32 %v1738_v35  ;;  %v1737_v37 = vmul.f32 0.7978846, %v1735_v36 }
 0x78c   :  { %2182 = vtanh.f32 %v1737_v37 }
 0x797   :  { %v2181_v38 = vpop.eup %2180 }
 0x798   :  { %v1742_v39 = vadd.f32 1.0, %v2181_v38 }
 0x799   :  { %v2183_v40 = vpop.eup %2182 }
 0x79a   :  { %v1741_v41 = vadd.f32 1.0, %v2183_v40  ;;  %v1744_v42 = vmul.f32 0.5, %v1742_v39 }
 0x79c   :  { %v1743_v43 = vmul.f32 0.5, %v1741_v41  ;;  %v1746_v45 = vmul.f32 %v1744_v42, %v1726_v25 }
 0x79e   :  { %v1745_v44 = vmul.f32 %v1743_v43, %v1721_v28 }
 0x7a0   :  { %2125 = vmatprep.mubr.msk.f32.mxu0 %vm1762_vm5, %v1745_v44 }
 0x7a1   :  { %2126 = vmatmul.mubr.msk.f32.vlgmr.msra.gmra.mxu0 %vm1762_vm5, %v1746_v45 }
 0x861   :  { %v2127_v47 = vpop.f32.mrf.mxu0 }
 0x862   :  { %v1841_v48 = vadd.f32 %v2127_v47, %v1931_v46 }
 0x863   :  { %v1835_v11 = vpop.f32.mrf.mxu0 }
 0x864   :  { %v1836_v49 = vadd.f32 %v1931_v46, %v1835_v11  ;;  %v1845_v50 = vadd.f32 %v1841_v48, %v1636_v15 }
 0x866   :  { %v1849_v51 = vsel %vm57_vm0, %v1845_v50, 0.0  ;;  %v1844_v52 = vadd.f32 %v1836_v49, %v2489_v10 }
 0x867   :  { %1850 = vadd.xlane.f32.xlu0 %v1849_v51 }
 0x868   :  { %v1846_v53 = vsel %vm57_vm0, %v1844_v52, 0.0 }
 0x869   :  { %1847 = vadd.xlane.f32.xlu1 %v1846_v53 }
 0x8f0   :  { %v1851_v54 = vpop.xlane.xlu0 %1850 }
 0x8f1   :  { %v1853_v55 = vmul.f32 0.03125, %v1851_v54 }
 0x8f2   :  { %v1848_v56 = vpop.xlane.xlu1 %1847 }
 0x8f3   :  { %v1855_v5 = vsub.f32 %v1845_v50, %v1853_v55  ;;  %v1852_v2 = vmul.f32 0.03125, %v1848_v56 }
 0x8f5   :  { %v1854_v57 = vsub.f32 %v1844_v52, %v1852_v2  ;;  %v1857_v58 = vmul.f32 %v1855_v5, %v1855_v5 }
 0x8f7   :  { %v1861_v59 = vsel %vm57_vm0, %v1857_v58, 0.0  ;;  %v1856_v60 = vmul.f32 %v1854_v57, %v1854_v57 }
 0x8f8   :  { %1862 = vadd.xlane.f32.xlu0 %v1861_v59 }
 0x8f9   :  { %v1858_v61 = vsel %vm57_vm0, %v1856_v60, 0.0 }
 0x8fa   :  { %1859 = vadd.xlane.f32.xlu1 %v1858_v61 }
 0x981   :  { %v1863_v62 = vpop.xlane.xlu0 %1862 }
 0x982   :  { %v1865_v63 = vmul.f32 0.03125, %v1863_v62 }
 0x983   :  { %v1860_v0 = vpop.xlane.xlu1 %1859 }
 0x984   :  { %v1867_v1 = vadd.f32 1e-05, %v1865_v63  ;;  %v1864_v3 = vmul.f32 0.03125, %v1860_v0 }
 0x986   :  { %2184 = vrsqrt.f32 %v1867_v1  ;;  %v1866_v4 = vadd.f32 1e-05, %v1864_v3 }
 0x988   :  { %2186 = vrsqrt.f32 %v1866_v4 }
 0x993   :  { %v2185_v7 = vpop.eup %2184 }
 0x994   :  { %v1871_v9 = vmul.f32 %v2185_v7, %v1855_v5 }
 0x995   :  { %v2187_v12 = vpop.eup %2186 }
 0x996   :  { %v1880_v10 = vmul.f32 %v1934_v8, %v1871_v9  ;;  %v1870_v14 = vmul.f32 %v2187_v12, %v1854_v57 }
 0x998   :  { %v1889_v15 = vadd.f32 %v1935_v13, %v1880_v10  ;;  %v1879_v16 = vmul.f32 %v1934_v8, %v1870_v14 }
 0x99a   :  { %1891 = vst.msk [vmem:[%s2556_s13 + $0x8] sm:$0xff] %vm57_vm0, %v1889_v15  ;;  %v1888_v6 = vadd.f32 %v1935_v13, %v1879_v16 }
 0x99c   :  { %1890 = vst.msk [vmem:[%s2556_s13] sm:$0xff] %vm57_vm0, %v1888_v6 }

</bundles_post_ra>
